<compile_context>
chip_gen: v7x
topology: tpu7x:2x2x1
jax: 0.10.0
libtpu: 0.0.40
codegen_flags: <defaults>
</compile_context>

<pallas_src>
import functools

import jax
import jax.numpy as jnp
import numpy as np
from jax.experimental import pallas as pl
from jax.experimental.pallas import tpu as pltpu

BN_EPS = 1e-5
_VMEM_LIMIT = 32 * 1024 * 1024  # fits v5e/v6e (128 MiB) and v7x (64 MiB) VMEM


def _cparams():
    return pltpu.CompilerParams(
        dimension_semantics=("parallel",),   # shard grid across TensorCores
        vmem_limit_bytes=_VMEM_LIMIT,
    )


def _pick_tile(m):
    """Largest row-tile (multiple of 8) that divides m; falls back to m."""
    for cand in (1024, 512, 256, 128, 64, 32, 16, 8):
        if m % cand == 0:
            return cand
    return m


# ----------------------------------------------------------------------------
# Kernel A: depthwise 3x3 conv (stride 1, pad 1) + BN1 partial stats.
#   grid: (N,) — one batch element per step.
#   x_ref : (1, H, W, C)   unpadded input tile
#   w_ref : (9, C)         depthwise taps, row k = (kh*3 + kw)
#   y_ref : (1, H, W, C)   conv output (stride-1 map)
#   ssum_ref / ssq_ref : (1, 1, C)  partial per-channel sum / sum-of-squares
#   xp_ref: VMEM scratch (H+2, W+16, C) f32 — zero halo built in VMEM so there
#           is no wrapper-side jnp.pad (a full extra HBM round trip).  The
#           interior sits at sublane offset 8 so its store stays tile-aligned;
#           the 9 tap reads use the (proven) unaligned-slice load path.
# ----------------------------------------------------------------------------
def _dw_bn1stats_kernel(x_ref, w_ref, y_ref, ssum_ref, ssq_ref, xp_ref):
    H, W, C = y_ref.shape[1], y_ref.shape[2], y_ref.shape[3]

    # Zero halo every grid step (safe under "parallel" semantics), then place
    # the interior at (row 1, sublane column 8).
    xp_ref[...] = jnp.zeros_like(xp_ref)
    xp_ref[1:H + 1, 8:8 + W, :] = x_ref[0].astype(jnp.float32)

    acc = jnp.zeros((H, W, C), jnp.float32)
    for kh in range(3):
        for kw in range(3):
            tap = w_ref[kh * 3 + kw, :].astype(jnp.float32)        # (C,)
            patch = xp_ref[kh:kh + H, 7 + kw:7 + kw + W, :]        # (H, W, C)
            acc = acc + patch * tap
    # TODO(synk): move the kw=0/2 shifted reads onto the XLU via pltpu.roll +
    # boundary mask once the roll direction is validated on-device.
    # TODO(synk): for realistic H/W/C, additionally tile H (halo blocks) so the
    # f32 accumulator stays within the 64-vreg budget.

    y_ref[0] = acc.astype(y_ref.dtype)
    # Partial BN1 statistics (wrapper uses them when stride == 1).
    ssum_ref[...] = jnp.sum(acc, axis=(0, 1)).reshape(1, 1, C)
    ssq_ref[...] = jnp.sum(acc * acc, axis=(0, 1)).reshape(1, 1, C)


def depthwise_conv3x3_bn1stats(x_nhwc, w9c):
    """Depthwise 3x3 (stride 1, pad 1) + per-batch-element BN partial stats."""
    N, H, W, C = x_nhwc.shape
    return pl.pallas_call(
        _dw_bn1stats_kernel,
        out_shape=(
            jax.ShapeDtypeStruct((N, H, W, C), x_nhwc.dtype),
            jax.ShapeDtypeStruct((N, 1, C), jnp.float32),
            jax.ShapeDtypeStruct((N, 1, C), jnp.float32),
        ),
        grid=(N,),
        in_specs=[
            pl.BlockSpec((1, H, W, C), lambda n: (n, 0, 0, 0)),
            pl.BlockSpec((9, C), lambda n: (0, 0)),
        ],
        out_specs=(
            pl.BlockSpec((1, H, W, C), lambda n: (n, 0, 0, 0)),
            pl.BlockSpec((1, 1, C), lambda n: (n, 0, 0)),
            pl.BlockSpec((1, 1, C), lambda n: (n, 0, 0)),
        ),
        scratch_shapes=[pltpu.VMEM((H + 2, W + 16, C), jnp.float32)],
        compiler_params=_cparams(),
    )(x_nhwc, w9c)


# ----------------------------------------------------------------------------
# Kernel B: fused BN1-apply + ReLU + pointwise 1x1 conv (MXU) + BN2 partial
# stats.  grid: (M // TM,) over flattened rows, pipelined + parallel.
# ----------------------------------------------------------------------------
def _pw_bn1_bn2stats_kernel(x_ref, s1_ref, b1_ref, w_ref,
                            z_ref, zsum_ref, zsq_ref):
    Cout = z_ref.shape[1]
    x = x_ref[...].astype(jnp.float32)
    a = jnp.maximum(x * s1_ref[0] + b1_ref[0], 0.0)          # BN1 + ReLU
    # TODO(synk): for bf16 models feed a/w to the MXU in bf16 (f32 accumulate).
    z = jnp.dot(a, w_ref[...].astype(jnp.float32),
                preferred_element_type=jnp.float32)           # MXU
    z_ref[...] = z.astype(z_ref.dtype)
    # Partial BN2 statistics for this row tile.
    zsum_ref[...] = jnp.sum(z, axis=0).reshape(1, 1, Cout)
    zsq_ref[...] = jnp.sum(z * z, axis=0).reshape(1, 1, Cout)


def pointwise_bn1_bn2stats(y_flat, scale1, bias1, w_pw):
    M, Cin = y_flat.shape
    Cout = w_pw.shape[1]
    TM = _pick_tile(M)
    MT = M // TM
    return pl.pallas_call(
        _pw_bn1_bn2stats_kernel,
        out_shape=(
            jax.ShapeDtypeStruct((M, Cout), y_flat.dtype),
            jax.ShapeDtypeStruct((MT, 1, Cout), jnp.float32),
            jax.ShapeDtypeStruct((MT, 1, Cout), jnp.float32),
        ),
        grid=(MT,),
        in_specs=[
            pl.BlockSpec((TM, Cin), lambda i: (i, 0)),
            pl.BlockSpec((1, Cin), lambda i: (0, 0)),
            pl.BlockSpec((1, Cin), lambda i: (0, 0)),
            pl.BlockSpec((Cin, Cout), lambda i: (0, 0)),
        ],
        out_specs=(
            pl.BlockSpec((TM, Cout), lambda i: (i, 0)),
            pl.BlockSpec((1, 1, Cout), lambda i: (i, 0, 0)),
            pl.BlockSpec((1, 1, Cout), lambda i: (i, 0, 0)),
        ),
        compiler_params=_cparams(),
    )(y_flat,
      scale1.reshape(1, Cin).astype(jnp.float32),
      bias1.reshape(1, Cin).astype(jnp.float32),
      w_pw)


# ----------------------------------------------------------------------------
# Kernel C: BN2-apply + ReLU over row tiles.
# ----------------------------------------------------------------------------
def _bn_relu_apply_kernel(z_ref, s_ref, b_ref, o_ref):
    z = z_ref[...].astype(jnp.float32)
    o_ref[...] = jnp.maximum(z * s_ref[0] + b_ref[0], 0.0).astype(o_ref.dtype)


def bn_relu_apply(z, scale, bias, out_dtype):
    M, Cc = z.shape
    TM = _pick_tile(M)
    return pl.pallas_call(
        _bn_relu_apply_kernel,
        out_shape=jax.ShapeDtypeStruct((M, Cc), out_dtype),
        grid=(M // TM,),
        in_specs=[
            pl.BlockSpec((TM, Cc), lambda i: (i, 0)),
            pl.BlockSpec((1, Cc), lambda i: (0, 0)),
            pl.BlockSpec((1, Cc), lambda i: (0, 0)),
        ],
        out_specs=pl.BlockSpec((TM, Cc), lambda i: (i, 0)),
        compiler_params=_cparams(),
    )(z,
      scale.reshape(1, Cc).astype(jnp.float32),
      bias.reshape(1, Cc).astype(jnp.float32))


# ----------------------------------------------------------------------------
# BN stat finalization (C-sized scalar math, done in the wrapper).
# ----------------------------------------------------------------------------
def _bn_scale_bias(total_sum, total_sumsq, count, gamma, beta):
    mean = total_sum / count
    # E[x^2] - mean^2 can go slightly negative in f32 — clamp before rsqrt.
    var = jnp.maximum(total_sumsq / count - mean * mean, 0.0)
    inv_std = jax.lax.rsqrt(var + BN_EPS)
    scale = gamma.astype(jnp.float32) * inv_std
    bias = beta.astype(jnp.float32) - mean * scale
    return scale, bias


# ----------------------------------------------------------------------------
# Full _DSConv forward.
# ----------------------------------------------------------------------------
def ds_conv_init(key, dw_channels, out_channels, dtype=jnp.float32):
    k1, k2 = jax.random.split(key)
    # PyTorch dw weight (C, 1, 3, 3)  ->  ours (9, C): w9c[kh*3+kw, c].
    dw_w = (jax.random.normal(k1, (3, 3, dw_channels), dtype) * 0.1
            ).reshape(9, dw_channels)
    # PyTorch pw weight (Cout, Cin, 1, 1)  ->  ours (Cin, Cout).
    pw_w = jax.random.normal(k2, (dw_channels, out_channels), dtype) * 0.1
    return {
        "dw_w": dw_w,
        "bn1_gamma": jnp.ones((dw_channels,), dtype),
        "bn1_beta": jnp.zeros((dw_channels,), dtype),
        "pw_w": pw_w,
        "bn2_gamma": jnp.ones((out_channels,), dtype),
        "bn2_beta": jnp.zeros((out_channels,), dtype),
    }


@functools.partial(jax.jit, static_argnames=("stride",))
def ds_conv_forward(x_nchw, params, stride=1):
    # NCHW (PyTorch) -> NHWC (kernel layout).
    x = jnp.transpose(x_nchw, (0, 2, 3, 1))
    N, H, W, Cin = x.shape

    # 1) depthwise 3x3 pad=1 (stride-1 map) + fused BN1 partial stats.
    y1, ssum_p, ssq_p = depthwise_conv3x3_bn1stats(x, params["dw_w"])
    if stride > 1:
        # TODO(synk): push the stride into the depthwise kernel (strided pl.ds
        # on the patch reads) to cut compute and HBM writeback by stride^2.
        y1 = y1[:, ::stride, ::stride, :]
        y1f = y1.astype(jnp.float32)
        bn1_sum = jnp.sum(y1f, axis=(0, 1, 2))
        bn1_sumsq = jnp.sum(y1f * y1f, axis=(0, 1, 2))
    else:
        bn1_sum = jnp.sum(ssum_p[:, 0, :], axis=0)
        bn1_sumsq = jnp.sum(ssq_p[:, 0, :], axis=0)

    Nn, Ho, Wo, _ = y1.shape
    count = Nn * Ho * Wo
    scale1, bias1 = _bn_scale_bias(bn1_sum, bn1_sumsq, count,
                                   params["bn1_gamma"], params["bn1_beta"])

    # 2)+3) fused: BN1-apply + ReLU + 1x1 conv (MXU) + BN2 partial stats.
    y1_flat = y1.reshape(count, Cin)                     # free row-major reshape
    z, zsum_p, zsq_p = pointwise_bn1_bn2stats(y1_flat, scale1, bias1,
                                              params["pw_w"])
    bn2_sum = jnp.sum(zsum_p[:, 0, :], axis=0)
    bn2_sumsq = jnp.sum(zsq_p[:, 0, :], axis=0)
    Cout = z.shape[1]
    scale2, bias2 = _bn_scale_bias(bn2_sum, bn2_sumsq, count,
                                   params["bn2_gamma"], params["bn2_beta"])

    # 4) BN2-apply + ReLU.
    out_flat = bn_relu_apply(z, scale2, bias2, x.dtype)
    out = out_flat.reshape(Nn, Ho, Wo, Cout)
    # NHWC -> NCHW.
    return jnp.transpose(out, (0, 3, 1, 2))


# ----------------------------------------------------------------------------
# Pure-JAX/XLA reference (for numerical validation only).
# ----------------------------------------------------------------------------
def ds_conv_reference(x_nchw, params, stride):
    x = jnp.transpose(x_nchw, (0, 2, 3, 1))
    C = x.shape[-1]
    w_dw = params["dw_w"].reshape(3, 3, 1, C)            # HWIO, depthwise
    y = jax.lax.conv_general_dilated(
        x, w_dw, window_strides=(stride, stride), padding=((1, 1), (1, 1)),
        dimension_numbers=("NHWC", "HWIO", "NHWC"), feature_group_count=C)

    def bn_relu(t, gamma, beta):
        mean = jnp.mean(t, axis=(0, 1, 2))
        var = jnp.var(t, axis=(0, 1, 2))                 # biased (training BN)
        return jnp.maximum((t - mean) / jnp.sqrt(var + BN_EPS) * gamma + beta,
                           0.0)

    y = bn_relu(y, params["bn1_gamma"], params["bn1_beta"])
    zz = jnp.einsum("nhwc,cd->nhwd", y, params["pw_w"])
    zz = bn_relu(zz, params["bn2_gamma"], params["bn2_beta"])
    return jnp.transpose(zz, (0, 3, 1, 2))


if __name__ == "__main__":
    key = jax.random.PRNGKey(0)
    kx, kp = jax.random.split(key)

    N, C_IN, H, W = 2, 4, 16, 16
    C_OUT = 8

    x = jax.random.normal(kx, (N, C_IN, H, W), jnp.float32)
    params = ds_conv_init(kp, C_IN, C_OUT)

    for stride in (1, 2):
        out = ds_conv_forward(x, params, stride=stride)
        out = jax.block_until_ready(out)

        expected_h = (H + 2 - 3) // stride + 1
        expected_w = (W + 2 - 3) // stride + 1
        assert out.shape == (N, C_OUT, expected_h, expected_w), out.shape
        assert out.dtype == jnp.float32
        assert bool(jnp.all(out >= 0.0))                 # ReLU output

        ref = ds_conv_reference(x, params, stride)
        # Loose tolerance: the XLA reference conv/einsum use the TPU default
        # (bf16-pass) matmul precision, our kernel path differs in rounding.
        np.testing.assert_allclose(np.asarray(out), np.asarray(ref),
                                   rtol=5e-2, atol=5e-2)

    print("KERNEL_OK")
</pallas_src>

<mosaic_0001>
module attributes {stable_mosaic.version = 11 : i64} {
  func.func @_dw_bn1stats_kernel(%arg0: i32, %arg1: memref<1x16x16x4xf32, #tpu.memory_space<vmem>>, %arg2: memref<9x4xf32, #tpu.memory_space<vmem>>, %arg3: memref<1x16x16x4xf32, #tpu.memory_space<vmem>>, %arg4: memref<1x1x4xf32, #tpu.memory_space<vmem>>, %arg5: memref<1x1x4xf32, #tpu.memory_space<vmem>>, %arg6: memref<18x32x4xf32, #tpu.memory_space<vmem>>) attributes {dimension_semantics = [#tpu.dimension_semantics<parallel>], iteration_bounds = array<i64: 2>, scalar_prefetch = 0 : i64, scratch_operands = 1 : i64, tpu.core_type = #tpu.core_type<tc>, window_params = [{transform_indices = @transform_0, window_bounds = array<i64: 1, 16, 16, 4>}, {pipeline_mode = #tpu.pipeline_mode<synchronous>, transform_indices = @transform_1, window_bounds = array<i64: 9, 4>}, {transform_indices = @transform_2, window_bounds = array<i64: 1, 16, 16, 4>}, {transform_indices = @transform_3, window_bounds = array<i64: 1, 1, 4>}, {transform_indices = @transform_4, window_bounds = array<i64: 1, 1, 4>}]} {
    %cst = arith.constant 0.000000e+00 : f32
    %0 = vector.broadcast %cst : f32 to vector<18x32x4xf32>
    %c0 = arith.constant 0 : index
    %c0_0 = arith.constant 0 : index
    %c0_1 = arith.constant 0 : index
    %1 = vector.load %arg6[%c0, %c0_0, %c0_1] : memref<18x32x4xf32, #tpu.memory_space<vmem>>, vector<18x32x4xf32>
    tpu.vector_store %arg6[%c0, %c0_0, %c0_1], %0 {strides = array<i32>} : memref<18x32x4xf32, #tpu.memory_space<vmem>>, vector<18x32x4xf32>,
    %c0_2 = arith.constant 0 : index
    %c0_3 = arith.constant 0 : index
    %c0_4 = arith.constant 0 : index
    %c0_5 = arith.constant 0 : index
    %2 = vector.load %arg1[%c0_2, %c0_3, %c0_4, %c0_5] : memref<1x16x16x4xf32, #tpu.memory_space<vmem>>, vector<1x16x16x4xf32>
    %3 = vector.shape_cast %2 : vector<1x16x16x4xf32> to vector<16x16x4xf32>
    %c1 = arith.constant 1 : index
    %c8 = arith.constant 8 : index
    %c0_6 = arith.constant 0 : index
    %4 = vector.load %arg6[%c1, %c8, %c0_6] : memref<18x32x4xf32, #tpu.memory_space<vmem>>, vector<16x16x4xf32>
    tpu.vector_store %arg6[%c1, %c8, %c0_6], %3 {strides = array<i32>} : memref<18x32x4xf32, #tpu.memory_space<vmem>>, vector<16x16x4xf32>,
    %cst_7 = arith.constant 0.000000e+00 : f32
    %5 = vector.broadcast %cst_7 : f32 to vector<16x16x4xf32>
    %c0_8 = arith.constant 0 : index
    %c0_9 = arith.constant 0 : index
    %6 = vector.load %arg2[%c0_8, %c0_9] : memref<9x4xf32, #tpu.memory_space<vmem>>, vector<1x4xf32>
    %7 = vector.shape_cast %6 : vector<1x4xf32> to vector<4xf32>
    %c0_10 = arith.constant 0 : index
    %c7 = arith.constant 7 : index
    %c0_11 = arith.constant 0 : index
    %8 = vector.load %arg6[%c0_10, %c7, %c0_11] : memref<18x32x4xf32, #tpu.memory_space<vmem>>, vector<16x16x4xf32>
    %9 = vector.shape_cast %7 : vector<4xf32> to vector<1x1x4xf32>
    %10 = vector.broadcast %9 : vector<1x1x4xf32> to vector<16x16x4xf32>
    %11 = arith.mulf %8, %10 : vector<16x16x4xf32>
    %12 = arith.addf %5, %11 : vector<16x16x4xf32>
    %c1_12 = arith.constant 1 : index
    %c0_13 = arith.constant 0 : index
    %13 = vector.load %arg2[%c1_12, %c0_13] : memref<9x4xf32, #tpu.memory_space<vmem>>, vector<1x4xf32>
    %14 = vector.shape_cast %13 : vector<1x4xf32> to vector<4xf32>
    %c0_14 = arith.constant 0 : index
    %c8_15 = arith.constant 8 : index
    %c0_16 = arith.constant 0 : index
    %15 = vector.load %arg6[%c0_14, %c8_15, %c0_16] : memref<18x32x4xf32, #tpu.memory_space<vmem>>, vector<16x16x4xf32>
    %16 = vector.shape_cast %14 : vector<4xf32> to vector<1x1x4xf32>
    %17 = vector.broadcast %16 : vector<1x1x4xf32> to vector<16x16x4xf32>
    %18 = arith.mulf %15, %17 : vector<16x16x4xf32>
    %19 = arith.addf %12, %18 : vector<16x16x4xf32>
    %c2 = arith.constant 2 : index
    %c0_17 = arith.constant 0 : index
    %20 = vector.load %arg2[%c2, %c0_17] : memref<9x4xf32, #tpu.memory_space<vmem>>, vector<1x4xf32>
    %21 = vector.shape_cast %20 : vector<1x4xf32> to vector<4xf32>
    %c0_18 = arith.constant 0 : index
    %c9 = arith.constant 9 : index
    %c0_19 = arith.constant 0 : index
    %22 = vector.load %arg6[%c0_18, %c9, %c0_19] : memref<18x32x4xf32, #tpu.memory_space<vmem>>, vector<16x16x4xf32>
    %23 = vector.shape_cast %21 : vector<4xf32> to vector<1x1x4xf32>
    %24 = vector.broadcast %23 : vector<1x1x4xf32> to vector<16x16x4xf32>
    %25 = arith.mulf %22, %24 : vector<16x16x4xf32>
    %26 = arith.addf %19, %25 : vector<16x16x4xf32>
    %c3 = arith.constant 3 : index
    %c0_20 = arith.constant 0 : index
    %27 = vector.load %arg2[%c3, %c0_20] : memref<9x4xf32, #tpu.memory_space<vmem>>, vector<1x4xf32>
    %28 = vector.shape_cast %27 : vector<1x4xf32> to vector<4xf32>
    %c1_21 = arith.constant 1 : index
    %c7_22 = arith.constant 7 : index
    %c0_23 = arith.constant 0 : index
    %29 = vector.load %arg6[%c1_21, %c7_22, %c0_23] : memref<18x32x4xf32, #tpu.memory_space<vmem>>, vector<16x16x4xf32>
    %30 = vector.shape_cast %28 : vector<4xf32> to vector<1x1x4xf32>
    %31 = vector.broadcast %30 : vector<1x1x4xf32> to vector<16x16x4xf32>
    %32 = arith.mulf %29, %31 : vector<16x16x4xf32>
    %33 = arith.addf %26, %32 : vector<16x16x4xf32>
    %c4 = arith.constant 4 : index
    %c0_24 = arith.constant 0 : index
    %34 = vector.load %arg2[%c4, %c0_24] : memref<9x4xf32, #tpu.memory_space<vmem>>, vector<1x4xf32>
    %35 = vector.shape_cast %34 : vector<1x4xf32> to vector<4xf32>
    %c1_25 = arith.constant 1 : index
    %c8_26 = arith.constant 8 : index
    %c0_27 = arith.constant 0 : index
    %36 = vector.load %arg6[%c1_25, %c8_26, %c0_27] : memref<18x32x4xf32, #tpu.memory_space<vmem>>, vector<16x16x4xf32>
    %37 = vector.shape_cast %35 : vector<4xf32> to vector<1x1x4xf32>
    %38 = vector.broadcast %37 : vector<1x1x4xf32> to vector<16x16x4xf32>
    %39 = arith.mulf %36, %38 : vector<16x16x4xf32>
    %40 = arith.addf %33, %39 : vector<16x16x4xf32>
    %c5 = arith.constant 5 : index
    %c0_28 = arith.constant 0 : index
    %41 = vector.load %arg2[%c5, %c0_28] : memref<9x4xf32, #tpu.memory_space<vmem>>, vector<1x4xf32>
    %42 = vector.shape_cast %41 : vector<1x4xf32> to vector<4xf32>
    %c1_29 = arith.constant 1 : index
    %c9_30 = arith.constant 9 : index
    %c0_31 = arith.constant 0 : index
    %43 = vector.load %arg6[%c1_29, %c9_30, %c0_31] : memref<18x32x4xf32, #tpu.memory_space<vmem>>, vector<16x16x4xf32>
    %44 = vector.shape_cast %42 : vector<4xf32> to vector<1x1x4xf32>
    %45 = vector.broadcast %44 : vector<1x1x4xf32> to vector<16x16x4xf32>
    %46 = arith.mulf %43, %45 : vector<16x16x4xf32>
    %47 = arith.addf %40, %46 : vector<16x16x4xf32>
    %c6 = arith.constant 6 : index
    %c0_32 = arith.constant 0 : index
    %48 = vector.load %arg2[%c6, %c0_32] : memref<9x4xf32, #tpu.memory_space<vmem>>, vector<1x4xf32>
    %49 = vector.shape_cast %48 : vector<1x4xf32> to vector<4xf32>
    %c2_33 = arith.constant 2 : index
    %c7_34 = arith.constant 7 : index
    %c0_35 = arith.constant 0 : index
    %50 = vector.load %arg6[%c2_33, %c7_34, %c0_35] : memref<18x32x4xf32, #tpu.memory_space<vmem>>, vector<16x16x4xf32>
    %51 = vector.shape_cast %49 : vector<4xf32> to vector<1x1x4xf32>
    %52 = vector.broadcast %51 : vector<1x1x4xf32> to vector<16x16x4xf32>
    %53 = arith.mulf %50, %52 : vector<16x16x4xf32>
    %54 = arith.addf %47, %53 : vector<16x16x4xf32>
    %c7_36 = arith.constant 7 : index
    %c0_37 = arith.constant 0 : index
    %55 = vector.load %arg2[%c7_36, %c0_37] : memref<9x4xf32, #tpu.memory_space<vmem>>, vector<1x4xf32>
    %56 = vector.shape_cast %55 : vector<1x4xf32> to vector<4xf32>
    %c2_38 = arith.constant 2 : index
    %c8_39 = arith.constant 8 : index
    %c0_40 = arith.constant 0 : index
    %57 = vector.load %arg6[%c2_38, %c8_39, %c0_40] : memref<18x32x4xf32, #tpu.memory_space<vmem>>, vector<16x16x4xf32>
    %58 = vector.shape_cast %56 : vector<4xf32> to vector<1x1x4xf32>
    %59 = vector.broadcast %58 : vector<1x1x4xf32> to vector<16x16x4xf32>
    %60 = arith.mulf %57, %59 : vector<16x16x4xf32>
    %61 = arith.addf %54, %60 : vector<16x16x4xf32>
    %c8_41 = arith.constant 8 : index
    %c0_42 = arith.constant 0 : index
    %62 = vector.load %arg2[%c8_41, %c0_42] : memref<9x4xf32, #tpu.memory_space<vmem>>, vector<1x4xf32>
    %63 = vector.shape_cast %62 : vector<1x4xf32> to vector<4xf32>
    %c2_43 = arith.constant 2 : index
    %c9_44 = arith.constant 9 : index
    %c0_45 = arith.constant 0 : index
    %64 = vector.load %arg6[%c2_43, %c9_44, %c0_45] : memref<18x32x4xf32, #tpu.memory_space<vmem>>, vector<16x16x4xf32>
    %65 = vector.shape_cast %63 : vector<4xf32> to vector<1x1x4xf32>
    %66 = vector.broadcast %65 : vector<1x1x4xf32> to vector<16x16x4xf32>
    %67 = arith.mulf %64, %66 : vector<16x16x4xf32>
    %68 = arith.addf %61, %67 : vector<16x16x4xf32>
    %c0_46 = arith.constant 0 : index
    %c0_47 = arith.constant 0 : index
    %c0_48 = arith.constant 0 : index
    %c0_49 = arith.constant 0 : index
    %69 = vector.load %arg3[%c0_46, %c0_47, %c0_48, %c0_49] : memref<1x16x16x4xf32, #tpu.memory_space<vmem>>, vector<1x16x16x4xf32>
    %70 = vector.shape_cast %69 : vector<1x16x16x4xf32> to vector<16x16x4xf32>
    %71 = vector.shape_cast %68 : vector<16x16x4xf32> to vector<1x16x16x4xf32>
    tpu.vector_store %arg3[%c0_46, %c0_47, %c0_48, %c0_49], %71 {strides = array<i32>} : memref<1x16x16x4xf32, #tpu.memory_space<vmem>>, vector<1x16x16x4xf32>,
    %cst_50 = arith.constant dense<0.000000e+00> : vector<4xf32>
    %72 = vector.multi_reduction <add>, %68, %cst_50 [0, 1] : vector<16x16x4xf32> to vector<4xf32>
    %73 = vector.shape_cast %72 : vector<4xf32> to vector<1x1x4xf32>
    %c0_51 = arith.constant 0 : index
    %c0_52 = arith.constant 0 : index
    %c0_53 = arith.constant 0 : index
    %74 = vector.load %arg4[%c0_51, %c0_52, %c0_53] : memref<1x1x4xf32, #tpu.memory_space<vmem>>, vector<1x1x4xf32>
    tpu.vector_store %arg4[%c0_51, %c0_52, %c0_53], %73 {strides = array<i32>} : memref<1x1x4xf32, #tpu.memory_space<vmem>>, vector<1x1x4xf32>,
    %75 = arith.mulf %68, %68 : vector<16x16x4xf32>
    %cst_54 = arith.constant dense<0.000000e+00> : vector<4xf32>
    %76 = vector.multi_reduction <add>, %75, %cst_54 [0, 1] : vector<16x16x4xf32> to vector<4xf32>
    %77 = vector.shape_cast %76 : vector<4xf32> to vector<1x1x4xf32>
    %c0_55 = arith.constant 0 : index
    %c0_56 = arith.constant 0 : index
    %c0_57 = arith.constant 0 : index
    %78 = vector.load %arg5[%c0_55, %c0_56, %c0_57] : memref<1x1x4xf32, #tpu.memory_space<vmem>>, vector<1x1x4xf32>
    tpu.vector_store %arg5[%c0_55, %c0_56, %c0_57], %77 {strides = array<i32>} : memref<1x1x4xf32, #tpu.memory_space<vmem>>, vector<1x1x4xf32>,
    return
  }
  func.func @transform_0(%arg0: i32) -> (i32, i32, i32, i32) {
    %c0_i32 = arith.constant 0 : i32
    %c0_i32_0 = arith.constant 0 : i32
    %c0_i32_1 = arith.constant 0 : i32
    %c0_i32_2 = arith.constant 0 : i32
    return %arg0, %c0_i32, %c0_i32_0, %c0_i32_1 : i32, i32, i32, i32
  }
  func.func @transform_1(%arg0: i32) -> (i32, i32) {
    %c0_i32 = arith.constant 0 : i32
    %c0_i32_0 = arith.constant 0 : i32
    %c0_i32_1 = arith.constant 0 : i32
    return %c0_i32, %c0_i32_0 : i32, i32
  }
  func.func @transform_2(%arg0: i32) -> (i32, i32, i32, i32) {
    %c0_i32 = arith.constant 0 : i32
    %c0_i32_0 = arith.constant 0 : i32
    %c0_i32_1 = arith.constant 0 : i32
    %c0_i32_2 = arith.constant 0 : i32
    return %arg0, %c0_i32, %c0_i32_0, %c0_i32_1 : i32, i32, i32, i32
  }
  func.func @transform_3(%arg0: i32) -> (i32, i32, i32) {
    %c0_i32 = arith.constant 0 : i32
    %c0_i32_0 = arith.constant 0 : i32
    %c0_i32_1 = arith.constant 0 : i32
    return %arg0, %c0_i32, %c0_i32_0 : i32, i32, i32
  }
  func.func @transform_4(%arg0: i32) -> (i32, i32, i32) {
    %c0_i32 = arith.constant 0 : i32
    %c0_i32_0 = arith.constant 0 : i32
    %c0_i32_1 = arith.constant 0 : i32
    return %arg0, %c0_i32, %c0_i32_0 : i32, i32, i32
  }
}

module attributes {stable_mosaic.version = 11 : i64} {
  func.func @_bn_relu_apply_kernel(%arg0: i32, %arg1: memref<512x8xf32, #tpu.memory_space<vmem>>, %arg2: memref<1x8xf32, #tpu.memory_space<vmem>>, %arg3: memref<1x8xf32, #tpu.memory_space<vmem>>, %arg4: memref<512x8xf32, #tpu.memory_space<vmem>>) attributes {dimension_semantics = [#tpu.dimension_semantics<parallel>], iteration_bounds = array<i64: 1>, scalar_prefetch = 0 : i64, scratch_operands = 0 : i64, tpu.core_type = #tpu.core_type<tc>, window_params = [{transform_indices = @transform_0, window_bounds = array<i64: 512, 8>}, {pipeline_mode = #tpu.pipeline_mode<synchronous>, transform_indices = @transform_1, window_bounds = array<i64: 1, 8>}, {pipeline_mode = #tpu.pipeline_mode<synchronous>, transform_indices = @transform_2, window_bounds = array<i64: 1, 8>}, {transform_indices = @transform_3, window_bounds = array<i64: 512, 8>}]} {
    %c0 = arith.constant 0 : index
    %c0_0 = arith.constant 0 : index
    %0 = vector.load %arg1[%c0, %c0_0] : memref<512x8xf32, #tpu.memory_space<vmem>>, vector<512x8xf32>
    %c0_1 = arith.constant 0 : index
    %c0_2 = arith.constant 0 : index
    %1 = vector.load %arg2[%c0_1, %c0_2] : memref<1x8xf32, #tpu.memory_space<vmem>>, vector<1x8xf32>
    %2 = vector.shape_cast %1 : vector<1x8xf32> to vector<8xf32>
    %3 = vector.shape_cast %2 : vector<8xf32> to vector<1x8xf32>
    %4 = vector.broadcast %3 : vector<1x8xf32> to vector<512x8xf32>
    %5 = arith.mulf %0, %4 : vector<512x8xf32>
    %c0_3 = arith.constant 0 : index
    %c0_4 = arith.constant 0 : index
    %6 = vector.load %arg3[%c0_3, %c0_4] : memref<1x8xf32, #tpu.memory_space<vmem>>, vector<1x8xf32>
    %7 = vector.shape_cast %6 : vector<1x8xf32> to vector<8xf32>
    %8 = vector.shape_cast %7 : vector<8xf32> to vector<1x8xf32>
    %9 = vector.broadcast %8 : vector<1x8xf32> to vector<512x8xf32>
    %10 = arith.addf %5, %9 : vector<512x8xf32>
    %cst = arith.constant 0.000000e+00 : f32
    %11 = vector.broadcast %cst : f32 to vector<512x8xf32>
    %12 = arith.maximumf %10, %11 : vector<512x8xf32>
    %c0_5 = arith.constant 0 : index
    %c0_6 = arith.constant 0 : index
    %13 = vector.load %arg4[%c0_5, %c0_6] : memref<512x8xf32, #tpu.memory_space<vmem>>, vector<512x8xf32>
    tpu.vector_store %arg4[%c0_5, %c0_6], %12 {strides = array<i32>} : memref<512x8xf32, #tpu.memory_space<vmem>>, vector<512x8xf32>,
    return
  }
  func.func @transform_0(%arg0: i32) -> (i32, i32) {
    %c0_i32 = arith.constant 0 : i32
    %c0_i32_0 = arith.constant 0 : i32
    return %arg0, %c0_i32 : i32, i32
  }
  func.func @transform_1(%arg0: i32) -> (i32, i32) {
    %c0_i32 = arith.constant 0 : i32
    %c0_i32_0 = arith.constant 0 : i32
    %c0_i32_1 = arith.constant 0 : i32
    return %c0_i32, %c0_i32_0 : i32, i32
  }
  func.func @transform_2(%arg0: i32) -> (i32, i32) {
    %c0_i32 = arith.constant 0 : i32
    %c0_i32_0 = arith.constant 0 : i32
    %c0_i32_1 = arith.constant 0 : i32
    return %c0_i32, %c0_i32_0 : i32, i32
  }
  func.func @transform_3(%arg0: i32) -> (i32, i32) {
    %c0_i32 = arith.constant 0 : i32
    %c0_i32_0 = arith.constant 0 : i32
    return %arg0, %c0_i32 : i32, i32
  }
}

module attributes {stable_mosaic.version = 11 : i64} {
  func.func @_pw_bn1_bn2stats_kernel(%arg0: i32, %arg1: memref<512x4xf32, #tpu.memory_space<vmem>>, %arg2: memref<1x4xf32, #tpu.memory_space<vmem>>, %arg3: memref<1x4xf32, #tpu.memory_space<vmem>>, %arg4: memref<4x8xf32, #tpu.memory_space<vmem>>, %arg5: memref<512x8xf32, #tpu.memory_space<vmem>>, %arg6: memref<1x1x8xf32, #tpu.memory_space<vmem>>, %arg7: memref<1x1x8xf32, #tpu.memory_space<vmem>>) attributes {dimension_semantics = [#tpu.dimension_semantics<parallel>], iteration_bounds = array<i64: 1>, scalar_prefetch = 0 : i64, scratch_operands = 0 : i64, tpu.core_type = #tpu.core_type<tc>, window_params = [{transform_indices = @transform_0, window_bounds = array<i64: 512, 4>}, {pipeline_mode = #tpu.pipeline_mode<synchronous>, transform_indices = @transform_1, window_bounds = array<i64: 1, 4>}, {pipeline_mode = #tpu.pipeline_mode<synchronous>, transform_indices = @transform_2, window_bounds = array<i64: 1, 4>}, {pipeline_mode = #tpu.pipeline_mode<synchronous>, transform_indices = @transform_3, window_bounds = array<i64: 4, 8>}, {transform_indices = @transform_4, window_bounds = array<i64: 512, 8>}, {transform_indices = @transform_5, window_bounds = array<i64: 1, 1, 8>}, {transform_indices = @transform_6, window_bounds = array<i64: 1, 1, 8>}]} {
    %c0 = arith.constant 0 : index
    %c0_0 = arith.constant 0 : index
    %0 = vector.load %arg1[%c0, %c0_0] : memref<512x4xf32, #tpu.memory_space<vmem>>, vector<512x4xf32>
    %c0_1 = arith.constant 0 : index
    %c0_2 = arith.constant 0 : index
    %1 = vector.load %arg2[%c0_1, %c0_2] : memref<1x4xf32, #tpu.memory_space<vmem>>, vector<1x4xf32>
    %2 = vector.shape_cast %1 : vector<1x4xf32> to vector<4xf32>
    %3 = vector.shape_cast %2 : vector<4xf32> to vector<1x4xf32>
    %4 = vector.broadcast %3 : vector<1x4xf32> to vector<512x4xf32>
    %5 = arith.mulf %0, %4 : vector<512x4xf32>
    %c0_3 = arith.constant 0 : index
    %c0_4 = arith.constant 0 : index
    %6 = vector.load %arg3[%c0_3, %c0_4] : memref<1x4xf32, #tpu.memory_space<vmem>>, vector<1x4xf32>
    %7 = vector.shape_cast %6 : vector<1x4xf32> to vector<4xf32>
    %8 = vector.shape_cast %7 : vector<4xf32> to vector<1x4xf32>
    %9 = vector.broadcast %8 : vector<1x4xf32> to vector<512x4xf32>
    %10 = arith.addf %5, %9 : vector<512x4xf32>
    %cst = arith.constant 0.000000e+00 : f32
    %11 = vector.broadcast %cst : f32 to vector<512x4xf32>
    %12 = arith.maximumf %10, %11 : vector<512x4xf32>
    %c0_5 = arith.constant 0 : index
    %c0_6 = arith.constant 0 : index
    %13 = vector.load %arg4[%c0_5, %c0_6] : memref<4x8xf32, #tpu.memory_space<vmem>>, vector<4x8xf32>
    %cst_7 = arith.constant dense<0.000000e+00> : vector<512x8xf32>
    %14 = tpu.matmul %12, %13, %cst_7 {dimension_numbers = #tpu.dot_dimension_numbers<[1], [0], [0], [1], [0, 0, 1, 1], [], []>} : vector<512x4xf32>, vector<4x8xf32>, vector<512x8xf32> -> vector<512x8xf32>
    %c0_8 = arith.constant 0 : index
    %c0_9 = arith.constant 0 : index
    %15 = vector.load %arg5[%c0_8, %c0_9] : memref<512x8xf32, #tpu.memory_space<vmem>>, vector<512x8xf32>
    tpu.vector_store %arg5[%c0_8, %c0_9], %14 {strides = array<i32>} : memref<512x8xf32, #tpu.memory_space<vmem>>, vector<512x8xf32>,
    %cst_10 = arith.constant dense<0.000000e+00> : vector<8xf32>
    %16 = vector.multi_reduction <add>, %14, %cst_10 [0] : vector<512x8xf32> to vector<8xf32>
    %17 = vector.shape_cast %16 : vector<8xf32> to vector<1x1x8xf32>
    %c0_11 = arith.constant 0 : index
    %c0_12 = arith.constant 0 : index
    %c0_13 = arith.constant 0 : index
    %18 = vector.load %arg6[%c0_11, %c0_12, %c0_13] : memref<1x1x8xf32, #tpu.memory_space<vmem>>, vector<1x1x8xf32>
    tpu.vector_store %arg6[%c0_11, %c0_12, %c0_13], %17 {strides = array<i32>} : memref<1x1x8xf32, #tpu.memory_space<vmem>>, vector<1x1x8xf32>,
    %19 = arith.mulf %14, %14 : vector<512x8xf32>
    %cst_14 = arith.constant dense<0.000000e+00> : vector<8xf32>
    %20 = vector.multi_reduction <add>, %19, %cst_14 [0] : vector<512x8xf32> to vector<8xf32>
    %21 = vector.shape_cast %20 : vector<8xf32> to vector<1x1x8xf32>
    %c0_15 = arith.constant 0 : index
    %c0_16 = arith.constant 0 : index
    %c0_17 = arith.constant 0 : index
    %22 = vector.load %arg7[%c0_15, %c0_16, %c0_17] : memref<1x1x8xf32, #tpu.memory_space<vmem>>, vector<1x1x8xf32>
    tpu.vector_store %arg7[%c0_15, %c0_16, %c0_17], %21 {strides = array<i32>} : memref<1x1x8xf32, #tpu.memory_space<vmem>>, vector<1x1x8xf32>,
    return
  }
  func.func @transform_0(%arg0: i32) -> (i32, i32) {
    %c0_i32 = arith.constant 0 : i32
    %c0_i32_0 = arith.constant 0 : i32
    return %arg0, %c0_i32 : i32, i32
  }
  func.func @transform_1(%arg0: i32) -> (i32, i32) {
    %c0_i32 = arith.constant 0 : i32
    %c0_i32_0 = arith.constant 0 : i32
    %c0_i32_1 = arith.constant 0 : i32
    return %c0_i32, %c0_i32_0 : i32, i32
  }
  func.func @transform_2(%arg0: i32) -> (i32, i32) {
    %c0_i32 = arith.constant 0 : i32
    %c0_i32_0 = arith.constant 0 : i32
    %c0_i32_1 = arith.constant 0 : i32
    return %c0_i32, %c0_i32_0 : i32, i32
  }
  func.func @transform_3(%arg0: i32) -> (i32, i32) {
    %c0_i32 = arith.constant 0 : i32
    %c0_i32_0 = arith.constant 0 : i32
    %c0_i32_1 = arith.constant 0 : i32
    return %c0_i32, %c0_i32_0 : i32, i32
  }
  func.func @transform_4(%arg0: i32) -> (i32, i32) {
    %c0_i32 = arith.constant 0 : i32
    %c0_i32_0 = arith.constant 0 : i32
    return %arg0, %c0_i32 : i32, i32
  }
  func.func @transform_5(%arg0: i32) -> (i32, i32, i32) {
    %c0_i32 = arith.constant 0 : i32
    %c0_i32_0 = arith.constant 0 : i32
    %c0_i32_1 = arith.constant 0 : i32
    return %arg0, %c0_i32, %c0_i32_0 : i32, i32, i32
  }
  func.func @transform_6(%arg0: i32) -> (i32, i32, i32) {
    %c0_i32 = arith.constant 0 : i32
    %c0_i32_0 = arith.constant 0 : i32
    %c0_i32_1 = arith.constant 0 : i32
    return %arg0, %c0_i32, %c0_i32_0 : i32, i32, i32
  }
}

</mosaic_0001>

<bundles_post_ra>
// kernel: ds_conv_forward.5
= control target key start
LH: loop header
LB: loop body
LE: loop exit
PB: predicated region body
PF: predicated region fallthrough
CT: control target
= control target key end

     0   :  { %vm284_vm0 = vcmask 64512   ;;  %s961_s0 = inlined_call_operand.vmem [shape: f32[512,8], index: 0, kind: input, shape index: {}]   ;;  %s962_s1 = inlined_call_operand.vmem [shape: f32[1,8], index: 1, kind: input, shape index: {}]   ;;  %s963_s2 = inlined_call_operand.vmem [shape: f32[1,8], index: 2, kind: input, shape index: {}]   ;;  %s964_s3 = inlined_call_operand.vmem [shape: f32[512,8], index: 3, kind: output, shape index: {}]  }
   0x1   :  { %v14_v0 = vld [vmem:[%s961_s0] sm:$0xff]  ;;  %v15_v4 = vld [vmem:[%s961_s0 + $0x8] sm:$0xff]  ;;  %v16_v5 = vld [vmem:[%s961_s0 + $0x10] sm:$0xff] }
   0x2   :  { %v381_v1 = vld [vmem:[%s962_s1] ss:$0 sm:$0xff]  ;;  %v17_v6 = vld [vmem:[%s961_s0 + $0x18] sm:$0xff]  ;;  %v19_v11 = vld [vmem:[%s961_s0 + $0x28] sm:$0xff] }
   0x3   :  { %v386_v2 = vld [vmem:[%s963_s2] ss:$0 sm:$0xff]  ;;  %v85_v3 = vmul.f32 %v381_v1, %v14_v0  ;;  %v86_v7 = vmul.f32 %v381_v1, %v15_v4  ;;  %v87_v8 = vmul.f32 %v381_v1, %v16_v5  ;;  %v88_v9 = vmul.f32 %v381_v1, %v17_v6  ;;  %v20_v12 = vld [vmem:[%s961_s0 + $0x30] sm:$0xff]  ;;  %v21_v17 = vld [vmem:[%s961_s0 + $0x38] sm:$0xff] }
   0x4   :  { %v18_v10 = vld [vmem:[%s961_s0 + $0x20] sm:$0xff]  ;;  %v90_v15 = vmul.f32 %v381_v1, %v19_v11  ;;  %v91_v16 = vmul.f32 %v381_v1, %v20_v12  ;;  %v92_v21 = vmul.f32 %v381_v1, %v21_v17  ;;  %v23_v27 = vld [vmem:[%s961_s0 + $0x48] sm:$0xff]  ;;  %v24_v28 = vld [vmem:[%s961_s0 + $0x50] sm:$0xff] }
   0x5   :  { %v156_v13 = vadd.f32 %v386_v2, %v85_v3  ;;  %v89_v14 = vmul.f32 %v381_v1, %v18_v10  ;;  %v157_v18 = vadd.f32 %v386_v2, %v86_v7  ;;  %v158_v19 = vadd.f32 %v386_v2, %v87_v8  ;;  %v22_v22 = vld [vmem:[%s961_s0 + $0x40] sm:$0xff]  ;;  %v25_v29 = vld [vmem:[%s961_s0 + $0x58] sm:$0xff]  ;;  %v27_v35 = vld [vmem:[%s961_s0 + $0x68] sm:$0xff] }
   0x6   :  { %v159_v20 = vadd.f32 %v386_v2, %v88_v9  ;;  %v161_v25 = vadd.f32 %v386_v2, %v90_v15  ;;  %v162_v26 = vadd.f32 %v386_v2, %v91_v16  ;;  %v163_v33 = vadd.f32 %v386_v2, %v92_v21  ;;  %v26_v34 = vld [vmem:[%s961_s0 + $0x60] sm:$0xff]  ;;  %v28_v36 = vld [vmem:[%s961_s0 + $0x70] sm:$0xff]  ;;  %v29_v41 = vld [vmem:[%s961_s0 + $0x78] sm:$0xff] }
   0x7   :  { %v220_v23 = vmax.f32 %v156_v13, 0.0  ;;  %v160_v24 = vadd.f32 %v386_v2, %v89_v14  ;;  %v221_v30 = vmax.f32 %v157_v18, 0.0  ;;  %v222_v31 = vmax.f32 %v158_v19, 0.0  ;;  %v30_v54 = vld [vmem:[%s961_s0 + $0x80] sm:$0xff]  ;;  %v31_v59 = vld [vmem:[%s961_s0 + $0x88] sm:$0xff]  ;;  %v32_v60 = vld [vmem:[%s961_s0 + $0x90] sm:$0xff] }
   0x8   :  { %v223_v32 = vmax.f32 %v159_v20, 0.0  ;;  %v225_v38 = vmax.f32 %v161_v25, 0.0  ;;  %v226_v39 = vmax.f32 %v162_v26, 0.0  ;;  %v93_v40 = vmul.f32 %v381_v1, %v22_v22  ;;  %v33_v61 = vld [vmem:[%s961_s0 + $0x98] sm:$0xff]  ;;  %v34_v4 = vld [vmem:[%s961_s0 + $0xa0] sm:$0xff]  ;;  %v35_v5 = vld [vmem:[%s961_s0 + $0xa8] sm:$0xff] }
   0x9   :  { %285 = vst.msk [vmem:[%s964_s3] sm:$0xff] %vm284_vm0, %v220_v23  ;;  %v224_v37 = vmax.f32 %v160_v24, 0.0  ;;  %286 = vst.msk [vmem:[%s964_s3 + $0x8] sm:$0xff] %vm284_vm0, %v221_v30  ;;  %v227_v42 = vmax.f32 %v163_v33, 0.0  ;;  %v94_v43 = vmul.f32 %v381_v1, %v23_v27  ;;  %v95_v44 = vmul.f32 %v381_v1, %v24_v28  ;;  %v36_v6 = vld [vmem:[%s961_s0 + $0xb0] sm:$0xff]  ;;  %v37_v11 = vld [vmem:[%s961_s0 + $0xb8] sm:$0xff] }
   0xa   :  { %287 = vst.msk [vmem:[%s964_s3 + $0x10] sm:$0xff] %vm284_vm0, %v222_v31  ;;  %288 = vst.msk [vmem:[%s964_s3 + $0x18] sm:$0xff] %vm284_vm0, %v223_v32  ;;  %v96_v45 = vmul.f32 %v381_v1, %v25_v29  ;;  %v164_v46 = vadd.f32 %v386_v2, %v93_v40  ;;  %v97_v47 = vmul.f32 %v381_v1, %v26_v34  ;;  %v38_v24 = vld [vmem:[%s961_s0 + $0xc0] sm:$0xff]  ;;  %v39_v29 = vld [vmem:[%s961_s0 + $0xc8] sm:$0xff] }
   0xb   :  { %289 = vst.msk [vmem:[%s964_s3 + $0x20] sm:$0xff] %vm284_vm0, %v224_v37  ;;  %290 = vst.msk [vmem:[%s964_s3 + $0x28] sm:$0xff] %vm284_vm0, %v225_v38  ;;  %v98_v48 = vmul.f32 %v381_v1, %v27_v35  ;;  %v99_v49 = vmul.f32 %v381_v1, %v28_v36  ;;  %v165_v50 = vadd.f32 %v386_v2, %v94_v43  ;;  %v40_v30 = vld [vmem:[%s961_s0 + $0xd0] sm:$0xff]  ;;  %v41_v31 = vld [vmem:[%s961_s0 + $0xd8] sm:$0xff] }
   0xc   :  { %291 = vst.msk [vmem:[%s964_s3 + $0x30] sm:$0xff] %vm284_vm0, %v226_v39  ;;  %292 = vst.msk [vmem:[%s964_s3 + $0x38] sm:$0xff] %vm284_vm0, %v227_v42  ;;  %v166_v51 = vadd.f32 %v386_v2, %v95_v44  ;;  %v167_v52 = vadd.f32 %v386_v2, %v96_v45  ;;  %v100_v53 = vmul.f32 %v381_v1, %v29_v41  ;;  %v228_v55 = vmax.f32 %v164_v46, 0.0  ;;  %v42_v36 = vld [vmem:[%s961_s0 + $0xe0] sm:$0xff]  ;;  %v43_v37 = vld [vmem:[%s961_s0 + $0xe8] sm:$0xff] }
   0xd   :  { %v168_v56 = vadd.f32 %v386_v2, %v97_v47  ;;  %v169_v57 = vadd.f32 %v386_v2, %v98_v48  ;;  %v170_v58 = vadd.f32 %v386_v2, %v99_v49  ;;  %v229_v62 = vmax.f32 %v165_v50, 0.0  ;;  %v44_v38 = vld [vmem:[%s961_s0 + $0xf0] sm:$0xff]  ;;  %v45_v43 = vld [vmem:[%s961_s0 + $0xf8] sm:$0xff] }
   0xe   :  { %v230_v63 = vmax.f32 %v166_v51, 0.0  ;;  %v231_v0 = vmax.f32 %v167_v52, 0.0  ;;  %v171_v3 = vadd.f32 %v386_v2, %v100_v53  ;;  %293 = vst.msk [vmem:[%s964_s3 + $0x40] sm:$0xff] %vm284_vm0, %v228_v55  ;;  %v101_v10 = vmul.f32 %v381_v1, %v30_v54 }
   0xf   :  { %v232_v7 = vmax.f32 %v168_v56, 0.0  ;;  %v233_v8 = vmax.f32 %v169_v57, 0.0  ;;  %v234_v9 = vmax.f32 %v170_v58, 0.0  ;;  %294 = vst.msk [vmem:[%s964_s3 + $0x48] sm:$0xff] %vm284_vm0, %v229_v62  ;;  %v102_v13 = vmul.f32 %v381_v1, %v31_v59  ;;  %v46_v56 = vld [vmem:[%s961_s0 + $0x100] sm:$0xff]  ;;  %v48_v62 = vld [vmem:[%s961_s0 + $0x110] sm:$0xff] }
  0x10   :  { %295 = vst.msk [vmem:[%s964_s3 + $0x50] sm:$0xff] %vm284_vm0, %v230_v63  ;;  %296 = vst.msk [vmem:[%s964_s3 + $0x58] sm:$0xff] %vm284_vm0, %v231_v0  ;;  %v235_v12 = vmax.f32 %v171_v3, 0.0  ;;  %v103_v14 = vmul.f32 %v381_v1, %v32_v60  ;;  %v104_v15 = vmul.f32 %v381_v1, %v33_v61  ;;  %v172_v16 = vadd.f32 %v386_v2, %v101_v10  ;;  %v47_v61 = vld [vmem:[%s961_s0 + $0x108] sm:$0xff]  ;;  %v49_v63 = vld [vmem:[%s961_s0 + $0x118] sm:$0xff] }
  0x11   :  { %297 = vst.msk [vmem:[%s964_s3 + $0x60] sm:$0xff] %vm284_vm0, %v232_v7  ;;  %298 = vst.msk [vmem:[%s964_s3 + $0x68] sm:$0xff] %vm284_vm0, %v233_v8  ;;  %v105_v17 = vmul.f32 %v381_v1, %v34_v4  ;;  %v106_v18 = vmul.f32 %v381_v1, %v35_v5  ;;  %v107_v19 = vmul.f32 %v381_v1, %v36_v6  ;;  %v50_v6 = vld [vmem:[%s961_s0 + $0x120] sm:$0xff]  ;;  %v51_v7 = vld [vmem:[%s961_s0 + $0x128] sm:$0xff] }
  0x12   :  { %299 = vst.msk [vmem:[%s964_s3 + $0x70] sm:$0xff] %vm284_vm0, %v234_v9  ;;  %300 = vst.msk [vmem:[%s964_s3 + $0x78] sm:$0xff] %vm284_vm0, %v235_v12  ;;  %v173_v20 = vadd.f32 %v386_v2, %v102_v13  ;;  %v174_v21 = vadd.f32 %v386_v2, %v103_v14  ;;  %v175_v22 = vadd.f32 %v386_v2, %v104_v15  ;;  %v236_v25 = vmax.f32 %v172_v16, 0.0  ;;  %v52_v8 = vld [vmem:[%s961_s0 + $0x130] sm:$0xff]  ;;  %v53_v13 = vld [vmem:[%s961_s0 + $0x138] sm:$0xff] }
  0x13   :  { %v108_v23 = vmul.f32 %v381_v1, %v37_v11  ;;  %v176_v26 = vadd.f32 %v386_v2, %v105_v17  ;;  %v177_v27 = vadd.f32 %v386_v2, %v106_v18  ;;  %v178_v28 = vadd.f32 %v386_v2, %v107_v19 }
  0x14   :  { %v237_v32 = vmax.f32 %v173_v20, 0.0  ;;  %v238_v33 = vmax.f32 %v174_v21, 0.0  ;;  %v239_v34 = vmax.f32 %v175_v22, 0.0  ;;  %301 = vst.msk [vmem:[%s964_s3 + $0x80] sm:$0xff] %vm284_vm0, %v236_v25  ;;  %v109_v42 = vmul.f32 %v381_v1, %v38_v24 }
  0x15   :  { %v179_v35 = vadd.f32 %v386_v2, %v108_v23  ;;  %v240_v39 = vmax.f32 %v176_v26, 0.0  ;;  %v241_v40 = vmax.f32 %v177_v27, 0.0  ;;  %v242_v41 = vmax.f32 %v178_v28, 0.0  ;;  %v54_v26 = vld [vmem:[%s961_s0 + $0x140] sm:$0xff] }
  0x16   :  { %302 = vst.msk [vmem:[%s964_s3 + $0x88] sm:$0xff] %vm284_vm0, %v237_v32  ;;  %303 = vst.msk [vmem:[%s964_s3 + $0x90] sm:$0xff] %vm284_vm0, %v238_v33  ;;  %v110_v45 = vmul.f32 %v381_v1, %v39_v29  ;;  %v111_v46 = vmul.f32 %v381_v1, %v40_v30  ;;  %v112_v47 = vmul.f32 %v381_v1, %v41_v31  ;;  %v55_v31 = vld [vmem:[%s961_s0 + $0x148] sm:$0xff]  ;;  %v56_v32 = vld [vmem:[%s961_s0 + $0x150] sm:$0xff] }
  0x17   :  { %304 = vst.msk [vmem:[%s964_s3 + $0x98] sm:$0xff] %vm284_vm0, %v239_v34  ;;  %v243_v44 = vmax.f32 %v179_v35, 0.0  ;;  %305 = vst.msk [vmem:[%s964_s3 + $0xa0] sm:$0xff] %vm284_vm0, %v240_v39  ;;  %v180_v48 = vadd.f32 %v386_v2, %v109_v42  ;;  %v113_v49 = vmul.f32 %v381_v1, %v42_v36  ;;  %v114_v50 = vmul.f32 %v381_v1, %v43_v37  ;;  %v57_v33 = vld [vmem:[%s961_s0 + $0x158] sm:$0xff]  ;;  %v59_v39 = vld [vmem:[%s961_s0 + $0x168] sm:$0xff] }
  0x18   :  { %306 = vst.msk [vmem:[%s964_s3 + $0xa8] sm:$0xff] %vm284_vm0, %v241_v40  ;;  %307 = vst.msk [vmem:[%s964_s3 + $0xb0] sm:$0xff] %vm284_vm0, %v242_v41  ;;  %v115_v51 = vmul.f32 %v381_v1, %v44_v38  ;;  %v181_v52 = vadd.f32 %v386_v2, %v110_v45  ;;  %v182_v53 = vadd.f32 %v386_v2, %v111_v46  ;;  %v58_v38 = vld [vmem:[%s961_s0 + $0x160] sm:$0xff]  ;;  %v60_v40 = vld [vmem:[%s961_s0 + $0x170] sm:$0xff] }
  0x19   :  { %308 = vst.msk [vmem:[%s964_s3 + $0xb8] sm:$0xff] %vm284_vm0, %v243_v44  ;;  %v183_v54 = vadd.f32 %v386_v2, %v112_v47  ;;  %v116_v55 = vmul.f32 %v381_v1, %v45_v43  ;;  %v244_v57 = vmax.f32 %v180_v48, 0.0  ;;  %v184_v58 = vadd.f32 %v386_v2, %v113_v49  ;;  %v61_v45 = vld [vmem:[%s961_s0 + $0x178] sm:$0xff] }
  0x1a   :  { %v185_v59 = vadd.f32 %v386_v2, %v114_v50  ;;  %v186_v60 = vadd.f32 %v386_v2, %v115_v51  ;;  %v245_v0 = vmax.f32 %v181_v52, 0.0  ;;  %v246_v3 = vmax.f32 %v182_v53, 0.0 }
  0x1b   :  { %v247_v4 = vmax.f32 %v183_v54, 0.0  ;;  %v187_v5 = vadd.f32 %v386_v2, %v116_v55  ;;  %309 = vst.msk [vmem:[%s964_s3 + $0xc0] sm:$0xff] %vm284_vm0, %v244_v57  ;;  %v248_v9 = vmax.f32 %v184_v58, 0.0  ;;  %v117_v12 = vmul.f32 %v381_v1, %v46_v56  ;;  %v62_v58 = vld [vmem:[%s961_s0 + $0x180] sm:$0xff] }
  0x1c   :  { %v249_v10 = vmax.f32 %v185_v59, 0.0  ;;  %v250_v11 = vmax.f32 %v186_v60, 0.0  ;;  %310 = vst.msk [vmem:[%s964_s3 + $0xc8] sm:$0xff] %vm284_vm0, %v245_v0  ;;  %311 = vst.msk [vmem:[%s964_s3 + $0xd0] sm:$0xff] %vm284_vm0, %v246_v3  ;;  %v118_v15 = vmul.f32 %v381_v1, %v47_v61  ;;  %v119_v16 = vmul.f32 %v381_v1, %v48_v62  ;;  %v64_v0 = vld [vmem:[%s961_s0 + $0x190] sm:$0xff]  ;;  %v65_v3 = vld [vmem:[%s961_s0 + $0x198] sm:$0xff] }
  0x1d   :  { %312 = vst.msk [vmem:[%s964_s3 + $0xd8] sm:$0xff] %vm284_vm0, %v247_v4  ;;  %v251_v14 = vmax.f32 %v187_v5, 0.0  ;;  %v120_v17 = vmul.f32 %v381_v1, %v49_v63  ;;  %313 = vst.msk [vmem:[%s964_s3 + $0xe0] sm:$0xff] %vm284_vm0, %v248_v9  ;;  %v188_v18 = vadd.f32 %v386_v2, %v117_v12  ;;  %v121_v19 = vmul.f32 %v381_v1, %v50_v6  ;;  %v63_v63 = vld [vmem:[%s961_s0 + $0x188] sm:$0xff] }
  0x1e   :  { %314 = vst.msk [vmem:[%s964_s3 + $0xe8] sm:$0xff] %vm284_vm0, %v249_v10  ;;  %315 = vst.msk [vmem:[%s964_s3 + $0xf0] sm:$0xff] %vm284_vm0, %v250_v11  ;;  %v122_v20 = vmul.f32 %v381_v1, %v51_v7  ;;  %v123_v21 = vmul.f32 %v381_v1, %v52_v8  ;;  %v189_v22 = vadd.f32 %v386_v2, %v118_v15  ;;  %v66_v8 = vld [vmem:[%s961_s0 + $0x1a0] sm:$0xff]  ;;  %v67_v9 = vld [vmem:[%s961_s0 + $0x1a8] sm:$0xff] }
  0x1f   :  { %316 = vst.msk [vmem:[%s964_s3 + $0xf8] sm:$0xff] %vm284_vm0, %v251_v14  ;;  %v190_v23 = vadd.f32 %v386_v2, %v119_v16  ;;  %v191_v24 = vadd.f32 %v386_v2, %v120_v17  ;;  %v124_v25 = vmul.f32 %v381_v1, %v53_v13  ;;  %v252_v27 = vmax.f32 %v188_v18, 0.0  ;;  %v68_v10 = vld [vmem:[%s961_s0 + $0x1b0] sm:$0xff]  ;;  %v69_v15 = vld [vmem:[%s961_s0 + $0x1b8] sm:$0xff] }
  0x20   :  { %v192_v28 = vadd.f32 %v386_v2, %v121_v19  ;;  %v193_v29 = vadd.f32 %v386_v2, %v122_v20  ;;  %v194_v30 = vadd.f32 %v386_v2, %v123_v21  ;;  %v253_v34 = vmax.f32 %v189_v22, 0.0 }
  0x21   :  { %v254_v35 = vmax.f32 %v190_v23, 0.0  ;;  %v255_v36 = vmax.f32 %v191_v24, 0.0  ;;  %v195_v37 = vadd.f32 %v386_v2, %v124_v25  ;;  %317 = vst.msk [vmem:[%s964_s3 + $0x100] sm:$0xff] %vm284_vm0, %v252_v27  ;;  %v125_v44 = vmul.f32 %v381_v1, %v54_v26 }
  0x22   :  { %v256_v41 = vmax.f32 %v192_v28, 0.0  ;;  %v257_v42 = vmax.f32 %v193_v29, 0.0  ;;  %v258_v43 = vmax.f32 %v194_v30, 0.0  ;;  %318 = vst.msk [vmem:[%s964_s3 + $0x108] sm:$0xff] %vm284_vm0, %v253_v34  ;;  %v126_v47 = vmul.f32 %v381_v1, %v55_v31  ;;  %v70_v28 = vld [vmem:[%s961_s0 + $0x1c0] sm:$0xff]  ;;  %v72_v34 = vld [vmem:[%s961_s0 + $0x1d0] sm:$0xff] }
  0x23   :  { %319 = vst.msk [vmem:[%s964_s3 + $0x110] sm:$0xff] %vm284_vm0, %v254_v35  ;;  %320 = vst.msk [vmem:[%s964_s3 + $0x118] sm:$0xff] %vm284_vm0, %v255_v36  ;;  %v259_v46 = vmax.f32 %v195_v37, 0.0  ;;  %v127_v48 = vmul.f32 %v381_v1, %v56_v32  ;;  %v128_v49 = vmul.f32 %v381_v1, %v57_v33  ;;  %v196_v50 = vadd.f32 %v386_v2, %v125_v44  ;;  %v71_v33 = vld [vmem:[%s961_s0 + $0x1c8] sm:$0xff]  ;;  %v73_v35 = vld [vmem:[%s961_s0 + $0x1d8] sm:$0xff] }
  0x24   :  { %321 = vst.msk [vmem:[%s964_s3 + $0x120] sm:$0xff] %vm284_vm0, %v256_v41  ;;  %322 = vst.msk [vmem:[%s964_s3 + $0x128] sm:$0xff] %vm284_vm0, %v257_v42  ;;  %v129_v51 = vmul.f32 %v381_v1, %v58_v38  ;;  %v130_v52 = vmul.f32 %v381_v1, %v59_v39  ;;  %v131_v53 = vmul.f32 %v381_v1, %v60_v40  ;;  %v74_v40 = vld [vmem:[%s961_s0 + $0x1e0] sm:$0xff]  ;;  %v75_v41 = vld [vmem:[%s961_s0 + $0x1e8] sm:$0xff] }
  0x25   :  { %323 = vst.msk [vmem:[%s964_s3 + $0x130] sm:$0xff] %vm284_vm0, %v258_v43  ;;  %324 = vst.msk [vmem:[%s964_s3 + $0x138] sm:$0xff] %vm284_vm0, %v259_v46  ;;  %v197_v54 = vadd.f32 %v386_v2, %v126_v47  ;;  %v198_v55 = vadd.f32 %v386_v2, %v127_v48  ;;  %v199_v56 = vadd.f32 %v386_v2, %v128_v49  ;;  %v260_v59 = vmax.f32 %v196_v50, 0.0  ;;  %v76_v42 = vld [vmem:[%s961_s0 + $0x1f0] sm:$0xff]  ;;  %v77_v47 = vld [vmem:[%s961_s0 + $0x1f8] sm:$0xff] }
  0x26   :  { %v132_v57 = vmul.f32 %v381_v1, %v61_v45  ;;  %v200_v60 = vadd.f32 %v386_v2, %v129_v51  ;;  %v201_v61 = vadd.f32 %v386_v2, %v130_v52  ;;  %v202_v62 = vadd.f32 %v386_v2, %v131_v53 }
  0x27   :  { %v261_v4 = vmax.f32 %v197_v54, 0.0  ;;  %v262_v5 = vmax.f32 %v198_v55, 0.0  ;;  %v263_v6 = vmax.f32 %v199_v56, 0.0  ;;  %325 = vst.msk [vmem:[%s964_s3 + $0x140] sm:$0xff] %vm284_vm0, %v260_v59  ;;  %v133_v14 = vmul.f32 %v381_v1, %v62_v58 }
  0x28   :  { %v203_v7 = vadd.f32 %v386_v2, %v132_v57  ;;  %v264_v11 = vmax.f32 %v200_v60, 0.0  ;;  %v265_v12 = vmax.f32 %v201_v61, 0.0  ;;  %v266_v13 = vmax.f32 %v202_v62, 0.0 }
  0x29   :  { %326 = vst.msk [vmem:[%s964_s3 + $0x148] sm:$0xff] %vm284_vm0, %v261_v4  ;;  %327 = vst.msk [vmem:[%s964_s3 + $0x150] sm:$0xff] %vm284_vm0, %v262_v5  ;;  %v134_v17 = vmul.f32 %v381_v1, %v63_v63  ;;  %v135_v18 = vmul.f32 %v381_v1, %v64_v0  ;;  %v136_v19 = vmul.f32 %v381_v1, %v65_v3 }
  0x2a   :  { %328 = vst.msk [vmem:[%s964_s3 + $0x158] sm:$0xff] %vm284_vm0, %v263_v6  ;;  %v267_v16 = vmax.f32 %v203_v7, 0.0  ;;  %329 = vst.msk [vmem:[%s964_s3 + $0x160] sm:$0xff] %vm284_vm0, %v264_v11  ;;  %v204_v20 = vadd.f32 %v386_v2, %v133_v14  ;;  %v137_v21 = vmul.f32 %v381_v1, %v66_v8  ;;  %v138_v22 = vmul.f32 %v381_v1, %v67_v9 }
  0x2b   :  { %330 = vst.msk [vmem:[%s964_s3 + $0x168] sm:$0xff] %vm284_vm0, %v265_v12  ;;  %331 = vst.msk [vmem:[%s964_s3 + $0x170] sm:$0xff] %vm284_vm0, %v266_v13  ;;  %v139_v23 = vmul.f32 %v381_v1, %v68_v10  ;;  %v205_v24 = vadd.f32 %v386_v2, %v134_v17  ;;  %v206_v25 = vadd.f32 %v386_v2, %v135_v18 }
  0x2c   :  { %332 = vst.msk [vmem:[%s964_s3 + $0x178] sm:$0xff] %vm284_vm0, %v267_v16  ;;  %v207_v26 = vadd.f32 %v386_v2, %v136_v19  ;;  %v140_v27 = vmul.f32 %v381_v1, %v69_v15  ;;  %v268_v29 = vmax.f32 %v204_v20, 0.0  ;;  %v208_v30 = vadd.f32 %v386_v2, %v137_v21 }
  0x2d   :  { %v209_v31 = vadd.f32 %v386_v2, %v138_v22  ;;  %v210_v32 = vadd.f32 %v386_v2, %v139_v23  ;;  %v269_v36 = vmax.f32 %v205_v24, 0.0  ;;  %v270_v37 = vmax.f32 %v206_v25, 0.0 }
  0x2e   :  { %v271_v38 = vmax.f32 %v207_v26, 0.0  ;;  %v211_v39 = vadd.f32 %v386_v2, %v140_v27  ;;  %333 = vst.msk [vmem:[%s964_s3 + $0x180] sm:$0xff] %vm284_vm0, %v268_v29  ;;  %v272_v43 = vmax.f32 %v208_v30, 0.0  ;;  %v141_v46 = vmul.f32 %v381_v1, %v70_v28 }
  0x2f   :  { %v273_v44 = vmax.f32 %v209_v31, 0.0  ;;  %v274_v45 = vmax.f32 %v210_v32, 0.0  ;;  %334 = vst.msk [vmem:[%s964_s3 + $0x188] sm:$0xff] %vm284_vm0, %v269_v36  ;;  %335 = vst.msk [vmem:[%s964_s3 + $0x190] sm:$0xff] %vm284_vm0, %v270_v37  ;;  %v142_v49 = vmul.f32 %v381_v1, %v71_v33  ;;  %v143_v50 = vmul.f32 %v381_v1, %v72_v34 }
  0x30   :  { %336 = vst.msk [vmem:[%s964_s3 + $0x198] sm:$0xff] %vm284_vm0, %v271_v38  ;;  %v275_v48 = vmax.f32 %v211_v39, 0.0  ;;  %v144_v51 = vmul.f32 %v381_v1, %v73_v35  ;;  %337 = vst.msk [vmem:[%s964_s3 + $0x1a0] sm:$0xff] %vm284_vm0, %v272_v43  ;;  %v212_v52 = vadd.f32 %v386_v2, %v141_v46  ;;  %v145_v53 = vmul.f32 %v381_v1, %v74_v40 }
  0x31   :  { %338 = vst.msk [vmem:[%s964_s3 + $0x1a8] sm:$0xff] %vm284_vm0, %v273_v44  ;;  %339 = vst.msk [vmem:[%s964_s3 + $0x1b0] sm:$0xff] %vm284_vm0, %v274_v45  ;;  %v146_v54 = vmul.f32 %v381_v1, %v75_v41  ;;  %v147_v55 = vmul.f32 %v381_v1, %v76_v42  ;;  %v213_v56 = vadd.f32 %v386_v2, %v142_v49 }
  0x32   :  { %340 = vst.msk [vmem:[%s964_s3 + $0x1b8] sm:$0xff] %vm284_vm0, %v275_v48  ;;  %v214_v57 = vadd.f32 %v386_v2, %v143_v50  ;;  %v215_v58 = vadd.f32 %v386_v2, %v144_v51  ;;  %v148_v59 = vmul.f32 %v381_v1, %v77_v47  ;;  %v276_v60 = vmax.f32 %v212_v52, 0.0 }
  0x33   :  { %v216_v61 = vadd.f32 %v386_v2, %v145_v53  ;;  %v217_v62 = vadd.f32 %v386_v2, %v146_v54  ;;  %v218_v63 = vadd.f32 %v386_v2, %v147_v55  ;;  %v277_v0 = vmax.f32 %v213_v56, 0.0 }
  0x34   :  { %v278_v3 = vmax.f32 %v214_v57, 0.0  ;;  %v279_v4 = vmax.f32 %v215_v58, 0.0  ;;  %v219_v5 = vadd.f32 %v386_v2, %v148_v59  ;;  %341 = vst.msk [vmem:[%s964_s3 + $0x1c0] sm:$0xff] %vm284_vm0, %v276_v60 }
  0x35   :  { %v280_v6 = vmax.f32 %v216_v61, 0.0  ;;  %v281_v7 = vmax.f32 %v217_v62, 0.0  ;;  %v282_v1 = vmax.f32 %v218_v63, 0.0  ;;  %342 = vst.msk [vmem:[%s964_s3 + $0x1c8] sm:$0xff] %vm284_vm0, %v277_v0 }
  0x36   :  { %343 = vst.msk [vmem:[%s964_s3 + $0x1d0] sm:$0xff] %vm284_vm0, %v278_v3  ;;  %344 = vst.msk [vmem:[%s964_s3 + $0x1d8] sm:$0xff] %vm284_vm0, %v279_v4  ;;  %v283_v2 = vmax.f32 %v219_v5, 0.0 }
  0x37   :  { %345 = vst.msk [vmem:[%s964_s3 + $0x1e0] sm:$0xff] %vm284_vm0, %v280_v6  ;;  %346 = vst.msk [vmem:[%s964_s3 + $0x1e8] sm:$0xff] %vm284_vm0, %v281_v7 }
  0x38   :  { %347 = vst.msk [vmem:[%s964_s3 + $0x1f0] sm:$0xff] %vm284_vm0, %v282_v1  ;;  %348 = vst.msk [vmem:[%s964_s3 + $0x1f8] sm:$0xff] %vm284_vm0, %v283_v2 }

// kernel: ds_conv_forward.4
= control target key start
LH: loop header
LB: loop body
LE: loop exit
PB: predicated region body
PF: predicated region fallthrough
CT: control target
= control target key end

     0   :  { %vm484_vm0 = vcmask 1043456   ;;  %vm291_vm1 = vcmask 31744   ;;  %vm873_vm2 = vcmask 64512   ;;  %vm1071_vm3 = vcmask 57344   ;;  %s2614_s3 = inlined_call_operand.vmem [shape: f32[4,8], index: 3, kind: input, shape index: {}]   ;;  %s2615_s0 = inlined_call_operand.vmem [shape: f32[512,4], index: 0, kind: input, shape index: {}]   ;;  %s2616_s1 = inlined_call_operand.vmem [shape: f32[1,4], index: 1, kind: input, shape index: {}]   ;;  %s2617_s2 = inlined_call_operand.vmem [shape: f32[1,4], index: 2, kind: input, shape index: {}]   ;;  %s2618_s4 = inlined_call_operand.vmem [shape: f32[512,8], index: 4, kind: output, shape index: {0}]   ;;  %s2619_s5 = inlined_call_operand.vmem [shape: f32[1,1,8], index: 5, kind: output, shape index: {1}]   ;;  %s2620_s6 = inlined_call_operand.vmem [shape: f32[1,1,8], index: 6, kind: output, shape index: {2}]  }
   0x1   :  { %v290_v0 = vld [vmem:[%s2614_s3] sm:$0xf]  ;;  %v21_v5 = vld [vmem:[%s2615_s0 + $0x8] sm:$0xff]  ;;  %v22_v6 = vld [vmem:[%s2615_s0 + $0x10] sm:$0xff] }
   0x2   :  { %v20_v1 = vld [vmem:[%s2615_s0] sm:$0xff]  ;;  %1415 = vmatprep.subr.msk.mxu0 %vm484_vm0, %v290_v0  ;;  %1513 = vmatprep.subr.msk.mxu1 %vm484_vm0, %v290_v0  ;;  %v23_v9 = vld [vmem:[%s2615_s0 + $0x18] sm:$0xff]  ;;  %v25_v11 = vld [vmem:[%s2615_s0 + $0x28] sm:$0xff] }
   0x3   :  { %v1559_v2 = vld [vmem:[%s2616_s1] ss:$0 sm:$0xff]  ;;  %1416 = vmatpush3.msk.msra.mxu0 %vm484_vm0, %v290_v0  ;;  %1514 = vmatpush3.msk.msra.mxu1 %vm484_vm0, %v290_v0  ;;  %v26_v15 = vld [vmem:[%s2615_s0 + $0x30] sm:$0xff]  ;;  %v27_v19 = vld [vmem:[%s2615_s0 + $0x38] sm:$0xff] }
   0x4   :  { %v91_v3 = vmul.f32 %v1559_v2, %v20_v1  ;;  %v1566_v4 = vld [vmem:[%s2617_s2] ss:$0 sm:$0xff]  ;;  %v92_v7 = vmul.f32 %v1559_v2, %v21_v5  ;;  %v93_v8 = vmul.f32 %v1559_v2, %v22_v6  ;;  %v94_v13 = vmul.f32 %v1559_v2, %v23_v9  ;;  %v29_v33 = vld [vmem:[%s2615_s0 + $0x48] sm:$0xff]  ;;  %v30_v34 = vld [vmem:[%s2615_s0 + $0x50] sm:$0xff] }
   0x5   :  { %v24_v10 = vld [vmem:[%s2615_s0 + $0x20] sm:$0xff]  ;;  %v96_v18 = vmul.f32 %v1559_v2, %v25_v11  ;;  %v97_v23 = vmul.f32 %v1559_v2, %v26_v15  ;;  %v98_v27 = vmul.f32 %v1559_v2, %v27_v19  ;;  %v100_v37 = vmul.f32 %v1559_v2, %v29_v33  ;;  %v31_v41 = vld [vmem:[%s2615_s0 + $0x58] sm:$0xff]  ;;  %v33_v43 = vld [vmem:[%s2615_s0 + $0x68] sm:$0xff] }
   0x6   :  { %v162_v12 = vadd.f32 %v1566_v4, %v91_v3  ;;  %v95_v14 = vmul.f32 %v1559_v2, %v24_v10  ;;  %v163_v16 = vadd.f32 %v1566_v4, %v92_v7  ;;  %v164_v17 = vadd.f32 %v1566_v4, %v93_v8  ;;  %v28_v26 = vld [vmem:[%s2615_s0 + $0x40] sm:$0xff]  ;;  %v34_v44 = vld [vmem:[%s2615_s0 + $0x70] sm:$0xff]  ;;  %v35_v50 = vld [vmem:[%s2615_s0 + $0x78] sm:$0xff] }
   0x7   :  { %v165_v21 = vadd.f32 %v1566_v4, %v94_v13  ;;  %v167_v29 = vadd.f32 %v1566_v4, %v96_v18  ;;  %v168_v31 = vadd.f32 %v1566_v4, %v97_v23  ;;  %v99_v32 = vmul.f32 %v1559_v2, %v28_v26  ;;  %v32_v42 = vld [vmem:[%s2615_s0 + $0x60] sm:$0xff]  ;;  %v37_v63 = vld [vmem:[%s2615_s0 + $0x88] sm:$0xff]  ;;  %v38_v0 = vld [vmem:[%s2615_s0 + $0x90] sm:$0xff] }
   0x8   :  { %v226_v20 = vmax.f32 %v162_v12, 0.0  ;;  %v166_v22 = vadd.f32 %v1566_v4, %v95_v14  ;;  %v227_v24 = vmax.f32 %v163_v16, 0.0  ;;  %v228_v25 = vmax.f32 %v164_v17, 0.0  ;;  %v36_v55 = vld [vmem:[%s2615_s0 + $0x80] sm:$0xff]  ;;  %v39_v3 = vld [vmem:[%s2615_s0 + $0x98] sm:$0xff]  ;;  %v53_v5 = vld [vmem:[%s2615_s0 + $0x108] sm:$0xff] }
   0x9   :  { %v229_v28 = vmax.f32 %v165_v21, 0.0  ;;  %v169_v35 = vadd.f32 %v1566_v4, %v98_v27  ;;  %v231_v36 = vmax.f32 %v167_v29, 0.0  ;;  %v232_v38 = vmax.f32 %v168_v31, 0.0  ;;  %v52_v1 = vld [vmem:[%s2615_s0 + $0x100] sm:$0xff]  ;;  %v54_v6 = vld [vmem:[%s2615_s0 + $0x110] sm:$0xff]  ;;  %v55_v12 = vld [vmem:[%s2615_s0 + $0x118] sm:$0xff] }
   0xa   :  { %1417 = vmatprep.mubr.msk.f32.mxu0 %vm291_vm1, %v226_v20  ;;  %v230_v30 = vmax.f32 %v166_v22, 0.0  ;;  %v170_v39 = vadd.f32 %v1566_v4, %v99_v32  ;;  %v101_v40 = vmul.f32 %v1559_v2, %v30_v34  ;;  %v171_v46 = vadd.f32 %v1566_v4, %v100_v37  ;;  %v40_v11 = vld [vmem:[%s2615_s0 + $0xa0] sm:$0xff]  ;;  %v41_v17 = vld [vmem:[%s2615_s0 + $0xa8] sm:$0xff]  ;;  %v42_v26 = vld [vmem:[%s2615_s0 + $0xb0] sm:$0xff] }
   0xb   :  { %1418 = vmatmul.mubr.msk.f32.vlgmr.msra.gmra.mrb[0].mxu0 %vm291_vm1, %v227_v24  ;;  %v233_v45 = vmax.f32 %v169_v35, 0.0  ;;  %v102_v47 = vmul.f32 %v1559_v2, %v31_v41  ;;  %v103_v48 = vmul.f32 %v1559_v2, %v32_v42  ;;  %v104_v49 = vmul.f32 %v1559_v2, %v33_v43  ;;  %v56_v13 = vld [vmem:[%s2615_s0 + $0x120] sm:$0xff]  ;;  %v57_v19 = vld [vmem:[%s2615_s0 + $0x128] sm:$0xff]  ;;  %v58_v24 = vld [vmem:[%s2615_s0 + $0x130] sm:$0xff] }
   0xc   :  { %1420 = vmatprep.mubr.msk.f32.mxu0 %vm291_vm1, %v228_v25  ;;  %v234_v51 = vmax.f32 %v170_v39, 0.0  ;;  %v172_v52 = vadd.f32 %v1566_v4, %v101_v40  ;;  %v105_v53 = vmul.f32 %v1559_v2, %v34_v44  ;;  %v106_v54 = vmul.f32 %v1559_v2, %v35_v50  ;;  %v43_v27 = vld [vmem:[%s2615_s0 + $0xb8] sm:$0xff]  ;;  %v60_v44 = vld [vmem:[%s2615_s0 + $0x140] sm:$0xff] }
   0xd   :  { %v235_v56 = vmax.f32 %v171_v46, 0.0  ;;  %v173_v57 = vadd.f32 %v1566_v4, %v102_v47  ;;  %v174_v58 = vadd.f32 %v1566_v4, %v103_v48  ;;  %v175_v59 = vadd.f32 %v1566_v4, %v104_v49  ;;  %v59_v39 = vld [vmem:[%s2615_s0 + $0x138] sm:$0xff]  ;;  %v44_v49 = vld [vmem:[%s2615_s0 + $0xc0] sm:$0xff] }
   0xe   :  { %v236_v60 = vmax.f32 %v172_v52, 0.0  ;;  %v1658_v61 = vadd.f32 %v1566_v4, %v105_v53  ;;  %v107_v62 = vmul.f32 %v1559_v2, %v36_v55  ;;  %v1681_v10 = vadd.f32 %v1566_v4, %v106_v54  ;;  %v45_v55 = vld [vmem:[%s2615_s0 + $0xc8] sm:$0xff] }
   0xf   :  { %1421 = vmatmul.mubr.msk.f32.gmra.mrb[2].mxu0 %vm291_vm1, %v229_v28  ;;  %v237_v7 = vmax.f32 %v173_v57, 0.0  ;;  %v238_v8 = vmax.f32 %v174_v58, 0.0  ;;  %v239_v9 = vmax.f32 %v175_v59, 0.0  ;;  %v108_v15 = vmul.f32 %v1559_v2, %v37_v63  ;;  %v61_v59 = vld [vmem:[%s2615_s0 + $0x148] sm:$0xff] }
  0x10   :  { %1423 = vmatprep.mubr.msk.f32.mxu0 %vm291_vm1, %v230_v30  ;;  %v240_v14 = vmax.f32 %v1658_v61, 0.0  ;;  %v109_v16 = vmul.f32 %v1559_v2, %v38_v0  ;;  %v123_v18 = vmul.f32 %v1559_v2, %v52_v1  ;;  %v1704_v20 = vadd.f32 %v1566_v4, %v107_v62  ;;  %v46_v0 = vld [vmem:[%s2615_s0 + $0xd0] sm:$0xff] }
  0x11   :  { %v110_v21 = vmul.f32 %v1559_v2, %v39_v3  ;;  %v124_v22 = vmul.f32 %v1559_v2, %v53_v5  ;;  %v125_v23 = vmul.f32 %v1559_v2, %v54_v6  ;;  %v111_v25 = vmul.f32 %v1559_v2, %v40_v11  ;;  %v62_v1 = vld [vmem:[%s2615_s0 + $0x150] sm:$0xff] }
  0x12   :  { %v194_v28 = vadd.f32 %v1566_v4, %v123_v18  ;;  %v126_v29 = vmul.f32 %v1559_v2, %v55_v12  ;;  %v127_v30 = vmul.f32 %v1559_v2, %v56_v13  ;;  %v112_v31 = vmul.f32 %v1559_v2, %v41_v17 }
  0x13   :  { %1424 = vmatmul.mubr.msk.f32.gmra.mrb[4].mxu0 %vm291_vm1, %v231_v36  ;;  %v195_v32 = vadd.f32 %v1566_v4, %v124_v22  ;;  %v196_v33 = vadd.f32 %v1566_v4, %v125_v23  ;;  %v128_v34 = vmul.f32 %v1559_v2, %v57_v19  ;;  %v113_v40 = vmul.f32 %v1559_v2, %v42_v26 }
  0x14   :  { %1426 = vmatprep.mubr.msk.f32.mxu0 %vm291_vm1, %v232_v38  ;;  %v258_v35 = vmax.f32 %v194_v28, 0.0  ;;  %v197_v36 = vadd.f32 %v1566_v4, %v126_v29  ;;  %v198_v37 = vadd.f32 %v1566_v4, %v127_v30  ;;  %v129_v38 = vmul.f32 %v1559_v2, %v58_v24  ;;  %v65_v30 = vld [vmem:[%s2615_s0 + $0x168] sm:$0xff] }
  0x15   :  { %v114_v41 = vmul.f32 %v1559_v2, %v43_v27  ;;  %v259_v42 = vmax.f32 %v195_v32, 0.0  ;;  %v260_v43 = vmax.f32 %v196_v33, 0.0  ;;  %v1741_v46 = vadd.f32 %v1566_v4, %v109_v16  ;;  %v75_v32 = vld [vmem:[%s2615_s0 + $0x1b8] sm:$0xff] }
  0x16   :  { %v1744_v47 = vadd.f32 %v1566_v4, %v110_v21  ;;  %v1747_v48 = vadd.f32 %v1566_v4, %v111_v25  ;;  %1465 = vmatprep.mubr.msk.f32.mxu1 %vm291_vm1, %v258_v35  ;;  %v241_v50 = vmax.f32 %v1681_v10, 0.0  ;;  %v199_v52 = vadd.f32 %v1566_v4, %v128_v34  ;;  %v48_v10 = vld [vmem:[%s2615_s0 + $0xe0] sm:$0xff]  ;;  %v74_v25 = vld [vmem:[%s2615_s0 + $0x1b0] sm:$0xff] }
  0x17   :  { %1427 = vmatmul.mubr.msk.f32.gmra.mrb[6].mxu0 %vm291_vm1, %v233_v45  ;;  %v179_v45 = vadd.f32 %v1566_v4, %v108_v15  ;;  %1466 = vmatmul.mubr.msk.f32.vlgmr.msra.gmra.mrb[0].mxu1 %vm291_vm1, %v259_v42  ;;  %v130_v53 = vmul.f32 %v1559_v2, %v59_v39  ;;  %v242_v54 = vmax.f32 %v1704_v20, 0.0  ;;  %v200_v57 = vadd.f32 %v1566_v4, %v129_v38  ;;  %v64_v15 = vld [vmem:[%s2615_s0 + $0x160] sm:$0xff]  ;;  %v73_v20 = vld [vmem:[%s2615_s0 + $0x1a8] sm:$0xff] }
  0x18   :  { %1429 = vmatprep.mubr.msk.f32.mxu0 %vm291_vm1, %v234_v51  ;;  %v261_v51 = vmax.f32 %v197_v36, 0.0  ;;  %1468 = vmatprep.mubr.msk.f32.mxu1 %vm291_vm1, %v260_v43  ;;  %v131_v58 = vmul.f32 %v1559_v2, %v60_v44  ;;  %v1773_v61 = vadd.f32 %v1566_v4, %v113_v40  ;;  %v1776_v62 = vadd.f32 %v1566_v4, %v114_v41  ;;  %v77_v42 = vld [vmem:[%s2615_s0 + $0x1c8] sm:$0xff]  ;;  %v78_v43 = vld [vmem:[%s2615_s0 + $0x1d0] sm:$0xff] }
  0x19   :  { %v115_v63 = vmul.f32 %v1559_v2, %v44_v49  ;;  %v243_v3 = vmax.f32 %v179_v45, 0.0  ;;  %v244_v5 = vmax.f32 %v1741_v46, 0.0  ;;  %v245_v6 = vmax.f32 %v1744_v47, 0.0  ;;  %v79_v49 = vld [vmem:[%s2615_s0 + $0x1d8] sm:$0xff] }
  0x1a   :  { %v263_v11 = vmax.f32 %v199_v52, 0.0  ;;  %v201_v12 = vadd.f32 %v1566_v4, %v130_v53  ;;  %v132_v13 = vmul.f32 %v1559_v2, %v61_v59  ;;  %v117_v16 = vmul.f32 %v1559_v2, %v46_v0 }
  0x1b   :  { %1430 = vmatmul.mubr.msk.f32.gmra.mrb[8].mxu0 %vm291_vm1, %v235_v56  ;;  %v262_v56 = vmax.f32 %v198_v37, 0.0  ;;  %1469 = vmatmul.mubr.msk.f32.gmra.mrb[2].mxu1 %vm291_vm1, %v261_v51  ;;  %v264_v17 = vmax.f32 %v200_v57, 0.0  ;;  %v202_v18 = vadd.f32 %v1566_v4, %v131_v58  ;;  %v133_v19 = vmul.f32 %v1559_v2, %v62_v1  ;;  %v76_v37 = vld [vmem:[%s2615_s0 + $0x1c0] sm:$0xff]  ;;  %v67_v57 = vld [vmem:[%s2615_s0 + $0x178] sm:$0xff] }
  0x1c   :  { %1432 = vmatprep.mubr.msk.f32.mxu0 %vm291_vm1, %v236_v60  ;;  %v1770_v60 = vadd.f32 %v1566_v4, %v112_v31  ;;  %v248_v22 = vmax.f32 %v1773_v61, 0.0  ;;  %v249_v23 = vmax.f32 %v1776_v62, 0.0  ;;  %v1817_v24 = vadd.f32 %v1566_v4, %v115_v63  ;;  %v66_v31 = vld [vmem:[%s2615_s0 + $0x170] sm:$0xff] }
  0x1d   :  { %1471 = vmatprep.mubr.msk.f32.mxu1 %vm291_vm1, %v262_v56  ;;  %v1826_v27 = vmul.f32 %v1559_v2, %v48_v10  ;;  %v135_v29 = vmul.f32 %v1559_v2, %v64_v15  ;;  %v265_v34 = vmax.f32 %v201_v12, 0.0  ;;  %v203_v35 = vadd.f32 %v1566_v4, %v132_v13  ;;  %v82_v63 = vld [vmem:[%s2615_s0 + $0x1f0] sm:$0xff]  ;;  %v49_v15 = vld [vmem:[%s2615_s0 + $0xe8] sm:$0xff] }
  0x1e   :  { %v247_v21 = vmax.f32 %v1770_v60, 0.0  ;;  %v144_v36 = vmul.f32 %v1559_v2, %v73_v20  ;;  %v1851_v38 = vadd.f32 %v1566_v4, %v117_v16  ;;  %v266_v39 = vmax.f32 %v202_v18, 0.0  ;;  %v50_v16 = vld [vmem:[%s2615_s0 + $0xf0] sm:$0xff] }
  0x1f   :  { %1433 = vmatmul.mubr.msk.f32.gmra.mrb[10].mxu0 %vm291_vm1, %v237_v7  ;;  %v246_v7 = vmax.f32 %v1747_v48, 0.0  ;;  %1472 = vmatmul.mubr.msk.f32.gmra.mrb[4].mxu1 %vm291_vm1, %v263_v11  ;;  %v204_v40 = vadd.f32 %v1566_v4, %v133_v19  ;;  %v145_v41 = vmul.f32 %v1559_v2, %v74_v25  ;;  %v136_v44 = vmul.f32 %v1559_v2, %v65_v30  ;;  %v68_v48 = vld [vmem:[%s2615_s0 + $0x180] sm:$0xff]  ;;  %v70_v61 = vld [vmem:[%s2615_s0 + $0x190] sm:$0xff] }
  0x20   :  { %1435 = vmatprep.mubr.msk.f32.mxu0 %vm291_vm1, %v238_v8  ;;  %v47_v8 = vld [vmem:[%s2615_s0 + $0xd8] sm:$0xff]  ;;  %1474 = vmatprep.mubr.msk.f32.mxu1 %vm291_vm1, %v264_v17  ;;  %v137_v45 = vmul.f32 %v1559_v2, %v66_v31  ;;  %v1865_v46 = vadd.f32 %v1566_v4, %v144_v36  ;;  %v146_v47 = vmul.f32 %v1559_v2, %v75_v32  ;;  %v267_v56 = vmax.f32 %v203_v35, 0.0 }
  0x21   :  { %v1823_v26 = vmul.f32 %v1559_v2, %v47_v8  ;;  %v206_v52 = vadd.f32 %v1566_v4, %v135_v29  ;;  %v1877_v53 = vadd.f32 %v1566_v4, %v145_v41  ;;  %v148_v59 = vmul.f32 %v1559_v2, %v77_v42  ;;  %v51_v36 = vld [vmem:[%s2615_s0 + $0xf8] sm:$0xff]  ;;  %v72_v41 = vld [vmem:[%s2615_s0 + $0x1a0] sm:$0xff] }
  0x22   :  { %v1889_v58 = vadd.f32 %v1566_v4, %v146_v47  ;;  %v149_v60 = vmul.f32 %v1559_v2, %v78_v43  ;;  %v268_v0 = vmax.f32 %v204_v40, 0.0  ;;  %v250_v8 = vmax.f32 %v1817_v24, 0.0  ;;  %v71_v40 = vld [vmem:[%s2615_s0 + $0x198] sm:$0xff] }
  0x23   :  { %1436 = vmatmul.mubr.msk.f32.gmra.mrb[12].mxu0 %vm291_vm1, %v239_v9  ;;  %v116_v9 = vmul.f32 %v1559_v2, %v45_v55  ;;  %v81_v55 = vld [vmem:[%s2615_s0 + $0x1e8] sm:$0xff]  ;;  %1475 = vmatmul.mubr.msk.f32.gmra.mrb[6].mxu1 %vm291_vm1, %v265_v34  ;;  %v138_v11 = vmul.f32 %v1559_v2, %v67_v57  ;;  %v207_v18 = vadd.f32 %v1566_v4, %v136_v44 }
  0x24   :  { %1438 = vmatprep.mubr.msk.f32.mxu0 %vm291_vm1, %v240_v14  ;;  %v63_v14 = vld [vmem:[%s2615_s0 + $0x158] sm:$0xff]  ;;  %1477 = vmatprep.mubr.msk.f32.mxu1 %vm291_vm1, %v266_v39  ;;  %v152_v10 = vmul.f32 %v1559_v2, %v81_v55  ;;  %v208_v24 = vadd.f32 %v1566_v4, %v137_v45  ;;  %v139_v25 = vmul.f32 %v1559_v2, %v68_v48  ;;  %v252_v39 = vmax.f32 %v1851_v38, 0.0 }
  0x25   :  { %v134_v28 = vmul.f32 %v1559_v2, %v63_v14  ;;  %v1841_v33 = vadd.f32 %v1566_v4, %v116_v9  ;;  %v1916_v9 = vadd.f32 %v1566_v4, %v149_v60  ;;  %v153_v14 = vmul.f32 %v1559_v2, %v82_v63 }
  0x26   :  { %v1937_v19 = vadd.f32 %v1566_v4, %v152_v10  ;;  %v189_v30 = vadd.f32 %v1566_v4, %v1823_v26  ;;  %v190_v31 = vadd.f32 %v1566_v4, %v1826_v27  ;;  %v120_v32 = vmul.f32 %v1559_v2, %v49_v15 }
  0x27   :  { %1439 = vmatmul.mubr.msk.f32.gmra.mrb[14].mxu0 %vm291_vm1, %v241_v50  ;;  %v80_v50 = vld [vmem:[%s2615_s0 + $0x1e0] sm:$0xff]  ;;  %v205_v51 = vadd.f32 %v1566_v4, %v134_v28  ;;  %1478 = vmatmul.mubr.msk.f32.gmra.mrb[8].mxu1 %vm291_vm1, %v267_v56  ;;  %v69_v28 = vld [vmem:[%s2615_s0 + $0x188] sm:$0xff]  ;;  %v1950_v29 = vadd.f32 %v1566_v4, %v153_v14  ;;  %v121_v34 = vmul.f32 %v1559_v2, %v50_v16  ;;  %v251_v35 = vmax.f32 %v1841_v33, 0.0 }
  0x28   :  { %1441 = vmatprep.mubr.msk.f32.mxu0 %vm291_vm1, %v242_v54  ;;  %v147_v54 = vmul.f32 %v1559_v2, %v76_v37  ;;  %1480 = vmatprep.mubr.msk.f32.mxu1 %vm291_vm1, %v268_v0  ;;  %v271_v26 = vmax.f32 %v207_v18, 0.0  ;;  %v209_v37 = vadd.f32 %v1566_v4, %v138_v11  ;;  %v140_v27 = vmul.f32 %v1559_v2, %v69_v28 }
  0x29   :  { %v269_v17 = vmax.f32 %v205_v51, 0.0  ;;  %v272_v62 = vmax.f32 %v208_v24, 0.0  ;;  %v141_v33 = vmul.f32 %v1559_v2, %v70_v61  ;;  %v191_v42 = vadd.f32 %v1566_v4, %v120_v32 }
  0x2a   :  { %v1901_v1 = vadd.f32 %v1566_v4, %v147_v54  ;;  %v192_v43 = vadd.f32 %v1566_v4, %v121_v34  ;;  %v122_v38 = vmul.f32 %v1559_v2, %v51_v36  ;;  %v253_v44 = vmax.f32 %v189_v30, 0.0 }
  0x2b   :  { %1442 = vmatmul.mubr.msk.f32.gmra.mrb[16].mxu0 %vm291_vm1, %v243_v3  ;;  %v150_v3 = vmul.f32 %v1559_v2, %v79_v49  ;;  %1481 = vmatmul.mubr.msk.f32.gmra.mrb[10].mxu1 %vm291_vm1, %v269_v17  ;;  %v273_v45 = vmax.f32 %v209_v37, 0.0  ;;  %v211_v47 = vadd.f32 %v1566_v4, %v140_v27  ;;  %v142_v49 = vmul.f32 %v1559_v2, %v71_v40 }
  0x2c   :  { %1444 = vmatprep.mubr.msk.f32.mxu0 %vm291_vm1, %v244_v5  ;;  %v151_v5 = vmul.f32 %v1559_v2, %v80_v50  ;;  %v254_v50 = vmax.f32 %v190_v31, 0.0  ;;  %v143_v54 = vmul.f32 %v1559_v2, %v72_v41  ;;  %v255_v55 = vmax.f32 %v191_v42, 0.0 }
  0x2d   :  { %v1921_v12 = vadd.f32 %v1566_v4, %v150_v3  ;;  %v193_v56 = vadd.f32 %v1566_v4, %v122_v38  ;;  %v275_v57 = vmax.f32 %v211_v47, 0.0  ;;  %v256_v60 = vmax.f32 %v192_v43, 0.0 }
  0x2e   :  { %v1924_v13 = vadd.f32 %v1566_v4, %v151_v5  ;;  %v214_v0 = vadd.f32 %v1566_v4, %v143_v54  ;;  %v282_v48 = vmax.f32 %v1901_v1, 0.0  ;;  %v287_v1 = vmax.f32 %v1937_v19, 0.0 }
  0x2f   :  { %1445 = vmatmul.mubr.msk.f32.gmra.mrb[18].mxu0 %vm291_vm1, %v245_v6  ;;  %v83_v6 = vld [vmem:[%s2615_s0 + $0x1f8] sm:$0xff] }
  0x30   :  { %1447 = vmatprep.mubr.msk.f32.mxu0 %vm291_vm1, %v246_v7  ;;  %v1913_v7 = vadd.f32 %v1566_v4, %v148_v59  ;;  %v154_v20 = vmul.f32 %v1559_v2, %v83_v6  ;;  %v213_v59 = vadd.f32 %v1566_v4, %v142_v49  ;;  %v257_v2 = vmax.f32 %v193_v56, 0.0 }
  0x31   :  { %v278_v5 = vmax.f32 %v214_v0, 0.0  ;;  %v279_v6 = vmax.f32 %v1865_v46, 0.0  ;;  %v284_v46 = vmax.f32 %v1916_v9, 0.0 }
  0x32   :  { %v277_v3 = vmax.f32 %v213_v59, 0.0  ;;  %v283_v10 = vmax.f32 %v1913_v7, 0.0  ;;  %v288_v7 = vmax.f32 %v1950_v29, 0.0 }
  0x33   :  { %1448 = vmatmul.mubr.msk.f32.gmra.mrb[20].mxu0 %vm291_vm1, %v247_v21  ;;  %v270_v21 = vmax.f32 %v206_v52, 0.0  ;;  %v212_v52 = vadd.f32 %v1566_v4, %v141_v33 }
  0x34   :  { %1450 = vmatprep.mubr.msk.f32.mxu0 %vm291_vm1, %v248_v22  ;;  %v1956_v22 = vadd.f32 %v1566_v4, %v154_v20 }
  0x35   :  { %1483 = vmatprep.mubr.msk.f32.mxu1 %vm291_vm1, %v270_v21  ;;  %v276_v63 = vmax.f32 %v212_v52, 0.0 }
  0x36   :  { %1484 = vmatmul.mubr.msk.f32.gmra.mrb[12].mxu1 %vm291_vm1, %v271_v26  ;;  %v289_v9 = vmax.f32 %v1956_v22, 0.0 }
  0x37   :  { %1451 = vmatmul.mubr.msk.f32.gmra.mrb[22].mxu0 %vm291_vm1, %v249_v23  ;;  %v210_v23 = vadd.f32 %v1566_v4, %v139_v25  ;;  %1486 = vmatprep.mubr.msk.f32.mxu1 %vm291_vm1, %v272_v62  ;;  %v280_v4 = vmax.f32 %v1877_v53, 0.0  ;;  %v285_v53 = vmax.f32 %v1921_v12, 0.0 }
  0x38   :  { %1453 = vmatprep.mubr.msk.f32.mxu0 %vm291_vm1, %v250_v8  ;;  %v281_v8 = vmax.f32 %v1889_v58, 0.0  ;;  %v286_v58 = vmax.f32 %v1924_v13, 0.0 }
  0x39   :  { %v274_v51 = vmax.f32 %v210_v23, 0.0 }
  0x3a   :  { %1487 = vmatmul.mubr.msk.f32.gmra.mrb[14].mxu1 %vm291_vm1, %v273_v45 }
  0x3b   :  { %1454 = vmatmul.mubr.msk.f32.gmra.mrb[24].mxu0 %vm291_vm1, %v251_v35  ;;  %1489 = vmatprep.mubr.msk.f32.mxu1 %vm291_vm1, %v274_v51 }
  0x3c   :  { %1456 = vmatprep.mubr.msk.f32.mxu0 %vm291_vm1, %v252_v39 }
  0x3e   :  { %1490 = vmatmul.mubr.msk.f32.gmra.mrb[16].mxu1 %vm291_vm1, %v275_v57 }
  0x3f   :  { %1457 = vmatmul.mubr.msk.f32.gmra.mrb[26].mxu0 %vm291_vm1, %v253_v44  ;;  %1492 = vmatprep.mubr.msk.f32.mxu1 %vm291_vm1, %v276_v63 }
  0x40   :  { %1459 = vmatprep.mubr.msk.f32.mxu0 %vm291_vm1, %v254_v50 }
  0x42   :  { %1493 = vmatmul.mubr.msk.f32.gmra.mrb[18].mxu1 %vm291_vm1, %v277_v3 }
  0x43   :  { %1460 = vmatmul.mubr.msk.f32.gmra.mrb[28].mxu0 %vm291_vm1, %v255_v55  ;;  %1495 = vmatprep.mubr.msk.f32.mxu1 %vm291_vm1, %v278_v5 }
  0x44   :  { %1462 = vmatprep.mubr.msk.f32.mxu0 %vm291_vm1, %v256_v60 }
  0x46   :  { %1496 = vmatmul.mubr.msk.f32.gmra.mrb[20].mxu1 %vm291_vm1, %v279_v6 }
  0x47   :  { %1463 = vmatmul.mubr.msk.f32.gmra.mrb[30].mxu0 %vm291_vm1, %v257_v2  ;;  %1498 = vmatprep.mubr.msk.f32.mxu1 %vm291_vm1, %v280_v4 }
  0x4a   :  { %1499 = vmatmul.mubr.msk.f32.gmra.mrb[22].mxu1 %vm291_vm1, %v281_v8 }
  0x4b   :  { %1501 = vmatprep.mubr.msk.f32.mxu1 %vm291_vm1, %v282_v48 }
  0x4e   :  { %1502 = vmatmul.mubr.msk.f32.gmra.mrb[24].mxu1 %vm291_vm1, %v283_v10 }
  0x4f   :  { %1504 = vmatprep.mubr.msk.f32.mxu1 %vm291_vm1, %v284_v46 }
  0x52   :  { %1505 = vmatmul.mubr.msk.f32.gmra.mrb[26].mxu1 %vm291_vm1, %v285_v53 }
  0x53   :  { %1507 = vmatprep.mubr.msk.f32.mxu1 %vm291_vm1, %v286_v58 }
  0x56   :  { %1508 = vmatmul.mubr.msk.f32.gmra.mrb[28].mxu1 %vm291_vm1, %v287_v1 }
  0x57   :  { %1510 = vmatprep.mubr.msk.f32.mxu1 %vm291_vm1, %v288_v7 }
  0x5a   :  { %1511 = vmatmul.mubr.msk.f32.gmra.mrb[30].mxu1 %vm291_vm1, %v289_v9 }
  0xde   :  { %v1419_v11 = vpop.f32.mrb[0].mxu0 }
  0xdf   :  { %875 = vst.msk [vmem:[%s2618_s4 + $0x8] sm:$0xff] %vm873_vm2, %v1419_v11  ;;  %v939_v12 = vsel %vm873_vm2, %v1419_v11, 0.0  ;;  %v1074_v13 = vmul.f32 %v1419_v11, %v1419_v11  ;;  %v554_v14 = vpop.f32.mrb[1].mxu0 }
  0xe0   :  { %874 = vst.msk [vmem:[%s2618_s4] sm:$0xff] %vm873_vm2, %v554_v14  ;;  %v938_v15 = vsel %vm873_vm2, %v554_v14, 0.0  ;;  %v1073_v16 = vmul.f32 %v554_v14, %v554_v14 }
  0xe1   :  { %v1138_v17 = vsel %vm873_vm2, %v1074_v13, 0.0  ;;  %v940_v18 = vadd.f32 %v939_v12, %v938_v15 }
  0xe2   :  { %v1137_v19 = vsel %vm873_vm2, %v1073_v16, 0.0  ;;  %v1422_v20 = vpop.f32.mrb[2].mxu0 }
  0xe3   :  { %v1139_v21 = vadd.f32 %v1138_v17, %v1137_v19  ;;  %877 = vst.msk [vmem:[%s2618_s4 + $0x18] sm:$0xff] %vm873_vm2, %v1422_v20  ;;  %v564_v24 = vpop.f32.mrb[3].mxu0  ;;  %v1076_v25 = vmul.f32 %v1422_v20, %v1422_v20  ;;  %v943_v22 = vsel %vm873_vm2, %v1422_v20, 0.0 }
  0xe4   :  { %876 = vst.msk [vmem:[%s2618_s4 + $0x10] sm:$0xff] %vm873_vm2, %v564_v24  ;;  %v941_v28 = vsel %vm873_vm2, %v564_v24, 0.0  ;;  %v1075_v29 = vmul.f32 %v564_v24, %v564_v24 }
  0xe5   :  { %v942_v61 = vadd.f32 %v941_v28, %v940_v18  ;;  %v1142_v36 = vsel %vm873_vm2, %v1076_v25, 0.0 }
  0xe6   :  { %v1140_v30 = vsel %vm873_vm2, %v1075_v29, 0.0  ;;  %v1425_v31 = vpop.f32.mrb[4].mxu0 }
  0xe7   :  { %v1141_v32 = vadd.f32 %v1140_v30, %v1139_v21  ;;  %879 = vst.msk [vmem:[%s2618_s4 + $0x28] sm:$0xff] %vm873_vm2, %v1425_v31  ;;  %v574_v34 = vpop.f32.mrb[5].mxu0  ;;  %v944_v35 = vadd.f32 %v943_v22, %v942_v61  ;;  %v1078_v26 = vmul.f32 %v1425_v31, %v1425_v31  ;;  %v947_v23 = vsel %vm873_vm2, %v1425_v31, 0.0 }
  0xe8   :  { %878 = vst.msk [vmem:[%s2618_s4 + $0x20] sm:$0xff] %vm873_vm2, %v574_v34  ;;  %v945_v37 = vsel %vm873_vm2, %v574_v34, 0.0  ;;  %v1077_v27 = vmul.f32 %v574_v34, %v574_v34 }
  0xe9   :  { %v946_v39 = vadd.f32 %v945_v37, %v944_v35  ;;  %v1143_v62 = vadd.f32 %v1142_v36, %v1141_v32  ;;  %v1146_v38 = vsel %vm873_vm2, %v1078_v26, 0.0 }
  0xea   :  { %v1144_v33 = vsel %vm873_vm2, %v1077_v27, 0.0  ;;  %v1428_v40 = vpop.f32.mrb[6].mxu0  ;;  %v2103_v14 = vpop.f32.mrb[0].mxu1 }
  0xeb   :  { %v1145_v41 = vadd.f32 %v1144_v33, %v1143_v62  ;;  %881 = vst.msk [vmem:[%s2618_s4 + $0x38] sm:$0xff] %vm873_vm2, %v1428_v40  ;;  %v584_v42 = vpop.f32.mrb[7].mxu0  ;;  %v948_v43 = vadd.f32 %v947_v23, %v946_v39  ;;  %v1080_v44 = vmul.f32 %v1428_v40, %v1428_v40  ;;  %v951_v51 = vsel %vm873_vm2, %v1428_v40, 0.0  ;;  %907 = vst.msk [vmem:[%s2618_s4 + $0x108] sm:$0xff] %vm873_vm2, %v2103_v14  ;;  %v2114_v18 = vpop.f32.mrb[1].mxu1 }
  0xec   :  { %880 = vst.msk [vmem:[%s2618_s4 + $0x30] sm:$0xff] %vm873_vm2, %v584_v42  ;;  %v949_v45 = vsel %vm873_vm2, %v584_v42, 0.0  ;;  %v1079_v47 = vmul.f32 %v584_v42, %v584_v42  ;;  %906 = vst.msk [vmem:[%s2618_s4 + $0x100] sm:$0xff] %vm873_vm2, %v2114_v18 }
  0xed   :  { %v950_v49 = vadd.f32 %v949_v45, %v948_v43  ;;  %v1147_v50 = vadd.f32 %v1146_v38, %v1145_v41  ;;  %v1150_v59 = vsel %vm873_vm2, %v1080_v44, 0.0 }
  0xee   :  { %v1148_v52 = vsel %vm873_vm2, %v1079_v47, 0.0  ;;  %v1431_v54 = vpop.f32.mrb[8].mxu0  ;;  %v2129_v30 = vpop.f32.mrb[2].mxu1 }
  0xef   :  { %v1149_v55 = vadd.f32 %v1148_v52, %v1147_v50  ;;  %883 = vst.msk [vmem:[%s2618_s4 + $0x48] sm:$0xff] %vm873_vm2, %v1431_v54  ;;  %v594_v56 = vpop.f32.mrb[9].mxu0  ;;  %v952_v57 = vadd.f32 %v951_v51, %v950_v49  ;;  %v1082_v60 = vmul.f32 %v1431_v54, %v1431_v54  ;;  %v955_v5 = vsel %vm873_vm2, %v1431_v54, 0.0  ;;  %909 = vst.msk [vmem:[%s2618_s4 + $0x118] sm:$0xff] %vm873_vm2, %v2129_v30  ;;  %v2140_v35 = vpop.f32.mrb[3].mxu1 }
  0xf0   :  { %882 = vst.msk [vmem:[%s2618_s4 + $0x40] sm:$0xff] %vm873_vm2, %v594_v56  ;;  %v953_v63 = vsel %vm873_vm2, %v594_v56, 0.0  ;;  %v1081_v0 = vmul.f32 %v594_v56, %v594_v56  ;;  %908 = vst.msk [vmem:[%s2618_s4 + $0x110] sm:$0xff] %vm873_vm2, %v2140_v35 }
  0xf1   :  { %v954_v2 = vadd.f32 %v953_v63, %v952_v57  ;;  %v1151_v3 = vadd.f32 %v1150_v59, %v1149_v55  ;;  %v1154_v46 = vsel %vm873_vm2, %v1082_v60, 0.0 }
  0xf2   :  { %v1152_v6 = vsel %vm873_vm2, %v1081_v0, 0.0  ;;  %v1434_v4 = vpop.f32.mrb[10].mxu0  ;;  %v2155_v41 = vpop.f32.mrb[4].mxu1 }
  0xf3   :  { %v1153_v8 = vadd.f32 %v1152_v6, %v1151_v3  ;;  %885 = vst.msk [vmem:[%s2618_s4 + $0x58] sm:$0xff] %vm873_vm2, %v1434_v4  ;;  %v604_v48 = vpop.f32.mrb[11].mxu0  ;;  %v956_v10 = vadd.f32 %v955_v5, %v954_v2  ;;  %v1084_v53 = vmul.f32 %v1434_v4, %v1434_v4  ;;  %v959_v11 = vsel %vm873_vm2, %v1434_v4, 0.0  ;;  %911 = vst.msk [vmem:[%s2618_s4 + $0x128] sm:$0xff] %vm873_vm2, %v2155_v41  ;;  %v2166_v44 = vpop.f32.mrb[5].mxu1 }
  0xf4   :  { %884 = vst.msk [vmem:[%s2618_s4 + $0x50] sm:$0xff] %vm873_vm2, %v604_v48  ;;  %v957_v58 = vsel %vm873_vm2, %v604_v48, 0.0  ;;  %v1083_v1 = vmul.f32 %v604_v48, %v604_v48  ;;  %910 = vst.msk [vmem:[%s2618_s4 + $0x120] sm:$0xff] %vm873_vm2, %v2166_v44 }
  0xf5   :  { %v958_v7 = vadd.f32 %v957_v58, %v956_v10  ;;  %v1155_v9 = vadd.f32 %v1154_v46, %v1153_v8  ;;  %v1158_v19 = vsel %vm873_vm2, %v1084_v53, 0.0 }
  0xf6   :  { %v1156_v12 = vsel %vm873_vm2, %v1083_v1, 0.0  ;;  %v1437_v13 = vpop.f32.mrb[12].mxu0  ;;  %v2181_v57 = vpop.f32.mrb[6].mxu1 }
  0xf7   :  { %v1157_v15 = vadd.f32 %v1156_v12, %v1155_v9  ;;  %887 = vst.msk [vmem:[%s2618_s4 + $0x68] sm:$0xff] %vm873_vm2, %v1437_v13  ;;  %v614_v16 = vpop.f32.mrb[13].mxu0  ;;  %v960_v17 = vadd.f32 %v959_v11, %v958_v7  ;;  %v1086_v20 = vmul.f32 %v1437_v13, %v1437_v13  ;;  %v963_v29 = vsel %vm873_vm2, %v1437_v13, 0.0  ;;  %913 = vst.msk [vmem:[%s2618_s4 + $0x138] sm:$0xff] %vm873_vm2, %v2181_v57  ;;  %v2192_v0 = vpop.f32.mrb[7].mxu1 }
  0xf8   :  { %886 = vst.msk [vmem:[%s2618_s4 + $0x60] sm:$0xff] %vm873_vm2, %v614_v16  ;;  %v961_v21 = vsel %vm873_vm2, %v614_v16, 0.0  ;;  %v1085_v24 = vmul.f32 %v614_v16, %v614_v16  ;;  %912 = vst.msk [vmem:[%s2618_s4 + $0x130] sm:$0xff] %vm873_vm2, %v2192_v0 }
  0xf9   :  { %v962_v25 = vadd.f32 %v961_v21, %v960_v17  ;;  %v1159_v28 = vadd.f32 %v1158_v19, %v1157_v15  ;;  %v1162_v36 = vsel %vm873_vm2, %v1086_v20, 0.0 }
  0xfa   :  { %v1160_v61 = vsel %vm873_vm2, %v1085_v24, 0.0  ;;  %v1440_v22 = vpop.f32.mrb[14].mxu0  ;;  %v2207_v53 = vpop.f32.mrb[8].mxu1 }
  0xfb   :  { %v1161_v31 = vadd.f32 %v1160_v61, %v1159_v28  ;;  %889 = vst.msk [vmem:[%s2618_s4 + $0x78] sm:$0xff] %vm873_vm2, %v1440_v22  ;;  %v624_v32 = vpop.f32.mrb[15].mxu0  ;;  %v964_v34 = vadd.f32 %v963_v29, %v962_v25  ;;  %v1088_v26 = vmul.f32 %v1440_v22, %v1440_v22  ;;  %v967_v23 = vsel %vm873_vm2, %v1440_v22, 0.0  ;;  %915 = vst.msk [vmem:[%s2618_s4 + $0x148] sm:$0xff] %vm873_vm2, %v2207_v53  ;;  %v2218_v9 = vpop.f32.mrb[9].mxu1 }
  0xfc   :  { %888 = vst.msk [vmem:[%s2618_s4 + $0x70] sm:$0xff] %vm873_vm2, %v624_v32  ;;  %v965_v37 = vsel %vm873_vm2, %v624_v32, 0.0  ;;  %v1087_v27 = vmul.f32 %v624_v32, %v624_v32  ;;  %914 = vst.msk [vmem:[%s2618_s4 + $0x140] sm:$0xff] %vm873_vm2, %v2218_v9 }
  0xfd   :  { %v966_v39 = vadd.f32 %v965_v37, %v964_v34  ;;  %v1163_v62 = vadd.f32 %v1162_v36, %v1161_v31  ;;  %v1166_v45 = vsel %vm873_vm2, %v1088_v26, 0.0 }
  0xfe   :  { %v1164_v33 = vsel %vm873_vm2, %v1087_v27, 0.0  ;;  %v1443_v40 = vpop.f32.mrb[16].mxu0  ;;  %v2233_v24 = vpop.f32.mrb[10].mxu1 }
  0xff   :  { %v1165_v42 = vadd.f32 %v1164_v33, %v1163_v62  ;;  %891 = vst.msk [vmem:[%s2618_s4 + $0x88] sm:$0xff] %vm873_vm2, %v1443_v40  ;;  %v634_v43 = vpop.f32.mrb[17].mxu0  ;;  %v968_v38 = vadd.f32 %v967_v23, %v966_v39  ;;  %v1090_v47 = vmul.f32 %v1443_v40, %v1443_v40  ;;  %v971_v54 = vsel %vm873_vm2, %v1443_v40, 0.0  ;;  %917 = vst.msk [vmem:[%s2618_s4 + $0x158] sm:$0xff] %vm873_vm2, %v2233_v24  ;;  %v2244_v61 = vpop.f32.mrb[11].mxu1 }
 0x100   :  { %890 = vst.msk [vmem:[%s2618_s4 + $0x80] sm:$0xff] %vm873_vm2, %v634_v43  ;;  %v969_v49 = vsel %vm873_vm2, %v634_v43, 0.0  ;;  %v1089_v50 = vmul.f32 %v634_v43, %v634_v43  ;;  %916 = vst.msk [vmem:[%s2618_s4 + $0x150] sm:$0xff] %vm873_vm2, %v2244_v61 }
 0x101   :  { %v970_v51 = vadd.f32 %v969_v49, %v968_v38  ;;  %v1167_v52 = vadd.f32 %v1166_v45, %v1165_v42  ;;  %v1170_v2 = vsel %vm873_vm2, %v1090_v47, 0.0 }
 0x102   :  { %v1168_v55 = vsel %vm873_vm2, %v1089_v50, 0.0  ;;  %v1446_v56 = vpop.f32.mrb[18].mxu0 }
 0x103   :  { %v1169_v59 = vadd.f32 %v1168_v55, %v1167_v52  ;;  %893 = vst.msk [vmem:[%s2618_s4 + $0x98] sm:$0xff] %vm873_vm2, %v1446_v56  ;;  %v644_v60 = vpop.f32.mrb[19].mxu0  ;;  %v972_v63 = vadd.f32 %v971_v54, %v970_v51  ;;  %v1092_v3 = vmul.f32 %v1446_v56, %v1446_v56  ;;  %v975_v48 = vsel %vm873_vm2, %v1446_v56, 0.0 }
 0x104   :  { %892 = vst.msk [vmem:[%s2618_s4 + $0x90] sm:$0xff] %vm873_vm2, %v644_v60  ;;  %v973_v5 = vsel %vm873_vm2, %v644_v60, 0.0  ;;  %v1091_v6 = vmul.f32 %v644_v60, %v644_v60 }
 0x105   :  { %v974_v4 = vadd.f32 %v973_v5, %v972_v63  ;;  %v1171_v8 = vadd.f32 %v1170_v2, %v1169_v59  ;;  %v1174_v11 = vsel %vm873_vm2, %v1092_v3, 0.0 }
 0x106   :  { %v1172_v10 = vsel %vm873_vm2, %v1091_v6, 0.0  ;;  %v1449_v46 = vpop.f32.mrb[20].mxu0 }
 0x107   :  { %v1173_v58 = vadd.f32 %v1172_v10, %v1171_v8  ;;  %895 = vst.msk [vmem:[%s2618_s4 + $0xa8] sm:$0xff] %vm873_vm2, %v1449_v46  ;;  %v654_v1 = vpop.f32.mrb[21].mxu0  ;;  %v976_v7 = vadd.f32 %v975_v48, %v974_v4  ;;  %v1094_v12 = vmul.f32 %v1449_v46, %v1449_v46  ;;  %v979_v19 = vsel %vm873_vm2, %v1449_v46, 0.0 }
 0x108   :  { %894 = vst.msk [vmem:[%s2618_s4 + $0xa0] sm:$0xff] %vm873_vm2, %v654_v1  ;;  %v977_v13 = vsel %vm873_vm2, %v654_v1, 0.0  ;;  %v1093_v15 = vmul.f32 %v654_v1, %v654_v1 }
 0x109   :  { %v978_v16 = vadd.f32 %v977_v13, %v976_v7  ;;  %v1175_v17 = vadd.f32 %v1174_v11, %v1173_v58  ;;  %v1178_v22 = vsel %vm873_vm2, %v1094_v12, 0.0  ;;  %v2259_v62 = vpop.f32.mrb[12].mxu1 }
 0x10a   :  { %v1176_v20 = vsel %vm873_vm2, %v1093_v15, 0.0  ;;  %v1452_v21 = vpop.f32.mrb[22].mxu0  ;;  %919 = vst.msk [vmem:[%s2618_s4 + $0x168] sm:$0xff] %vm873_vm2, %v2259_v62  ;;  %v2270_v42 = vpop.f32.mrb[13].mxu1 }
 0x10b   :  { %v1177_v25 = vadd.f32 %v1176_v20, %v1175_v17  ;;  %897 = vst.msk [vmem:[%s2618_s4 + $0xb8] sm:$0xff] %vm873_vm2, %v1452_v21  ;;  %v664_v28 = vpop.f32.mrb[23].mxu0  ;;  %v980_v29 = vadd.f32 %v979_v19, %v978_v16  ;;  %v1096_v31 = vmul.f32 %v1452_v21, %v1452_v21  ;;  %v983_v37 = vsel %vm873_vm2, %v1452_v21, 0.0  ;;  %918 = vst.msk [vmem:[%s2618_s4 + $0x160] sm:$0xff] %vm873_vm2, %v2270_v42 }
 0x10c   :  { %896 = vst.msk [vmem:[%s2618_s4 + $0xb0] sm:$0xff] %vm873_vm2, %v664_v28  ;;  %v981_v32 = vsel %vm873_vm2, %v664_v28, 0.0  ;;  %v1095_v34 = vmul.f32 %v664_v28, %v664_v28 }
 0x10d   :  { %v982_v36 = vadd.f32 %v981_v32, %v980_v29  ;;  %v1179_v26 = vadd.f32 %v1178_v22, %v1177_v25  ;;  %v1182_v43 = vsel %vm873_vm2, %v1096_v31, 0.0  ;;  %v2285_v55 = vpop.f32.mrb[14].mxu1 }
 0x10e   :  { %v1180_v27 = vsel %vm873_vm2, %v1095_v34, 0.0  ;;  %v1455_v39 = vpop.f32.mrb[24].mxu0  ;;  %921 = vst.msk [vmem:[%s2618_s4 + $0x178] sm:$0xff] %vm873_vm2, %v2285_v55  ;;  %v2296_v63 = vpop.f32.mrb[15].mxu1  ;;  %v1105_v34 = vmul.f32 %v2114_v18, %v2114_v18 }
 0x10f   :  { %v1181_v23 = vadd.f32 %v1180_v27, %v1179_v26  ;;  %899 = vst.msk [vmem:[%s2618_s4 + $0xc8] sm:$0xff] %vm873_vm2, %v1455_v39  ;;  %v674_v33 = vpop.f32.mrb[25].mxu0  ;;  %v984_v40 = vadd.f32 %v983_v37, %v982_v36  ;;  %v1098_v38 = vmul.f32 %v1455_v39, %v1455_v39  ;;  %v987_v51 = vsel %vm873_vm2, %v1455_v39, 0.0  ;;  %920 = vst.msk [vmem:[%s2618_s4 + $0x170] sm:$0xff] %vm873_vm2, %v2296_v63 }
 0x110   :  { %898 = vst.msk [vmem:[%s2618_s4 + $0xc0] sm:$0xff] %vm873_vm2, %v674_v33  ;;  %v985_v45 = vsel %vm873_vm2, %v674_v33, 0.0  ;;  %v1097_v47 = vmul.f32 %v674_v33, %v674_v33 }
 0x111   :  { %v986_v49 = vadd.f32 %v985_v45, %v984_v40  ;;  %v1183_v50 = vadd.f32 %v1182_v43, %v1181_v23  ;;  %v1186_v2 = vsel %vm873_vm2, %v1098_v38, 0.0  ;;  %v2311_v58 = vpop.f32.mrb[16].mxu1  ;;  %v1001_v38 = vsel %vm873_vm2, %v2114_v18, 0.0 }
 0x112   :  { %v1184_v52 = vsel %vm873_vm2, %v1097_v47, 0.0  ;;  %v1458_v54 = vpop.f32.mrb[26].mxu0  ;;  %923 = vst.msk [vmem:[%s2618_s4 + $0x188] sm:$0xff] %vm873_vm2, %v2311_v58  ;;  %v2322_v12 = vpop.f32.mrb[17].mxu1  ;;  %v1107_v18 = vmul.f32 %v2140_v35, %v2140_v35 }
 0x113   :  { %v1185_v56 = vadd.f32 %v1184_v52, %v1183_v50  ;;  %901 = vst.msk [vmem:[%s2618_s4 + $0xd8] sm:$0xff] %vm873_vm2, %v1458_v54  ;;  %v684_v59 = vpop.f32.mrb[27].mxu0  ;;  %v988_v60 = vadd.f32 %v987_v51, %v986_v49  ;;  %v1100_v3 = vmul.f32 %v1458_v54, %v1458_v54  ;;  %v991_v48 = vsel %vm873_vm2, %v1458_v54, 0.0  ;;  %922 = vst.msk [vmem:[%s2618_s4 + $0x180] sm:$0xff] %vm873_vm2, %v2322_v12 }
 0x114   :  { %900 = vst.msk [vmem:[%s2618_s4 + $0xd0] sm:$0xff] %vm873_vm2, %v684_v59  ;;  %v989_v5 = vsel %vm873_vm2, %v684_v59, 0.0  ;;  %v1099_v6 = vmul.f32 %v684_v59, %v684_v59  ;;  %v1106_v52 = vmul.f32 %v2103_v14, %v2103_v14  ;;  %v1200_v54 = vsel %vm873_vm2, %v1105_v34, 0.0 }
 0x115   :  { %v990_v4 = vadd.f32 %v989_v5, %v988_v60  ;;  %v1187_v8 = vadd.f32 %v1186_v2, %v1185_v56  ;;  %v1190_v13 = vsel %vm873_vm2, %v1100_v3, 0.0  ;;  %v2337_v29 = vpop.f32.mrb[18].mxu1  ;;  %v1003_v60 = vsel %vm873_vm2, %v2103_v14, 0.0 }
 0x116   :  { %v1188_v10 = vsel %vm873_vm2, %v1099_v6, 0.0  ;;  %v1461_v46 = vpop.f32.mrb[28].mxu0  ;;  %925 = vst.msk [vmem:[%s2618_s4 + $0x198] sm:$0xff] %vm873_vm2, %v2337_v29  ;;  %v2350_v36 = vpop.f32.mrb[19].mxu1  ;;  %v1005_v2 = vsel %vm873_vm2, %v2140_v35, 0.0  ;;  %v1108_v14 = vmul.f32 %v2129_v30, %v2129_v30  ;;  %v1109_v35 = vmul.f32 %v2166_v44, %v2166_v44 }
 0x117   :  { %v1189_v1 = vadd.f32 %v1188_v10, %v1187_v8  ;;  %903 = vst.msk [vmem:[%s2618_s4 + $0xe8] sm:$0xff] %vm873_vm2, %v1461_v46  ;;  %v694_v7 = vpop.f32.mrb[29].mxu0  ;;  %v992_v11 = vadd.f32 %v991_v48, %v990_v4  ;;  %v1102_v15 = vmul.f32 %v1461_v46, %v1461_v46  ;;  %v995_v21 = vsel %vm873_vm2, %v1461_v46, 0.0  ;;  %924 = vst.msk [vmem:[%s2618_s4 + $0x190] sm:$0xff] %vm873_vm2, %v2350_v36 }
 0x118   :  { %902 = vst.msk [vmem:[%s2618_s4 + $0xe0] sm:$0xff] %vm873_vm2, %v694_v7  ;;  %v993_v16 = vsel %vm873_vm2, %v694_v7, 0.0  ;;  %v1101_v17 = vmul.f32 %v694_v7, %v694_v7  ;;  %v1202_v8 = vsel %vm873_vm2, %v1106_v52, 0.0  ;;  %v1204_v48 = vsel %vm873_vm2, %v1107_v18, 0.0 }
 0x119   :  { %v994_v19 = vadd.f32 %v993_v16, %v992_v11  ;;  %v1191_v20 = vadd.f32 %v1190_v13, %v1189_v1  ;;  %v1194_v26 = vsel %vm873_vm2, %v1102_v15, 0.0  ;;  %v2367_v45 = vpop.f32.mrb[20].mxu1  ;;  %v1007_v1 = vsel %vm873_vm2, %v2129_v30, 0.0 }
 0x11a   :  { %v1192_v25 = vsel %vm873_vm2, %v1101_v17, 0.0  ;;  %v1464_v28 = vpop.f32.mrb[30].mxu0  ;;  %927 = vst.msk [vmem:[%s2618_s4 + $0x1a8] sm:$0xff] %vm873_vm2, %v2367_v45  ;;  %v2374_v50 = vpop.f32.mrb[21].mxu1  ;;  %v1009_v7 = vsel %vm873_vm2, %v2166_v44, 0.0  ;;  %v1206_v17 = vsel %vm873_vm2, %v1108_v14, 0.0  ;;  %v1110_v30 = vmul.f32 %v2155_v41, %v2155_v41 }
 0x11b   :  { %v1193_v22 = vadd.f32 %v1192_v25, %v1191_v20  ;;  %905 = vst.msk [vmem:[%s2618_s4 + $0xf8] sm:$0xff] %vm873_vm2, %v1464_v28  ;;  %v704_v31 = vpop.f32.mrb[31].mxu0  ;;  %v996_v32 = vadd.f32 %v995_v21, %v994_v19  ;;  %v1104_v37 = vmul.f32 %v1464_v28, %v1464_v28  ;;  %v999_v40 = vsel %vm873_vm2, %v1464_v28, 0.0  ;;  %926 = vst.msk [vmem:[%s2618_s4 + $0x1a0] sm:$0xff] %vm873_vm2, %v2374_v50 }
 0x11c   :  { %904 = vst.msk [vmem:[%s2618_s4 + $0xf0] sm:$0xff] %vm873_vm2, %v704_v31  ;;  %v997_v27 = vsel %vm873_vm2, %v704_v31, 0.0  ;;  %v1103_v39 = vmul.f32 %v704_v31, %v704_v31  ;;  %v1208_v19 = vsel %vm873_vm2, %v1109_v35, 0.0  ;;  %v1111_v44 = vmul.f32 %v2192_v0, %v2192_v0 }
 0x11d   :  { %v998_v23 = vadd.f32 %v997_v27, %v996_v32  ;;  %v1195_v33 = vadd.f32 %v1194_v26, %v1193_v22  ;;  %v1198_v51 = vsel %vm873_vm2, %v1104_v37, 0.0  ;;  %v2391_v3 = vpop.f32.mrb[22].mxu1  ;;  %v1011_v25 = vsel %vm873_vm2, %v2155_v41, 0.0 }
 0x11e   :  { %v1196_v43 = vsel %vm873_vm2, %v1103_v39, 0.0  ;;  %929 = vst.msk [vmem:[%s2618_s4 + $0x1b8] sm:$0xff] %vm873_vm2, %v2391_v3  ;;  %v2398_v4 = vpop.f32.mrb[23].mxu1  ;;  %v1013_v28 = vsel %vm873_vm2, %v2192_v0, 0.0  ;;  %v1210_v26 = vsel %vm873_vm2, %v1110_v30, 0.0  ;;  %v1112_v41 = vmul.f32 %v2181_v57, %v2181_v57 }
 0x11f   :  { %v1000_v47 = vadd.f32 %v999_v40, %v998_v23  ;;  %v1197_v49 = vadd.f32 %v1196_v43, %v1195_v33  ;;  %928 = vst.msk [vmem:[%s2618_s4 + $0x1b0] sm:$0xff] %vm873_vm2, %v2398_v4  ;;  %v1212_v37 = vsel %vm873_vm2, %v1111_v44, 0.0  ;;  %v1113_v0 = vmul.f32 %v2218_v9, %v2218_v9 }
 0x120   :  { %v1015_v23 = vsel %vm873_vm2, %v2181_v57, 0.0  ;;  %v1017_v33 = vsel %vm873_vm2, %v2218_v9, 0.0  ;;  %v1114_v57 = vmul.f32 %v2207_v53, %v2207_v53  ;;  %v1115_v9 = vmul.f32 %v2244_v61, %v2244_v61 }
 0x121   :  { %v1199_v56 = vadd.f32 %v1198_v51, %v1197_v49  ;;  %v1002_v59 = vadd.f32 %v1001_v38, %v1000_v47  ;;  %v2415_v11 = vpop.f32.mrb[24].mxu1  ;;  %v1214_v49 = vsel %vm873_vm2, %v1112_v41, 0.0  ;;  %v1216_v51 = vsel %vm873_vm2, %v1113_v0, 0.0 }
 0x122   :  { %931 = vst.msk [vmem:[%s2618_s4 + $0x1c8] sm:$0xff] %vm873_vm2, %v2415_v11  ;;  %v2422_v16 = vpop.f32.mrb[25].mxu1  ;;  %v1019_v18 = vsel %vm873_vm2, %v2207_v53, 0.0  ;;  %v1116_v53 = vmul.f32 %v2233_v24, %v2233_v24  ;;  %v1023_v35 = vsel %vm873_vm2, %v2233_v24, 0.0  ;;  %v1027_v24 = vsel %vm873_vm2, %v2259_v62, 0.0 }
 0x123   :  { %v1201_v5 = vadd.f32 %v1200_v54, %v1199_v56  ;;  %v1004_v6 = vadd.f32 %v1003_v60, %v1002_v59  ;;  %930 = vst.msk [vmem:[%s2618_s4 + $0x1c0] sm:$0xff] %vm873_vm2, %v2422_v16  ;;  %v1021_v56 = vsel %vm873_vm2, %v2244_v61, 0.0  ;;  %v1117_v61 = vmul.f32 %v2270_v42, %v2270_v42 }
 0x125   :  { %v1006_v10 = vadd.f32 %v1005_v2, %v1004_v6  ;;  %v1203_v46 = vadd.f32 %v1202_v8, %v1201_v5  ;;  %v2439_v22 = vpop.f32.mrb[26].mxu1  ;;  %v1218_v6 = vsel %vm873_vm2, %v1114_v57, 0.0  ;;  %v1220_v8 = vsel %vm873_vm2, %v1115_v9, 0.0 }
 0x126   :  { %933 = vst.msk [vmem:[%s2618_s4 + $0x1d8] sm:$0xff] %vm873_vm2, %v2439_v22  ;;  %v2446_v34 = vpop.f32.mrb[27].mxu1 }
 0x127   :  { %v1205_v13 = vadd.f32 %v1204_v48, %v1203_v46  ;;  %v1008_v15 = vadd.f32 %v1007_v1, %v1006_v10  ;;  %932 = vst.msk [vmem:[%s2618_s4 + $0x1d0] sm:$0xff] %vm873_vm2, %v2446_v34  ;;  %v1025_v10 = vsel %vm873_vm2, %v2270_v42, 0.0  ;;  %v1029_v42 = vsel %vm873_vm2, %v2296_v63, 0.0 }
 0x129   :  { %v1010_v20 = vadd.f32 %v1009_v7, %v1008_v15  ;;  %v1207_v21 = vadd.f32 %v1206_v17, %v1205_v13  ;;  %v2463_v40 = vpop.f32.mrb[28].mxu1  ;;  %v1222_v7 = vsel %vm873_vm2, %v1116_v53, 0.0  ;;  %v1118_v13 = vmul.f32 %v2259_v62, %v2259_v62 }
 0x12a   :  { %935 = vst.msk [vmem:[%s2618_s4 + $0x1e8] sm:$0xff] %vm873_vm2, %v2463_v40  ;;  %v2470_v47 = vpop.f32.mrb[29].mxu1  ;;  %v1224_v15 = vsel %vm873_vm2, %v1117_v61, 0.0  ;;  %v1119_v17 = vmul.f32 %v2296_v63, %v2296_v63  ;;  %v1031_v62 = vsel %vm873_vm2, %v2285_v55, 0.0  ;;  %v1033_v63 = vsel %vm873_vm2, %v2322_v12, 0.0 }
 0x12b   :  { %v1209_v31 = vadd.f32 %v1208_v19, %v1207_v21  ;;  %v1012_v32 = vadd.f32 %v1011_v25, %v1010_v20  ;;  %934 = vst.msk [vmem:[%s2618_s4 + $0x1e0] sm:$0xff] %vm873_vm2, %v2470_v47  ;;  %v1226_v21 = vsel %vm873_vm2, %v1118_v13, 0.0  ;;  %v1120_v25 = vmul.f32 %v2285_v55, %v2285_v55 }
 0x12c   :  { %v1035_v55 = vsel %vm873_vm2, %v2311_v58, 0.0 }
 0x12d   :  { %v1014_v27 = vadd.f32 %v1013_v28, %v1012_v32  ;;  %v1211_v39 = vadd.f32 %v1210_v26, %v1209_v31  ;;  %v2487_v59 = vpop.f32.mrb[30].mxu1  ;;  %v1228_v28 = vsel %vm873_vm2, %v1119_v17, 0.0  ;;  %v1121_v31 = vmul.f32 %v2322_v12, %v2322_v12 }
 0x12e   :  { %937 = vst.msk [vmem:[%s2618_s4 + $0x1f8] sm:$0xff] %vm873_vm2, %v2487_v59  ;;  %v2494_v5 = vpop.f32.mrb[31].mxu1  ;;  %v1230_v0 = vsel %vm873_vm2, %v1120_v25, 0.0  ;;  %v1037_v12 = vsel %vm873_vm2, %v2350_v36, 0.0 }
 0x12f   :  { %v1213_v43 = vadd.f32 %v1212_v37, %v1211_v39  ;;  %v1016_v38 = vadd.f32 %v1015_v23, %v1014_v27  ;;  %936 = vst.msk [vmem:[%s2618_s4 + $0x1f0] sm:$0xff] %vm873_vm2, %v2494_v5  ;;  %v1122_v27 = vmul.f32 %v2311_v58, %v2311_v58  ;;  %v1232_v39 = vsel %vm873_vm2, %v1121_v31, 0.0 }
 0x130   :  { %v1123_v23 = vmul.f32 %v2350_v36, %v2350_v36  ;;  %v1039_v58 = vsel %vm873_vm2, %v2337_v29, 0.0  ;;  %v1041_v36 = vsel %vm873_vm2, %v2374_v50, 0.0 }
 0x131   :  { %v1018_v52 = vadd.f32 %v1017_v33, %v1016_v38  ;;  %v1215_v54 = vadd.f32 %v1214_v49, %v1213_v43  ;;  %v1234_v57 = vsel %vm873_vm2, %v1122_v27, 0.0 }
 0x132   :  { %v1236_v9 = vsel %vm873_vm2, %v1123_v23, 0.0 }
 0x133   :  { %v1217_v60 = vadd.f32 %v1216_v51, %v1215_v54  ;;  %v1020_v2 = vadd.f32 %v1019_v18, %v1018_v52  ;;  %v1124_v51 = vmul.f32 %v2337_v29, %v2337_v29  ;;  %v1125_v52 = vmul.f32 %v2374_v50, %v2374_v50 }
 0x134   :  { %v1043_v29 = vsel %vm873_vm2, %v2367_v45, 0.0  ;;  %v1045_v50 = vsel %vm873_vm2, %v2398_v4, 0.0 }
 0x135   :  { %v1022_v14 = vadd.f32 %v1021_v56, %v1020_v2  ;;  %v1219_v48 = vadd.f32 %v1218_v6, %v1217_v60  ;;  %v1238_v2 = vsel %vm873_vm2, %v1124_v51, 0.0  ;;  %v1126_v6 = vmul.f32 %v2367_v45, %v2367_v45 }
 0x136   :  { %v1240_v53 = vsel %vm873_vm2, %v1125_v52, 0.0  ;;  %v1047_v45 = vsel %vm873_vm2, %v2391_v3, 0.0 }
 0x137   :  { %v1221_v46 = vadd.f32 %v1220_v8, %v1219_v48  ;;  %v1024_v1 = vadd.f32 %v1023_v35, %v1022_v14  ;;  %v1127_v8 = vmul.f32 %v2398_v4, %v2398_v4  ;;  %v1049_v4 = vsel %vm873_vm2, %v2422_v16, 0.0 }
 0x139   :  { %v1026_v30 = vadd.f32 %v1025_v10, %v1024_v1  ;;  %v1223_v19 = vadd.f32 %v1222_v7, %v1221_v46  ;;  %v1242_v10 = vsel %vm873_vm2, %v1126_v6, 0.0  ;;  %v1128_v46 = vmul.f32 %v2391_v3, %v2391_v3 }
 0x13a   :  { %v1244_v1 = vsel %vm873_vm2, %v1127_v8, 0.0  ;;  %v1129_v7 = vmul.f32 %v2422_v16, %v2422_v16  ;;  %v1051_v3 = vsel %vm873_vm2, %v2415_v11, 0.0  ;;  %v1053_v16 = vsel %vm873_vm2, %v2446_v34, 0.0 }
 0x13b   :  { %v1225_v44 = vadd.f32 %v1224_v15, %v1223_v19  ;;  %v1028_v20 = vadd.f32 %v1027_v24, %v1026_v30  ;;  %v1246_v19 = vsel %vm873_vm2, %v1128_v46, 0.0  ;;  %v1130_v24 = vmul.f32 %v2415_v11, %v2415_v11 }
 0x13c   :  { %v1055_v11 = vsel %vm873_vm2, %v2439_v22, 0.0 }
 0x13d   :  { %v1030_v32 = vadd.f32 %v1029_v42, %v1028_v20  ;;  %v1227_v26 = vadd.f32 %v1226_v21, %v1225_v44  ;;  %v1248_v42 = vsel %vm873_vm2, %v1129_v7, 0.0  ;;  %v1131_v44 = vmul.f32 %v2446_v34, %v2446_v34 }
 0x13e   :  { %v1250_v31 = vsel %vm873_vm2, %v1130_v24, 0.0  ;;  %v1057_v34 = vsel %vm873_vm2, %v2470_v47, 0.0 }
 0x13f   :  { %v1229_v41 = vadd.f32 %v1228_v28, %v1227_v26  ;;  %v1032_v37 = vadd.f32 %v1031_v62, %v1030_v32  ;;  %v1132_v32 = vmul.f32 %v2439_v22, %v2439_v22  ;;  %v1252_v26 = vsel %vm873_vm2, %v1131_v44, 0.0 }
 0x140   :  { %v1133_v62 = vmul.f32 %v2470_v47, %v2470_v47  ;;  %v1059_v22 = vsel %vm873_vm2, %v2463_v40, 0.0  ;;  %v1061_v47 = vsel %vm873_vm2, %v2494_v5, 0.0 }
 0x141   :  { %v1034_v33 = vadd.f32 %v1033_v63, %v1032_v37  ;;  %v1231_v43 = vadd.f32 %v1230_v0, %v1229_v41  ;;  %v1254_v27 = vsel %vm873_vm2, %v1132_v32, 0.0 }
 0x142   :  { %v1256_v23 = vsel %vm873_vm2, %v1133_v62, 0.0 }
 0x143   :  { %v1233_v38 = vadd.f32 %v1232_v39, %v1231_v43  ;;  %v1036_v49 = vadd.f32 %v1035_v55, %v1034_v33  ;;  %v1134_v39 = vmul.f32 %v2463_v40, %v2463_v40  ;;  %v1135_v33 = vmul.f32 %v2494_v5, %v2494_v5 }
 0x145   :  { %v1038_v54 = vadd.f32 %v1037_v12, %v1036_v49  ;;  %v1235_v18 = vadd.f32 %v1234_v57, %v1233_v38  ;;  %v1258_v49 = vsel %vm873_vm2, %v1134_v39, 0.0  ;;  %v1136_v57 = vmul.f32 %v2487_v59, %v2487_v59 }
 0x146   :  { %v1260_v51 = vsel %vm873_vm2, %v1135_v33, 0.0 }
 0x147   :  { %v1237_v56 = vadd.f32 %v1236_v9, %v1235_v18  ;;  %v1040_v60 = vadd.f32 %v1039_v58, %v1038_v54  ;;  %v1063_v54 = vsel %vm873_vm2, %v2487_v59, 0.0  ;;  %v1262_v40 = vsel %vm873_vm2, %v1136_v57, 0.0 }
 0x149   :  { %v1042_v61 = vadd.f32 %v1041_v36, %v1040_v60  ;;  %v1239_v14 = vadd.f32 %v1238_v2, %v1237_v56 }
 0x14b   :  { %v1241_v48 = vadd.f32 %v1240_v53, %v1239_v14  ;;  %v1044_v35 = vadd.f32 %v1043_v29, %v1042_v61 }
 0x14d   :  { %v1046_v13 = vadd.f32 %v1045_v50, %v1044_v35  ;;  %v1243_v15 = vadd.f32 %v1242_v10, %v1241_v48 }
 0x14f   :  { %v1245_v17 = vadd.f32 %v1244_v1, %v1243_v15  ;;  %v1048_v30 = vadd.f32 %v1047_v45, %v1046_v13 }
 0x151   :  { %v1050_v20 = vadd.f32 %v1049_v4, %v1048_v30  ;;  %v1247_v21 = vadd.f32 %v1246_v19, %v1245_v17 }
 0x153   :  { %v1249_v25 = vadd.f32 %v1248_v42, %v1247_v21  ;;  %v1052_v28 = vadd.f32 %v1051_v3, %v1050_v20 }
 0x155   :  { %v1054_v63 = vadd.f32 %v1053_v16, %v1052_v28  ;;  %v1251_v41 = vadd.f32 %v1250_v31, %v1249_v25 }
 0x157   :  { %v1253_v37 = vadd.f32 %v1252_v26, %v1251_v41  ;;  %v1056_v0 = vadd.f32 %v1055_v11, %v1054_v63 }
 0x159   :  { %v1058_v43 = vadd.f32 %v1057_v34, %v1056_v0  ;;  %v1255_v55 = vadd.f32 %v1254_v27, %v1253_v37 }
 0x15b   :  { %v1257_v12 = vadd.f32 %v1256_v23, %v1255_v55  ;;  %v1060_v38 = vadd.f32 %v1059_v22, %v1058_v43 }
 0x15d   :  { %v1062_v9 = vadd.f32 %v1061_v47, %v1060_v38  ;;  %v1259_v52 = vadd.f32 %v1258_v49, %v1257_v12 }
 0x15f   :  { %v1064_v18 = vadd.f32 %v1063_v54, %v1062_v9  ;;  %v1261_v58 = vadd.f32 %v1260_v51, %v1259_v52 }
 0x161   :  { %v1065_v36 = vrot.slane %v1064_v18, 4  ;;  %v1263_v5 = vadd.f32 %v1262_v40, %v1261_v58 }
 0x163   :  { %v1066_v56 = vadd.f32 %v1065_v36, %v1064_v18  ;;  %v1264_v60 = vrot.slane %v1263_v5, 4 }
 0x165   :  { %v1067_v2 = vrot.slane %v1066_v56, 2  ;;  %v1265_v6 = vadd.f32 %v1264_v60, %v1263_v5 }
 0x167   :  { %v1068_v53 = vadd.f32 %v1067_v2, %v1066_v56  ;;  %v1266_v8 = vrot.slane %v1265_v6, 2 }
 0x169   :  { %v1069_v61 = vrot.slane %v1068_v53, 1  ;;  %v1267_v14 = vadd.f32 %v1266_v8, %v1265_v6 }
 0x16b   :  { %v1070_v29 = vadd.f32 %v1069_v61, %v1068_v53  ;;  %v1268_v50 = vrot.slane %v1267_v14, 1 }
 0x16d   :  { %1072 = vst.msk [vmem:[%s2619_s5] sm:$0x1] %vm1071_vm3, %v1070_v29  ;;  %v1269_v59 = vadd.f32 %v1268_v50, %v1267_v14 }
 0x16f   :  { %1270 = vst.msk [vmem:[%s2620_s6] sm:$0x1] %vm1071_vm3, %v1269_v59 }

// kernel: ds_conv_forward.3
= control target key start
LH: loop header
LB: loop body
LE: loop exit
PB: predicated region body
PF: predicated region fallthrough
CT: control target
= control target key end

     0   :  { %s1647_s15 = smov 0   ;;  %s2788_s0 = inlined_call_operand.vmem [shape: f32[2,16,16,4], index: 0, kind: input, shape index: {}]   ;;  %s2789_s1 = inlined_call_operand.vmem [shape: f32[9,4], index: 1, kind: input, shape index: {}]   ;;  %s2790_s2 = inlined_call_operand.vmem [shape: f32[2,16,16,4], index: 2, kind: output, shape index: {0}]   ;;  %s2791_s3 = inlined_call_operand.vmem [shape: f32[2,1,4], index: 3, kind: output, shape index: {1}]   ;;  %s2792_s4 = inlined_call_operand.vmem [shape: f32[2,1,4], index: 4, kind: output, shape index: {2}]  }
   0x1 LB: > { %s1573_s16 = sadd.s32 4294967295, %s1619_s15   ;;  %p1577_p0 = scmp.ge.s32.totalorder %s1619_s15, 1  ;;  %s1619_s15 = sphi %s1647_s15, %s15_s15  }
   0x2   : > { %p167_p1 = scmp.lt.s32.totalorder %s1619_s15, 3 }
   0x4   : > { %p168_p2 = pnand %p1577_p0, %p167_p1 }
   0x5   : > { %vm215_vm0 = vcmask (!%p168_p2), 31744   ;;  %p1657_p3 = scmp.lt.s32.totalorder (!%p168_p2), %s1573_s16, 1  ;;  %v1621_v0 = vmov (!%p168_p2), 0.0   ;;  %v1831_v7 = vld [vmem:[%s2789_s1] ss:$0 sm:$0xff] (!%p168_p2)  ;;  %vm1364_vm1 = vcmask (!%p168_p2), 24576  }
   0x6   : > { %171 = sbr.rel (%p168_p2) target bundleno = 245 (0xf5), region = 28  ;;  %216 = vst.msk [vmem:[#allocation2] sm:$0xff] (!%p168_p2), %vm215_vm0, %v1621_v0  ;;  %217 = vst.msk [vmem:[#allocation2 + $0x8] sm:$0xff] (!%p168_p2), %vm215_vm0, %v1621_v0  ;;  %v1836_v8 = vld [vmem:[%s2789_s1 + $0x1] ss:$0 sm:$0xff] (!%p168_p2) }
   0x7   : > { %218 = vst.msk [vmem:[#allocation2 + $0x10] sm:$0xff] (!%p168_p2), %vm215_vm0, %v1621_v0  ;;  %219 = vst.msk [vmem:[#allocation2 + $0x18] sm:$0xff] (!%p168_p2), %vm215_vm0, %v1621_v0  ;;  %v1841_v9 = vld [vmem:[%s2789_s1 + $0x2] ss:$0 sm:$0xff] (!%p168_p2)  ;;  %v1864_v19 = vld [vmem:[%s2789_s1 + $0x3] ss:$0 sm:$0xff] (!%p168_p2) }
   0x8   : > { %220 = vst.msk [vmem:[#allocation2 + $0x20] sm:$0xff] (!%p168_p2), %vm215_vm0, %v1621_v0  ;;  %221 = vst.msk [vmem:[#allocation2 + $0x28] sm:$0xff] (!%p168_p2), %vm215_vm0, %v1621_v0  ;;  %v1872_v23 = vld [vmem:[%s2789_s1 + $0x4] ss:$0 sm:$0xff] (!%p168_p2)  ;;  %v1877_v24 = vld [vmem:[%s2789_s1 + $0x5] ss:$0 sm:$0xff] (!%p168_p2) }
   0x9   : > { %222 = vst.msk [vmem:[#allocation2 + $0x30] sm:$0xff] (!%p168_p2), %vm215_vm0, %v1621_v0  ;;  %223 = vst.msk [vmem:[#allocation2 + $0x38] sm:$0xff] (!%p168_p2), %vm215_vm0, %v1621_v0  ;;  %v1882_v25 = vld [vmem:[%s2789_s1 + $0x6] ss:$0 sm:$0xff] (!%p168_p2)  ;;  %v1890_v29 = vld [vmem:[%s2789_s1 + $0x7] ss:$0 sm:$0xff] (!%p168_p2) }
   0xa   : > { %224 = vst.msk [vmem:[#allocation2 + $0x40] sm:$0xff] (!%p168_p2), %vm215_vm0, %v1621_v0  ;;  %225 = vst.msk [vmem:[#allocation2 + $0x48] sm:$0xff] (!%p168_p2), %vm215_vm0, %v1621_v0  ;;  %v1909_v46 = vld [vmem:[%s2789_s1 + $0x8] ss:$0 sm:$0xff] (!%p168_p2) }
   0xb   : > { %226 = vst.msk [vmem:[#allocation2 + $0x50] sm:$0xff] (!%p168_p2), %vm215_vm0, %v1621_v0  ;;  %227 = vst.msk [vmem:[#allocation2 + $0x58] sm:$0xff] (!%p168_p2), %vm215_vm0, %v1621_v0 }
   0xc   : > { %228 = vst.msk [vmem:[#allocation2 + $0x60] sm:$0xff] (!%p168_p2), %vm215_vm0, %v1621_v0  ;;  %229 = vst.msk [vmem:[#allocation2 + $0x68] sm:$0xff] (!%p168_p2), %vm215_vm0, %v1621_v0 }
   0xd   : > { %230 = vst.msk [vmem:[#allocation2 + $0x70] sm:$0xff] %vm215_vm0, %v1621_v0  ;;  %231 = vst.msk [vmem:[#allocation2 + $0x78] sm:$0xff] %vm215_vm0, %v1621_v0  ;;  %s2795_s16 = smov (!%p1657_p3, %s1573_s16), 1  ;;  %v354_v20 = vld [vmem:[#allocation2 + $0x7] sm:$0xff] }
   0xe   : > { %232 = vst.msk [vmem:[#allocation2 + $0x80] sm:$0xff] %vm215_vm0, %v1621_v0  ;;  %233 = vst.msk [vmem:[#allocation2 + $0x88] sm:$0xff] %vm215_vm0, %v1621_v0  ;;  %s1593_s18 = sshll.u32 %s2795_s16, 8  ;;  %v455_v21 = vld [vmem:[#allocation2 + $0x8] sm:$0xff]  ;;  %v390_v26 = vmul.f32 %v1831_v7, %v354_v20  ;;  %v456_v31 = vld [vmem:[#allocation2 + $0x10] sm:$0xff]  ;;  %s211_s13 = scalar_lea.vmem %s2791_s3, %s2795_s16 }
   0xf   : > { %234 = vst.msk [vmem:[#allocation2 + $0x90] sm:$0xff] %vm215_vm0, %v1621_v0  ;;  %235 = vst.msk [vmem:[#allocation2 + $0x98] sm:$0xff] %vm215_vm0, %v1621_v0  ;;  %s1817_s21 = scalar_lea.vmem %s2788_s0, %s1593_s18  ;;  %v556_v22 = vld [vmem:[#allocation2 + $0x9] sm:$0xff]  ;;  %v491_v27 = vmul.f32 %v1836_v8, %v455_v21  ;;  %v557_v32 = vld [vmem:[#allocation2 + $0x11] sm:$0xff]  ;;  %v492_v34 = vmul.f32 %v1836_v8, %v456_v31  ;;  %s1981_s19 = scalar_lea.vmem %s2790_s2, %s1593_s18 }
  0x10   : > { %236 = vst.msk [vmem:[#allocation2 + $0xa0] sm:$0xff] %vm215_vm0, %v1621_v0  ;;  %237 = vst.msk [vmem:[#allocation2 + $0xa8] sm:$0xff] %vm215_vm0, %v1621_v0  ;;  %v288_v1 = vld [vmem:[%s1817_s21] sm:$0xff]  ;;  %v289_v2 = vld [vmem:[%s1817_s21 + $0x8] sm:$0xff]  ;;  %v592_v28 = vmul.f32 %v1841_v9, %v556_v22  ;;  %v593_v35 = vmul.f32 %v1841_v9, %v557_v32 }
  0x11   : > { %238 = vst.msk [vmem:[#allocation2 + $0xb0] sm:$0xff] %vm215_vm0, %v1621_v0  ;;  %239 = vst.msk [vmem:[#allocation2 + $0xb8] sm:$0xff] %vm215_vm0, %v1621_v0  ;;  %v290_v3 = vld [vmem:[%s1817_s21 + $0x10] sm:$0xff]  ;;  %v291_v4 = vld [vmem:[%s1817_s21 + $0x18] sm:$0xff]  ;;  %v523_v39 = vadd.f32 %v491_v27, %v390_v26 }
  0x12   : > { %240 = vst.msk [vmem:[#allocation2 + $0xc0] sm:$0xff] %vm215_vm0, %v1621_v0  ;;  %241 = vst.msk [vmem:[#allocation2 + $0xc8] sm:$0xff] %vm215_vm0, %v1621_v0  ;;  %v292_v5 = vld [vmem:[%s1817_s21 + $0x20] sm:$0xff]  ;;  %v293_v6 = vld [vmem:[%s1817_s21 + $0x28] sm:$0xff] }
  0x13   : > { %242 = vst.msk [vmem:[#allocation2 + $0xd0] sm:$0xff] %vm215_vm0, %v1621_v0  ;;  %243 = vst.msk [vmem:[#allocation2 + $0xd8] sm:$0xff] %vm215_vm0, %v1621_v0  ;;  %v294_v10 = vld [vmem:[%s1817_s21 + $0x30] sm:$0xff]  ;;  %v295_v11 = vld [vmem:[%s1817_s21 + $0x38] sm:$0xff]  ;;  %v624_v48 = vadd.f32 %v592_v28, %v523_v39 }
  0x14   : > { %244 = vst.msk [vmem:[#allocation2 + $0xe0] sm:$0xff] %vm215_vm0, %v1621_v0  ;;  %245 = vst.msk [vmem:[#allocation2 + $0xe8] sm:$0xff] %vm215_vm0, %v1621_v0  ;;  %v296_v12 = vld [vmem:[%s1817_s21 + $0x40] sm:$0xff]  ;;  %v297_v13 = vld [vmem:[%s1817_s21 + $0x48] sm:$0xff] }
  0x15   : > { %246 = vst.msk [vmem:[#allocation2 + $0xf0] sm:$0xff] %vm215_vm0, %v1621_v0  ;;  %247 = vst.msk [vmem:[#allocation2 + $0xf8] sm:$0xff] %vm215_vm0, %v1621_v0  ;;  %v298_v14 = vld [vmem:[%s1817_s21 + $0x50] sm:$0xff]  ;;  %v299_v15 = vld [vmem:[%s1817_s21 + $0x58] sm:$0xff] }
  0x16   : > { %248 = vst.msk [vmem:[#allocation2 + $0x100] sm:$0xff] %vm215_vm0, %v1621_v0  ;;  %249 = vst.msk [vmem:[#allocation2 + $0x108] sm:$0xff] %vm215_vm0, %v1621_v0  ;;  %v300_v16 = vld [vmem:[%s1817_s21 + $0x60] sm:$0xff]  ;;  %v301_v17 = vld [vmem:[%s1817_s21 + $0x68] sm:$0xff] }
  0x17   : > { %250 = vst.msk [vmem:[#allocation2 + $0x110] sm:$0xff] %vm215_vm0, %v1621_v0  ;;  %251 = vst.msk [vmem:[#allocation2 + $0x118] sm:$0xff] %vm215_vm0, %v1621_v0  ;;  %v302_v18 = vld [vmem:[%s1817_s21 + $0x70] sm:$0xff]  ;;  %v303_v36 = vld [vmem:[%s1817_s21 + $0x78] sm:$0xff] }
  0x18   : > { %252 = vst.msk [vmem:[#allocation2 + $0x120] sm:$0xff] %vm215_vm0, %v1621_v0  ;;  %253 = vst.msk [vmem:[#allocation2 + $0x128] sm:$0xff] %vm215_vm0, %v1621_v0  ;;  %v355_v30 = vld [vmem:[#allocation2 + $0xf] sm:$0xff]  ;;  %v304_v37 = vld [vmem:[%s1817_s21 + $0x80] sm:$0xff] }
  0x19   : > { %254 = vst.msk [vmem:[#allocation2 + $0x130] sm:$0xff] %vm215_vm0, %v1621_v0  ;;  %255 = vst.msk [vmem:[#allocation2 + $0x138] sm:$0xff] %vm215_vm0, %v1621_v0  ;;  %v391_v33 = vmul.f32 %v1831_v7, %v355_v30  ;;  %v305_v38 = vld [vmem:[%s1817_s21 + $0x88] sm:$0xff]  ;;  %v307_v39 = vld [vmem:[%s1817_s21 + $0x98] sm:$0xff] }
  0x1a   : > { %256 = vst.msk [vmem:[#allocation2 + $0x140] sm:$0xff] %vm215_vm0, %v1621_v0  ;;  %257 = vst.msk [vmem:[#allocation2 + $0x148] sm:$0xff] %vm215_vm0, %v1621_v0 }
  0x1b   : > { %258 = vst.msk [vmem:[#allocation2 + $0x150] sm:$0xff] %vm215_vm0, %v1621_v0  ;;  %259 = vst.msk [vmem:[#allocation2 + $0x158] sm:$0xff] %vm215_vm0, %v1621_v0  ;;  %v524_v47 = vadd.f32 %v492_v34, %v391_v33  ;;  %v306_v34 = vld [vmem:[%s1817_s21 + $0x90] sm:$0xff] }
  0x1c   : > { %260 = vst.msk [vmem:[#allocation2 + $0x160] sm:$0xff] %vm215_vm0, %v1621_v0  ;;  %261 = vst.msk [vmem:[#allocation2 + $0x168] sm:$0xff] %vm215_vm0, %v1621_v0 }
  0x1d   : > { %262 = vst.msk [vmem:[#allocation2 + $0x170] sm:$0xff] %vm215_vm0, %v1621_v0  ;;  %263 = vst.msk [vmem:[#allocation2 + $0x178] sm:$0xff] %vm215_vm0, %v1621_v0  ;;  %v625_v57 = vadd.f32 %v593_v35, %v524_v47 }
  0x1e   : > { %264 = vst.msk [vmem:[#allocation2 + $0x180] sm:$0xff] %vm215_vm0, %v1621_v0  ;;  %265 = vst.msk [vmem:[#allocation2 + $0x188] sm:$0xff] %vm215_vm0, %v1621_v0 }
  0x1f   : > { %266 = vst.msk [vmem:[#allocation2 + $0x190] sm:$0xff] %vm215_vm0, %v1621_v0  ;;  %267 = vst.msk [vmem:[#allocation2 + $0x198] sm:$0xff] %vm215_vm0, %v1621_v0 }
  0x20   : > { %268 = vst.msk [vmem:[#allocation2 + $0x1a0] sm:$0xff] %vm215_vm0, %v1621_v0  ;;  %269 = vst.msk [vmem:[#allocation2 + $0x1a8] sm:$0xff] %vm215_vm0, %v1621_v0 }
  0x21   : > { %270 = vst.msk [vmem:[#allocation2 + $0x1b0] sm:$0xff] %vm215_vm0, %v1621_v0  ;;  %271 = vst.msk [vmem:[#allocation2 + $0x1b8] sm:$0xff] %vm215_vm0, %v1621_v0 }
  0x22   : > { %272 = vst.msk [vmem:[#allocation2 + $0x1c0] sm:$0xff] %vm215_vm0, %v1621_v0  ;;  %273 = vst.msk [vmem:[#allocation2 + $0x1c8] sm:$0xff] %vm215_vm0, %v1621_v0 }
  0x23   : > { %274 = vst.msk [vmem:[#allocation2 + $0x1d0] sm:$0xff] %vm215_vm0, %v1621_v0  ;;  %275 = vst.msk [vmem:[#allocation2 + $0x1d8] sm:$0xff] %vm215_vm0, %v1621_v0 }
  0x24   : > { %276 = vst.msk [vmem:[#allocation2 + $0x1e0] sm:$0xff] %vm215_vm0, %v1621_v0  ;;  %277 = vst.msk [vmem:[#allocation2 + $0x1e8] sm:$0xff] %vm215_vm0, %v1621_v0 }
  0x25   : > { %278 = vst.msk [vmem:[#allocation2 + $0x1f0] sm:$0xff] %vm215_vm0, %v1621_v0  ;;  %279 = vst.msk [vmem:[#allocation2 + $0x1f8] sm:$0xff] %vm215_vm0, %v1621_v0 }
  0x26   : > { %280 = vst.msk [vmem:[#allocation2 + $0x200] sm:$0xff] %vm215_vm0, %v1621_v0  ;;  %281 = vst.msk [vmem:[#allocation2 + $0x208] sm:$0xff] %vm215_vm0, %v1621_v0 }
  0x27   : > { %282 = vst.msk [vmem:[#allocation2 + $0x210] sm:$0xff] %vm215_vm0, %v1621_v0  ;;  %283 = vst.msk [vmem:[#allocation2 + $0x218] sm:$0xff] %vm215_vm0, %v1621_v0 }
  0x28   : > { %284 = vst.msk [vmem:[#allocation2 + $0x220] sm:$0xff] %vm215_vm0, %v1621_v0  ;;  %285 = vst.msk [vmem:[#allocation2 + $0x228] sm:$0xff] %vm215_vm0, %v1621_v0 }
  0x29   : > { %286 = vst.msk [vmem:[#allocation2 + $0x230] sm:$0xff] %vm215_vm0, %v1621_v0  ;;  %287 = vst.msk [vmem:[#allocation2 + $0x238] sm:$0xff] %vm215_vm0, %v1621_v0 }
  0x2a   : > { %321 = vst.msk [vmem:[#allocation2 + $0x28] sm:$0xff] %vm215_vm0, %v288_v1  ;;  %322 = vst.msk [vmem:[#allocation2 + $0x30] sm:$0xff] %vm215_vm0, %v289_v2 }
  0x2b   : > { %323 = vst.msk [vmem:[#allocation2 + $0x48] sm:$0xff] %vm215_vm0, %v290_v3  ;;  %324 = vst.msk [vmem:[#allocation2 + $0x50] sm:$0xff] %vm215_vm0, %v291_v4 }
  0x2c   : > { %325 = vst.msk [vmem:[#allocation2 + $0x68] sm:$0xff] %vm215_vm0, %v292_v5  ;;  %326 = vst.msk [vmem:[#allocation2 + $0x70] sm:$0xff] %vm215_vm0, %v293_v6 }
  0x2d   : > { %327 = vst.msk [vmem:[#allocation2 + $0x88] sm:$0xff] %vm215_vm0, %v294_v10  ;;  %328 = vst.msk [vmem:[#allocation2 + $0x90] sm:$0xff] %vm215_vm0, %v295_v11 }
  0x2e   : > { %329 = vst.msk [vmem:[#allocation2 + $0xa8] sm:$0xff] %vm215_vm0, %v296_v12  ;;  %330 = vst.msk [vmem:[#allocation2 + $0xb0] sm:$0xff] %vm215_vm0, %v297_v13 }
  0x2f   : > { %331 = vst.msk [vmem:[#allocation2 + $0xc8] sm:$0xff] %vm215_vm0, %v298_v14  ;;  %332 = vst.msk [vmem:[#allocation2 + $0xd0] sm:$0xff] %vm215_vm0, %v299_v15 }
  0x30   : > { %333 = vst.msk [vmem:[#allocation2 + $0xe8] sm:$0xff] %vm215_vm0, %v300_v16  ;;  %334 = vst.msk [vmem:[#allocation2 + $0xf0] sm:$0xff] %vm215_vm0, %v301_v17 }
  0x31   : > { %335 = vst.msk [vmem:[#allocation2 + $0x108] sm:$0xff] %vm215_vm0, %v302_v18  ;;  %v657_v40 = vld [vmem:[#allocation2 + $0x27] sm:$0xff]  ;;  %336 = vst.msk [vmem:[#allocation2 + $0x110] sm:$0xff] %vm215_vm0, %v303_v36  ;;  %v658_v52 = vld [vmem:[#allocation2 + $0x2f] sm:$0xff] }
  0x32   : > { %v758_v41 = vld [vmem:[#allocation2 + $0x28] sm:$0xff]  ;;  %337 = vst.msk [vmem:[#allocation2 + $0x128] sm:$0xff] %vm215_vm0, %v304_v37  ;;  %338 = vst.msk [vmem:[#allocation2 + $0x130] sm:$0xff] %vm215_vm0, %v305_v38  ;;  %v693_v43 = vmul.f32 %v1864_v19, %v657_v40  ;;  %v759_v53 = vld [vmem:[#allocation2 + $0x30] sm:$0xff]  ;;  %v694_v58 = vmul.f32 %v1864_v19, %v658_v52  ;;  %v392_v5 = vmul.f32 %v1831_v7, %v657_v40 }
  0x33   : > { %v859_v42 = vld [vmem:[#allocation2 + $0x29] sm:$0xff]  ;;  %v794_v49 = vmul.f32 %v1872_v23, %v758_v41  ;;  %v860_v54 = vld [vmem:[#allocation2 + $0x31] sm:$0xff]  ;;  %v795_v59 = vmul.f32 %v1872_v23, %v759_v53  ;;  %v493_v6 = vmul.f32 %v1836_v8, %v758_v41  ;;  %v393_v26 = vmul.f32 %v1831_v7, %v658_v52  ;;  %339 = vst.msk [vmem:[#allocation2 + $0x148] sm:$0xff] %vm215_vm0, %v306_v34 }
  0x34   : > { %v1902_v44 = vld [vmem:[#allocation2 + $0x47] sm:$0xff]  ;;  %v895_v50 = vmul.f32 %v1877_v24, %v859_v42  ;;  %v1919_v60 = vld [vmem:[#allocation2 + $0x4f] sm:$0xff]  ;;  %v725_v61 = vadd.f32 %v693_v43, %v624_v48  ;;  %v896_v63 = vmul.f32 %v1877_v24, %v860_v54  ;;  %v726_v2 = vadd.f32 %v694_v58, %v625_v57  ;;  %340 = vst.msk [vmem:[#allocation2 + $0x150] sm:$0xff] %vm215_vm0, %v307_v39 }
  0x35   : > { %v1904_v45 = vld [vmem:[#allocation2 + $0x48] sm:$0xff]  ;;  %v997_v51 = vmul.f32 %v1882_v25, %v1902_v44  ;;  %v998_v0 = vmul.f32 %v1882_v25, %v1919_v60  ;;  %v1925_v1 = vld [vmem:[#allocation2 + $0x50] sm:$0xff]  ;;  %v594_v12 = vmul.f32 %v1841_v9, %v859_v42  ;;  %v695_v13 = vmul.f32 %v1864_v19, %v1902_v44  ;;  %v308_v48 = vld [vmem:[%s1817_s21 + $0xa0] sm:$0xff] }
  0x36   : > { %v1098_v55 = vmul.f32 %v1890_v29, %v1904_v45  ;;  %v1163_v56 = vld [vmem:[#allocation2 + $0x49] sm:$0xff]  ;;  %v1099_v3 = vmul.f32 %v1890_v29, %v1925_v1  ;;  %v1929_v4 = vld [vmem:[#allocation2 + $0x51] sm:$0xff]  ;;  %v826_v10 = vadd.f32 %v794_v49, %v725_v61  ;;  %v827_v14 = vadd.f32 %v795_v59, %v726_v2  ;;  %341 = vst.msk [vmem:[#allocation2 + $0x168] sm:$0xff] %vm215_vm0, %v308_v48 }
  0x37   : > { %v1199_v62 = vmul.f32 %v1909_v46, %v1163_v56  ;;  %v1200_v11 = vmul.f32 %v1909_v46, %v1929_v4  ;;  %v525_v15 = vadd.f32 %v493_v6, %v392_v5  ;;  %v796_v16 = vmul.f32 %v1872_v23, %v1904_v45  ;;  %v1941_v18 = vld [vmem:[#allocation2 + $0x67] sm:$0xff]  ;;  %v1967_v47 = vld [vmem:[#allocation2 + $0x6f] sm:$0xff] }
  0x38   : > { %v897_v17 = vmul.f32 %v1877_v24, %v1163_v56  ;;  %v927_v20 = vadd.f32 %v895_v50, %v826_v10  ;;  %v999_v21 = vmul.f32 %v1882_v25, %v1941_v18  ;;  %v1945_v22 = vld [vmem:[#allocation2 + $0x68] sm:$0xff]  ;;  %v494_v27 = vmul.f32 %v1836_v8, %v759_v53  ;;  %v1983_v57 = vld [vmem:[#allocation2 + $0x70] sm:$0xff] }
  0x39   : > { %v928_v28 = vadd.f32 %v896_v63, %v827_v14  ;;  %v626_v30 = vadd.f32 %v594_v12, %v525_v15  ;;  %v1100_v31 = vmul.f32 %v1890_v29, %v1945_v22  ;;  %v1951_v32 = vld [vmem:[#allocation2 + $0x69] sm:$0xff]  ;;  %v595_v33 = vmul.f32 %v1841_v9, %v860_v54 }
  0x3a   : > { %v1029_v35 = vadd.f32 %v997_v51, %v927_v20  ;;  %v1957_v36 = vmul.f32 %v1909_v46, %v1951_v32  ;;  %v526_v37 = vadd.f32 %v494_v27, %v393_v26  ;;  %v696_v38 = vmul.f32 %v1864_v19, %v1919_v60  ;;  %v309_v59 = vld [vmem:[%s1817_s21 + $0xa8] sm:$0xff]  ;;  %v312_v20 = vld [vmem:[%s1817_s21 + $0xc0] sm:$0xff]  ;;  %v314_v39 = vld [vmem:[%s1817_s21 + $0xd0] sm:$0xff] }
  0x3b   : > { %v1030_v40 = vadd.f32 %v998_v0, %v928_v28  ;;  %v727_v41 = vadd.f32 %v695_v13, %v626_v30  ;;  %v797_v42 = vmul.f32 %v1872_v23, %v1925_v1  ;;  %v898_v43 = vmul.f32 %v1877_v24, %v1929_v4  ;;  %342 = vst.msk [vmem:[#allocation2 + $0x170] sm:$0xff] %vm215_vm0, %v309_v59  ;;  %v313_v34 = vld [vmem:[%s1817_s21 + $0xc8] sm:$0xff] }
  0x3c   : > { %v1130_v49 = vadd.f32 %v1098_v55, %v1029_v35  ;;  %v627_v50 = vadd.f32 %v595_v33, %v526_v37  ;;  %v1000_v51 = vmul.f32 %v1882_v25, %v1967_v47  ;;  %v394_v52 = vmul.f32 %v1831_v7, %v1902_v44  ;;  %v1985_v55 = vld [vmem:[#allocation2 + $0x71] sm:$0xff]  ;;  %v2014_v33 = vld [vmem:[#allocation2 + $0x87] sm:$0xff]  ;;  %345 = vst.msk [vmem:[#allocation2 + $0x1a8] sm:$0xff] %vm215_vm0, %v312_v20 }
  0x3d   : > { %v1131_v53 = vadd.f32 %v1099_v3, %v1030_v40  ;;  %v828_v54 = vadd.f32 %v796_v16, %v727_v41  ;;  %v495_v58 = vmul.f32 %v1836_v8, %v1904_v45  ;;  %v596_v44 = vmul.f32 %v1841_v9, %v1163_v56  ;;  %v310_v3 = vld [vmem:[%s1817_s21 + $0xb0] sm:$0xff]  ;;  %v311_v56 = vld [vmem:[%s1817_s21 + $0xb8] sm:$0xff]  ;;  %346 = vst.msk [vmem:[#allocation2 + $0x1b0] sm:$0xff] %vm215_vm0, %v313_v34 }
  0x3e   : > { %v1231_v61 = vadd.f32 %v1199_v62, %v1130_v49  ;;  %v728_v63 = vadd.f32 %v696_v38, %v627_v50  ;;  %v1101_v0 = vmul.f32 %v1890_v29, %v1983_v57  ;;  %v1202_v2 = vmul.f32 %v1909_v46, %v1985_v55  ;;  %343 = vst.msk [vmem:[#allocation2 + $0x188] sm:$0xff] %vm215_vm0, %v310_v3  ;;  %v2065_v20 = vld [vmem:[#allocation2 + $0x90] sm:$0xff] }
  0x3f   : > { %v1232_v5 = vadd.f32 %v1200_v11, %v1131_v53  ;;  %v929_v6 = vadd.f32 %v897_v17, %v828_v54  ;;  %v527_v10 = vadd.f32 %v495_v58, %v394_v52  ;;  %v697_v45 = vmul.f32 %v1864_v19, %v1941_v18  ;;  %344 = vst.msk [vmem:[#allocation2 + $0x190] sm:$0xff] %vm215_vm0, %v311_v56  ;;  %v315_v53 = vld [vmem:[%s1817_s21 + $0xd8] sm:$0xff] }
  0x40   : > { %1263 = vst.msk [vmem:[%s1981_s19] sm:$0xff] %vm215_vm0, %v1231_v61  ;;  %v1295_v62 = vsel %vm215_vm0, %v1231_v61, 0.0  ;;  %v1366_v12 = vmul.f32 %v1231_v61, %v1231_v61  ;;  %v829_v13 = vadd.f32 %v797_v42, %v728_v63  ;;  %v798_v14 = vmul.f32 %v1872_v23, %v1945_v22  ;;  %v2023_v42 = vld [vmem:[#allocation2 + $0x88] sm:$0xff]  ;;  %347 = vst.msk [vmem:[#allocation2 + $0x1c8] sm:$0xff] %vm215_vm0, %v314_v39 }
  0x41   : > { %1264 = vst.msk [vmem:[%s1981_s19 + $0x8] sm:$0xff] %vm215_vm0, %v1232_v5  ;;  %v1296_v11 = vsel %vm215_vm0, %v1232_v5, 0.0  ;;  %v1367_v15 = vmul.f32 %v1232_v5, %v1232_v5  ;;  %v1031_v16 = vadd.f32 %v999_v21, %v929_v6  ;;  %v628_v17 = vadd.f32 %v596_v44, %v527_v10  ;;  %348 = vst.msk [vmem:[#allocation2 + $0x1d0] sm:$0xff] %vm215_vm0, %v315_v53  ;;  %v317_v63 = vld [vmem:[%s1817_s21 + $0xe8] sm:$0xff] }
  0x42   : > { %v1398_v26 = vsel %vm215_vm0, %v1366_v12, 0.0  ;;  %v1297_v27 = vadd.f32 %v1296_v11, %v1295_v62  ;;  %v930_v28 = vadd.f32 %v898_v43, %v829_v13  ;;  %v899_v30 = vmul.f32 %v1877_v24, %v1951_v32  ;;  %v2053_v10 = vld [vmem:[#allocation2 + $0x8f] sm:$0xff]  ;;  %350 = vst.msk [vmem:[#allocation2 + $0x1f0] sm:$0xff] %vm215_vm0, %v317_v63  ;;  %v2083_v39 = vld [vmem:[#allocation2 + $0xa7] sm:$0xff] }
  0x43   : > { %v1399_v35 = vsel %vm215_vm0, %v1367_v15, 0.0  ;;  %v1132_v37 = vadd.f32 %v1100_v31, %v1031_v16  ;;  %v729_v38 = vadd.f32 %v697_v45, %v628_v17  ;;  %v1001_v21 = vmul.f32 %v1882_v25, %v2014_v33  ;;  %v318_v15 = vld [vmem:[%s1817_s21 + $0xf0] sm:$0xff] }
  0x44   : > { %v1400_v40 = vadd.f32 %v1399_v35, %v1398_v26  ;;  %v1032_v41 = vadd.f32 %v1000_v51, %v930_v28  ;;  %v395_v43 = vmul.f32 %v1831_v7, %v1919_v60  ;;  %v496_v31 = vmul.f32 %v1836_v8, %v1925_v1  ;;  %v2033_v51 = vld [vmem:[#allocation2 + $0x89] sm:$0xff]  ;;  %v2067_v26 = vld [vmem:[#allocation2 + $0x91] sm:$0xff]  ;;  %351 = vst.msk [vmem:[#allocation2 + $0x208] sm:$0xff] %vm215_vm0, %v318_v15 }
  0x45   : > { %v1233_v48 = vadd.f32 %v1957_v36, %v1132_v37  ;;  %v830_v49 = vadd.f32 %v798_v14, %v729_v38  ;;  %v1102_v50 = vmul.f32 %v1890_v29, %v2023_v42  ;;  %v597_v52 = vmul.f32 %v1841_v9, %v1929_v4  ;;  %v316_v36 = vld [vmem:[%s1817_s21 + $0xe0] sm:$0xff]  ;;  %v319_v28 = vld [vmem:[%s1817_s21 + $0xf8] sm:$0xff] }
  0x46   : > { %v1133_v54 = vadd.f32 %v1101_v0, %v1032_v41  ;;  %v1203_v60 = vmul.f32 %v1909_v46, %v2033_v51  ;;  %v528_v1 = vadd.f32 %v496_v31, %v395_v43  ;;  %v698_v58 = vmul.f32 %v1864_v19, %v1967_v47  ;;  %349 = vst.msk [vmem:[#allocation2 + $0x1e8] sm:$0xff] %vm215_vm0, %v316_v36 }
  0x47   : > { %1265 = vst.msk [vmem:[%s1981_s19 + $0x10] sm:$0xff] %vm215_vm0, %v1233_v48  ;;  %v1298_v44 = vsel %vm215_vm0, %v1233_v48, 0.0  ;;  %v1368_v59 = vmul.f32 %v1233_v48, %v1233_v48  ;;  %v931_v61 = vadd.f32 %v899_v30, %v830_v49  ;;  %v799_v4 = vmul.f32 %v1872_v23, %v1983_v57  ;;  %352 = vst.msk [vmem:[#allocation2 + $0x210] sm:$0xff] %vm215_vm0, %v319_v28 }
  0x48   : > { %v1299_v0 = vadd.f32 %v1298_v44, %v1297_v27  ;;  %v1234_v3 = vadd.f32 %v1202_v2, %v1133_v54  ;;  %v629_v5 = vadd.f32 %v597_v52, %v528_v1  ;;  %v900_v6 = vmul.f32 %v1877_v24, %v1985_v55  ;;  %v2098_v1 = vld [vmem:[#allocation2 + $0xa9] sm:$0xff] }
  0x49   : > { %v1401_v45 = vsel %vm215_vm0, %v1368_v59, 0.0  ;;  %v1033_v56 = vadd.f32 %v1001_v21, %v931_v61  ;;  %v1002_v62 = vmul.f32 %v1882_v25, %v2053_v10  ;;  %v396_v12 = vmul.f32 %v1831_v7, %v1941_v18 }
  0x4a   : > { %v1402_v13 = vadd.f32 %v1401_v45, %v1400_v40  ;;  %1266 = vst.msk [vmem:[%s1981_s19 + $0x18] sm:$0xff] %vm215_vm0, %v1234_v3  ;;  %v1300_v2 = vsel %vm215_vm0, %v1234_v3, 0.0  ;;  %v1369_v14 = vmul.f32 %v1234_v3, %v1234_v3  ;;  %v730_v11 = vadd.f32 %v698_v58, %v629_v5 }
  0x4b   : > { %v1301_v16 = vadd.f32 %v1300_v2, %v1299_v0  ;;  %v1134_v17 = vadd.f32 %v1102_v50, %v1033_v56  ;;  %v497_v27 = vmul.f32 %v1836_v8, %v1945_v22  ;;  %v598_v18 = vmul.f32 %v1841_v9, %v1951_v32 }
  0x4c   : > { %v1403_v30 = vsel %vm215_vm0, %v1369_v14, 0.0  ;;  %v831_v34 = vadd.f32 %v799_v4, %v730_v11  ;;  %v1103_v35 = vmul.f32 %v1890_v29, %v2065_v20  ;;  %v1204_v37 = vmul.f32 %v1909_v46, %v2067_v26 }
  0x4d   : > { %v1404_v38 = vadd.f32 %v1403_v30, %v1402_v13  ;;  %v1235_v22 = vadd.f32 %v1203_v60, %v1134_v17  ;;  %v529_v21 = vadd.f32 %v497_v27, %v396_v12  ;;  %v699_v32 = vmul.f32 %v1864_v19, %v2014_v33  ;;  %v2096_v60 = vld [vmem:[#allocation2 + $0xa8] sm:$0xff]  ;;  %v2119_v12 = vld [vmem:[#allocation2 + $0xb0] sm:$0xff] }
  0x4e   : > { %v932_v40 = vadd.f32 %v900_v6, %v831_v34  ;;  %v800_v41 = vmul.f32 %v1872_v23, %v2023_v42  ;;  %v901_v43 = vmul.f32 %v1877_v24, %v2033_v51  ;;  %v1003_v31 = vmul.f32 %v1882_v25, %v2083_v39 }
  0x4f   : > { %1267 = vst.msk [vmem:[%s1981_s19 + $0x20] sm:$0xff] %vm215_vm0, %v1235_v22  ;;  %v1302_v48 = vsel %vm215_vm0, %v1235_v22, 0.0  ;;  %v1370_v49 = vmul.f32 %v1235_v22, %v1235_v22  ;;  %v630_v50 = vadd.f32 %v598_v18, %v529_v21  ;;  %v397_v52 = vmul.f32 %v1831_v7, %v1967_v47  ;;  %v2143_v21 = vld [vmem:[#allocation2 + $0xc7] sm:$0xff] }
  0x50   : > { %v1303_v53 = vadd.f32 %v1302_v48, %v1301_v16  ;;  %v1034_v54 = vadd.f32 %v1002_v62, %v932_v40  ;;  %v498_v58 = vmul.f32 %v1836_v8, %v1983_v57  ;;  %v599_v36 = vmul.f32 %v1841_v9, %v1985_v55  ;;  %v2111_v57 = vld [vmem:[#allocation2 + $0xaf] sm:$0xff] }
  0x51   : > { %v1405_v44 = vsel %vm215_vm0, %v1370_v49, 0.0  ;;  %v731_v59 = vadd.f32 %v699_v32, %v630_v50  ;;  %v1104_v61 = vmul.f32 %v1890_v29, %v2096_v60  ;;  %v1205_v47 = vmul.f32 %v1909_v46, %v2098_v1  ;;  %v2149_v49 = vld [vmem:[#allocation2 + $0xc8] sm:$0xff] }
  0x52   : > { %v1406_v4 = vadd.f32 %v1405_v44, %v1404_v38  ;;  %v1135_v63 = vadd.f32 %v1103_v35, %v1034_v54  ;;  %v530_v0 = vadd.f32 %v498_v58, %v397_v52  ;;  %v700_v3 = vmul.f32 %v1864_v19, %v2053_v10  ;;  %v2151_v50 = vld [vmem:[#allocation2 + $0xc9] sm:$0xff] }
  0x53   : > { %v832_v5 = vadd.f32 %v800_v41, %v731_v59  ;;  %v801_v55 = vmul.f32 %v1872_v23, %v2065_v20  ;;  %v902_v6 = vmul.f32 %v1877_v24, %v2067_v26  ;;  %v1004_v45 = vmul.f32 %v1882_v25, %v2111_v57 }
  0x54   : > { %v1236_v56 = vadd.f32 %v1204_v37, %v1135_v63  ;;  %v631_v62 = vadd.f32 %v599_v36, %v530_v0  ;;  %v398_v13 = vmul.f32 %v1831_v7, %v2014_v33  ;;  %v499_v2 = vmul.f32 %v1836_v8, %v2023_v42  ;;  %v2134_v33 = vld [vmem:[#allocation2 + $0xb1] sm:$0xff] }
  0x55   : > { %v933_v14 = vadd.f32 %v901_v43, %v832_v5  ;;  %v1105_v11 = vmul.f32 %v1890_v29, %v2119_v12  ;;  %v600_v15 = vmul.f32 %v1841_v9, %v2033_v51  ;;  %v701_v16 = vmul.f32 %v1864_v19, %v2083_v39 }
  0x56   : > { %1268 = vst.msk [vmem:[%s1981_s19 + $0x28] sm:$0xff] %vm215_vm0, %v1236_v56  ;;  %v1304_v17 = vsel %vm215_vm0, %v1236_v56, 0.0  ;;  %v1371_v27 = vmul.f32 %v1236_v56, %v1236_v56  ;;  %v732_v18 = vadd.f32 %v700_v3, %v631_v62  ;;  %v531_v28 = vadd.f32 %v499_v2, %v398_v13 }
  0x57   : > { %v1305_v42 = vadd.f32 %v1304_v17, %v1303_v53  ;;  %v1035_v30 = vadd.f32 %v1003_v31, %v933_v14  ;;  %v1206_v34 = vmul.f32 %v1909_v46, %v2134_v33  ;;  %v802_v51 = vmul.f32 %v1872_v23, %v2096_v60  ;;  %v2181_v17 = vld [vmem:[#allocation2 + $0xd0] sm:$0xff] }
  0x58   : > { %v1407_v35 = vsel %vm215_vm0, %v1371_v27, 0.0  ;;  %v833_v37 = vadd.f32 %v801_v55, %v732_v18  ;;  %v632_v38 = vadd.f32 %v600_v15, %v531_v28  ;;  %v903_v22 = vmul.f32 %v1877_v24, %v2098_v1 }
  0x59   : > { %v1408_v32 = vadd.f32 %v1407_v35, %v1406_v4  ;;  %v1136_v40 = vadd.f32 %v1104_v61, %v1035_v30  ;;  %v1005_v41 = vmul.f32 %v1882_v25, %v2143_v21  ;;  %v399_v43 = vmul.f32 %v1831_v7, %v2053_v10 }
  0x5a   : > { %v934_v31 = vadd.f32 %v902_v6, %v833_v37  ;;  %v733_v48 = vadd.f32 %v701_v16, %v632_v38  ;;  %v500_v52 = vmul.f32 %v1836_v8, %v2065_v20  ;;  %v601_v53 = vmul.f32 %v1841_v9, %v2067_v26  ;;  %v2165_v20 = vld [vmem:[#allocation2 + $0xcf] sm:$0xff]  ;;  %v2198_v38 = vld [vmem:[#allocation2 + $0xe7] sm:$0xff] }
  0x5b   : > { %v1237_v54 = vadd.f32 %v1205_v47, %v1136_v40  ;;  %v1106_v58 = vmul.f32 %v1890_v29, %v2149_v49  ;;  %v1207_v10 = vmul.f32 %v1909_v46, %v2151_v50  ;;  %v702_v36 = vmul.f32 %v1864_v19, %v2111_v57 }
  0x5c   : > { %v1036_v44 = vadd.f32 %v1004_v45, %v934_v31  ;;  %v834_v59 = vadd.f32 %v802_v51, %v733_v48  ;;  %v532_v61 = vadd.f32 %v500_v52, %v399_v43  ;;  %v803_v4 = vmul.f32 %v1872_v23, %v2119_v12 }
  0x5d   : > { %1269 = vst.msk [vmem:[%s1981_s19 + $0x30] sm:$0xff] %vm215_vm0, %v1237_v54  ;;  %v1306_v26 = vsel %vm215_vm0, %v1237_v54, 0.0  ;;  %v1372_v47 = vmul.f32 %v1237_v54, %v1237_v54  ;;  %v904_v63 = vmul.f32 %v1877_v24, %v2134_v33  ;;  %v1006_v0 = vmul.f32 %v1882_v25, %v2165_v20 }
  0x5e   : > { %v1307_v3 = vadd.f32 %v1306_v26, %v1305_v42  ;;  %v1137_v5 = vadd.f32 %v1105_v11, %v1036_v44  ;;  %v935_v55 = vadd.f32 %v903_v22, %v834_v59  ;;  %v633_v6 = vadd.f32 %v601_v53, %v532_v61  ;;  %v2183_v11 = vld [vmem:[#allocation2 + $0xd1] sm:$0xff]  ;;  %v2212_v59 = vld [vmem:[#allocation2 + $0xe8] sm:$0xff] }
  0x5f   : > { %v1409_v45 = vsel %vm215_vm0, %v1372_v47, 0.0  ;;  %v400_v56 = vmul.f32 %v1831_v7, %v2083_v39  ;;  %v501_v62 = vmul.f32 %v1836_v8, %v2096_v60  ;;  %v602_v13 = vmul.f32 %v1841_v9, %v2098_v1 }
  0x60   : > { %v1410_v2 = vadd.f32 %v1409_v45, %v1408_v32  ;;  %v1238_v14 = vadd.f32 %v1206_v34, %v1137_v5  ;;  %v1037_v15 = vadd.f32 %v1005_v41, %v935_v55  ;;  %v734_v16 = vadd.f32 %v702_v36, %v633_v6 }
  0x61   : > { %v1107_v27 = vmul.f32 %v1890_v29, %v2181_v17  ;;  %v1208_v39 = vmul.f32 %v1909_v46, %v2183_v11  ;;  %v533_v18 = vadd.f32 %v501_v62, %v400_v56  ;;  %v703_v60 = vmul.f32 %v1864_v19, %v2143_v21 }
  0x62   : > { %1270 = vst.msk [vmem:[%s1981_s19 + $0x38] sm:$0xff] %vm215_vm0, %v1238_v14  ;;  %v1308_v1 = vsel %vm215_vm0, %v1238_v14, 0.0  ;;  %v1373_v28 = vmul.f32 %v1238_v14, %v1238_v14  ;;  %v1138_v42 = vadd.f32 %v1106_v58, %v1037_v15  ;;  %v835_v30 = vadd.f32 %v803_v4, %v734_v16 }
  0x63   : > { %v1309_v34 = vadd.f32 %v1308_v1, %v1307_v3  ;;  %v634_v51 = vadd.f32 %v602_v13, %v533_v18  ;;  %v804_v35 = vmul.f32 %v1872_v23, %v2149_v49  ;;  %v905_v37 = vmul.f32 %v1877_v24, %v2151_v50  ;;  %v2226_v13 = vld [vmem:[#allocation2 + $0xef] sm:$0xff] }
  0x64   : > { %v1411_v22 = vsel %vm215_vm0, %v1373_v28, 0.0  ;;  %v1239_v32 = vadd.f32 %v1207_v10, %v1138_v42  ;;  %v936_v40 = vadd.f32 %v904_v63, %v835_v30  ;;  %v1007_v41 = vmul.f32 %v1882_v25, %v2198_v38  ;;  %v2239_v1 = vld [vmem:[#allocation2 + $0xf0] sm:$0xff] }
  0x65   : > { %v1412_v43 = vadd.f32 %v1411_v22, %v1410_v2  ;;  %v735_v31 = vadd.f32 %v703_v60, %v634_v51  ;;  %v401_v48 = vmul.f32 %v1831_v7, %v2111_v57  ;;  %v502_v52 = vmul.f32 %v1836_v8, %v2119_v12 }
  0x66   : > { %1271 = vst.msk [vmem:[%s1981_s19 + $0x40] sm:$0xff] %vm215_vm0, %v1239_v32  ;;  %v1310_v53 = vsel %vm215_vm0, %v1239_v32, 0.0  ;;  %v1374_v54 = vmul.f32 %v1239_v32, %v1239_v32  ;;  %v1038_v58 = vadd.f32 %v1006_v0, %v936_v40  ;;  %v603_v10 = vmul.f32 %v1841_v9, %v2134_v33  ;;  %v1173_v0 = vld [vmem:[#allocation2 + $0xe9] sm:$0xff] }
  0x67   : > { %v1311_v36 = vadd.f32 %v1310_v53, %v1309_v34  ;;  %v836_v44 = vadd.f32 %v804_v35, %v735_v31  ;;  %v534_v61 = vadd.f32 %v502_v52, %v401_v48  ;;  %v704_v57 = vmul.f32 %v1864_v19, %v2165_v20 }
  0x68   : > { %v1413_v4 = vsel %vm215_vm0, %v1374_v54, 0.0  ;;  %v1139_v12 = vadd.f32 %v1107_v27, %v1038_v58  ;;  %v1108_v26 = vmul.f32 %v1890_v29, %v2212_v59  ;;  %v805_v33 = vmul.f32 %v1872_v23, %v2181_v17  ;;  %v2260_v58 = vld [vmem:[#allocation2 + $0x107] sm:$0xff] }
  0x69   : > { %v1414_v47 = vadd.f32 %v1413_v4, %v1412_v43  ;;  %v937_v63 = vadd.f32 %v905_v37, %v836_v44  ;;  %v635_v3 = vadd.f32 %v603_v10, %v534_v61  ;;  %v1209_v55 = vmul.f32 %v1909_v46, %v1173_v0  ;;  %v2267_v61 = vld [vmem:[#allocation2 + $0x108] sm:$0xff] }
  0x6a   : > { %v1240_v5 = vadd.f32 %v1208_v39, %v1139_v12  ;;  %v906_v6 = vmul.f32 %v1877_v24, %v2183_v11  ;;  %v402_v45 = vmul.f32 %v1831_v7, %v2143_v21  ;;  %v503_v2 = vmul.f32 %v1836_v8, %v2149_v49  ;;  %v2241_v49 = vld [vmem:[#allocation2 + $0xf1] sm:$0xff]  ;;  %v2271_v12 = vld [vmem:[#allocation2 + $0x109] sm:$0xff] }
  0x6b   : > { %v1039_v56 = vadd.f32 %v1007_v41, %v937_v63  ;;  %v736_v62 = vadd.f32 %v704_v57, %v635_v3  ;;  %v604_v14 = vmul.f32 %v1841_v9, %v2151_v50  ;;  %v1008_v27 = vmul.f32 %v1882_v25, %v2226_v13 }
  0x6c   : > { %1272 = vst.msk [vmem:[%s1981_s19 + $0x48] sm:$0xff] %vm215_vm0, %v1240_v5  ;;  %v1312_v15 = vsel %vm215_vm0, %v1240_v5, 0.0  ;;  %v1375_v16 = vmul.f32 %v1240_v5, %v1240_v5  ;;  %v705_v21 = vmul.f32 %v1864_v19, %v2198_v38  ;;  %v535_v50 = vadd.f32 %v503_v2, %v402_v45  ;;  %v2281_v45 = vld [vmem:[#allocation2 + $0x10f] sm:$0xff] }
  0x6d   : > { %v1313_v39 = vadd.f32 %v1312_v15, %v1311_v36  ;;  %v1140_v18 = vadd.f32 %v1108_v26, %v1039_v56  ;;  %v837_v60 = vadd.f32 %v805_v33, %v736_v62  ;;  %v1109_v42 = vmul.f32 %v1890_v29, %v2239_v1 }
  0x6e   : > { %v1415_v28 = vsel %vm215_vm0, %v1375_v16, 0.0  ;;  %v1210_v30 = vmul.f32 %v1909_v46, %v2241_v49  ;;  %v806_v34 = vmul.f32 %v1872_v23, %v2212_v59  ;;  %v636_v22 = vadd.f32 %v604_v14, %v535_v50 }
  0x6f   : > { %v1416_v51 = vadd.f32 %v1415_v28, %v1414_v47  ;;  %v1241_v35 = vadd.f32 %v1209_v55, %v1140_v18  ;;  %v938_v37 = vadd.f32 %v906_v6, %v837_v60  ;;  %v907_v32 = vmul.f32 %v1877_v24, %v1173_v0 }
  0x70   : > { %v403_v40 = vmul.f32 %v1831_v7, %v2165_v20  ;;  %v504_v41 = vmul.f32 %v1836_v8, %v2181_v17  ;;  %v605_v43 = vmul.f32 %v1841_v9, %v2183_v11  ;;  %v737_v53 = vadd.f32 %v705_v21, %v636_v22  ;;  %v2291_v21 = vld [vmem:[#allocation2 + $0x110] sm:$0xff] }
  0x71   : > { %1273 = vst.msk [vmem:[%s1981_s19 + $0x50] sm:$0xff] %vm215_vm0, %v1241_v35  ;;  %v1314_v31 = vsel %vm215_vm0, %v1241_v35, 0.0  ;;  %v1376_v48 = vmul.f32 %v1241_v35, %v1241_v35  ;;  %v1040_v52 = vadd.f32 %v1008_v27, %v938_v37  ;;  %v706_v20 = vmul.f32 %v1864_v19, %v2226_v13  ;;  %v2304_v37 = vld [vmem:[#allocation2 + $0x127] sm:$0xff] }
  0x72   : > { %v1315_v54 = vadd.f32 %v1314_v31, %v1313_v39  ;;  %v536_v10 = vadd.f32 %v504_v41, %v403_v40  ;;  %v838_v44 = vadd.f32 %v806_v34, %v737_v53  ;;  %v1009_v11 = vmul.f32 %v1882_v25, %v2260_v58  ;;  %v2293_v39 = vld [vmem:[#allocation2 + $0x111] sm:$0xff] }
  0x73   : > { %v1417_v36 = vsel %vm215_vm0, %v1376_v48, 0.0  ;;  %v1141_v17 = vadd.f32 %v1109_v42, %v1040_v52  ;;  %v1110_v4 = vmul.f32 %v1890_v29, %v2267_v61  ;;  %v807_v47 = vmul.f32 %v1872_v23, %v2239_v1 }
  0x74   : > { %v1418_v57 = vadd.f32 %v1417_v36, %v1416_v51  ;;  %v637_v26 = vadd.f32 %v605_v43, %v536_v10  ;;  %v939_v3 = vadd.f32 %v907_v32, %v838_v44  ;;  %v1211_v33 = vmul.f32 %v1909_v46, %v2271_v12 }
  0x75   : > { %v1242_v63 = vadd.f32 %v1210_v30, %v1141_v17  ;;  %v404_v5 = vmul.f32 %v1831_v7, %v2198_v38  ;;  %v908_v6 = vmul.f32 %v1877_v24, %v2241_v49  ;;  %v505_v56 = vmul.f32 %v1836_v8, %v2212_v59  ;;  %v1177_v17 = vld [vmem:[#allocation2 + $0x129] sm:$0xff] }
  0x76   : > { %v738_v55 = vadd.f32 %v706_v20, %v637_v26  ;;  %v606_v62 = vmul.f32 %v1841_v9, %v1173_v0  ;;  %v1041_v15 = vadd.f32 %v1009_v11, %v939_v3  ;;  %v1010_v38 = vmul.f32 %v1882_v25, %v2281_v45 }
  0x77   : > { %1274 = vst.msk [vmem:[%s1981_s19 + $0x58] sm:$0xff] %vm215_vm0, %v1242_v63  ;;  %v1316_v2 = vsel %vm215_vm0, %v1242_v63, 0.0  ;;  %v1377_v14 = vmul.f32 %v1242_v63, %v1242_v63  ;;  %v537_v18 = vadd.f32 %v505_v56, %v404_v5  ;;  %v707_v59 = vmul.f32 %v1864_v19, %v2260_v58 }
  0x78   : > { %v1317_v16 = vadd.f32 %v1316_v2, %v1315_v54  ;;  %v839_v27 = vadd.f32 %v807_v47, %v738_v55  ;;  %v1142_v60 = vadd.f32 %v1110_v4, %v1041_v15  ;;  %v1111_v50 = vmul.f32 %v1890_v29, %v2291_v21  ;;  %v2333_v55 = vld [vmem:[#allocation2 + $0x12f] sm:$0xff] }
  0x79   : > { %v1419_v0 = vsel %vm215_vm0, %v1377_v14, 0.0  ;;  %v1212_v28 = vmul.f32 %v1909_v46, %v2293_v39  ;;  %v638_v34 = vadd.f32 %v606_v62, %v537_v18  ;;  %v808_v51 = vmul.f32 %v1872_v23, %v2267_v61 }
  0x7a   : > { %v1420_v42 = vadd.f32 %v1419_v0, %v1418_v57  ;;  %v940_v30 = vadd.f32 %v908_v6, %v839_v27  ;;  %v1243_v35 = vadd.f32 %v1211_v33, %v1142_v60  ;;  %v405_v22 = vmul.f32 %v1831_v7, %v2226_v13  ;;  %v2319_v13 = vld [vmem:[#allocation2 + $0x128] sm:$0xff] }
  0x7b   : > { %v506_v32 = vmul.f32 %v1836_v8, %v2239_v1  ;;  %v607_v40 = vmul.f32 %v1841_v9, %v2241_v49  ;;  %v739_v43 = vadd.f32 %v707_v59, %v638_v34  ;;  %v909_v31 = vmul.f32 %v1877_v24, %v2271_v12 }
  0x7c   : > { %v1042_v41 = vadd.f32 %v1010_v38, %v940_v30  ;;  %v1011_v48 = vmul.f32 %v1882_v25, %v2304_v37  ;;  %1275 = vst.msk [vmem:[%s1981_s19 + $0x60] sm:$0xff] %vm215_vm0, %v1243_v35  ;;  %v1318_v52 = vsel %vm215_vm0, %v1243_v35, 0.0  ;;  %v1378_v53 = vmul.f32 %v1243_v35, %v1243_v35  ;;  %v1178_v30 = vld [vmem:[#allocation2 + $0x131] sm:$0xff] }
  0x7d   : > { %v538_v54 = vadd.f32 %v506_v32, %v405_v22  ;;  %v708_v1 = vmul.f32 %v1864_v19, %v2281_v45  ;;  %v1319_v49 = vadd.f32 %v1318_v52, %v1317_v16  ;;  %v840_v20 = vadd.f32 %v808_v51, %v739_v43  ;;  %v2344_v16 = vld [vmem:[#allocation2 + $0x130] sm:$0xff]  ;;  %v2365_v43 = vld [vmem:[#allocation2 + $0x147] sm:$0xff] }
  0x7e   : > { %v1143_v10 = vadd.f32 %v1111_v50, %v1042_v41  ;;  %v1112_v36 = vmul.f32 %v1890_v29, %v2319_v13  ;;  %v1421_v44 = vsel %vm215_vm0, %v1378_v53, 0.0  ;;  %v1213_v11 = vmul.f32 %v1909_v46, %v1177_v17 }
  0x7f   : > { %v639_v57 = vadd.f32 %v607_v40, %v538_v54  ;;  %v809_v4 = vmul.f32 %v1872_v23, %v2291_v21  ;;  %v1422_v26 = vadd.f32 %v1421_v44, %v1420_v42  ;;  %v941_v63 = vadd.f32 %v909_v31, %v840_v20 }
  0x80   : > { %v1244_v47 = vadd.f32 %v1212_v28, %v1143_v10  ;;  %v406_v3 = vmul.f32 %v1831_v7, %v2260_v58  ;;  %v910_v5 = vmul.f32 %v1877_v24, %v2293_v39  ;;  %v507_v6 = vmul.f32 %v1836_v8, %v2267_v61 }
  0x81   : > { %v740_v33 = vadd.f32 %v708_v1, %v639_v57  ;;  %v608_v56 = vmul.f32 %v1841_v9, %v2271_v12  ;;  %v1043_v14 = vadd.f32 %v1011_v48, %v941_v63  ;;  %v1012_v58 = vmul.f32 %v1882_v25, %v2333_v55 }
  0x82   : > { %1276 = vst.msk [vmem:[%s1981_s19 + $0x68] sm:$0xff] %vm215_vm0, %v1244_v47  ;;  %v1320_v62 = vsel %vm215_vm0, %v1244_v47, 0.0  ;;  %v1379_v2 = vmul.f32 %v1244_v47, %v1244_v47  ;;  %v539_v27 = vadd.f32 %v507_v6, %v406_v3  ;;  %v709_v61 = vmul.f32 %v1864_v19, %v2304_v37  ;;  %v2394_v6 = vld [vmem:[#allocation2 + $0x150] sm:$0xff] }
  0x83   : > { %v1321_v15 = vadd.f32 %v1320_v62, %v1319_v49  ;;  %v841_v38 = vadd.f32 %v809_v4, %v740_v33  ;;  %v1144_v12 = vadd.f32 %v1112_v36, %v1043_v14  ;;  %v1113_v59 = vmul.f32 %v1890_v29, %v2344_v16 }
  0x84   : > { %v1423_v18 = vsel %vm215_vm0, %v1379_v2, 0.0  ;;  %v640_v50 = vadd.f32 %v608_v56, %v539_v27  ;;  %v810_v28 = vmul.f32 %v1872_v23, %v2319_v13  ;;  %v407_v34 = vmul.f32 %v1831_v7, %v2281_v45  ;;  %v2396_v56 = vld [vmem:[#allocation2 + $0x151] sm:$0xff] }
  0x85   : > { %v2351_v0 = vadd.f32 %v1423_v18, %v1422_v26  ;;  %v942_v60 = vadd.f32 %v910_v5, %v841_v38  ;;  %v1245_v42 = vadd.f32 %v1213_v11, %v1144_v12  ;;  %v508_v51 = vmul.f32 %v1836_v8, %v2291_v21  ;;  %v2380_v11 = vld [vmem:[#allocation2 + $0x149] sm:$0xff] }
  0x86   : > { %v609_v35 = vmul.f32 %v1841_v9, %v2293_v39  ;;  %v1214_v32 = vmul.f32 %v1909_v46, %v1178_v30  ;;  %v741_v40 = vadd.f32 %v709_v61, %v640_v50  ;;  %v911_v41 = vmul.f32 %v1877_v24, %v1177_v17  ;;  %v2371_v39 = vld [vmem:[#allocation2 + $0x148] sm:$0xff] }
  0x87   : > { %v1044_v22 = vadd.f32 %v1012_v58, %v942_v60  ;;  %1277 = vst.msk [vmem:[%s1981_s19 + $0x70] sm:$0xff] %vm215_vm0, %v1245_v42  ;;  %v540_v31 = vadd.f32 %v508_v51, %v407_v34  ;;  %v710_v45 = vmul.f32 %v1864_v19, %v2333_v55  ;;  %v1013_v21 = vmul.f32 %v1882_v25, %v2365_v43  ;;  %v2390_v5 = vld [vmem:[#allocation2 + $0x14f] sm:$0xff]  ;;  %v2438_v34 = vld [vmem:[%s2789_s1 + $0x3] ss:$0 sm:$0xff] }
  0x88   : > { %v842_v52 = vadd.f32 %v810_v28, %v741_v40  ;;  %v1322_v53 = vsel %vm215_vm0, %v1245_v42, 0.0  ;;  %v1114_v54 = vmul.f32 %v1890_v29, %v2371_v39  ;;  %v811_v49 = vmul.f32 %v1872_v23, %v2344_v16 }
  0x89   : > { %v1145_v48 = vadd.f32 %v1113_v59, %v1044_v22  ;;  %v641_v1 = vadd.f32 %v609_v35, %v540_v31  ;;  %v1380_v10 = vmul.f32 %v1245_v42, %v1245_v42  ;;  %v408_v44 = vmul.f32 %v1831_v7, %v2304_v37 }
  0x8a   : > { %v943_v36 = vadd.f32 %v911_v41, %v842_v52  ;;  %v912_v4 = vmul.f32 %v1877_v24, %v1178_v30  ;;  %v509_v26 = vmul.f32 %v1836_v8, %v2319_v13  ;;  %v610_v47 = vmul.f32 %v1841_v9, %v1177_v17  ;;  %v2456_v41 = vld [vmem:[%s2789_s1 + $0x7] ss:$0 sm:$0xff] }
  0x8b   : > { %v1246_v20 = vadd.f32 %v1214_v32, %v1145_v48  ;;  %v742_v57 = vadd.f32 %v710_v45, %v641_v1  ;;  %v1323_v63 = vadd.f32 %v1322_v53, %v1321_v15  ;;  %v1215_v33 = vmul.f32 %v1909_v46, %v2380_v11  ;;  %v2450_v32 = vld [vmem:[#allocation2 + $0x168] sm:$0xff]  ;;  %v2463_v48 = vld [vmem:[%s2789_s1 + $0x4] ss:$0 sm:$0xff] }
  0x8c   : > { %v1045_v3 = vadd.f32 %v1013_v21, %v943_v36  ;;  %v1014_v37 = vmul.f32 %v1882_v25, %v2390_v5  ;;  %v541_v8 = vadd.f32 %v509_v26, %v408_v44  ;;  %v711_v9 = vmul.f32 %v1864_v19, %v2365_v43  ;;  %v2410_v19 = vld [vmem:[%s2789_s1] ss:$0 sm:$0xff] }
  0x8d   : > { %1278 = vst.msk [vmem:[%s1981_s19 + $0x78] sm:$0xff] %vm215_vm0, %v1246_v20  ;;  %v843_v7 = vadd.f32 %v811_v49, %v742_v57  ;;  %v1425_v13 = vsel %vm215_vm0, %v1380_v10, 0.0  ;;  %v1115_v62 = vmul.f32 %v1890_v29, %v2394_v6  ;;  %v1216_v2 = vmul.f32 %v1909_v46, %v2396_v56  ;;  %v2417_v29 = vld [vmem:[%s2789_s1 + $0x1] ss:$0 sm:$0xff]  ;;  %v1181_v49 = vld [vmem:[#allocation2 + $0x169] sm:$0xff] }
  0x8e   : > { %v1146_v17 = vadd.f32 %v1114_v54, %v1045_v3  ;;  %v1381_v14 = vmul.f32 %v1246_v20, %v1246_v20  ;;  %v642_v25 = vadd.f32 %v610_v47, %v541_v8  ;;  %v812_v15 = vmul.f32 %v1872_v23, %v2371_v39  ;;  %v2424_v23 = vld [vmem:[%s2789_s1 + $0x2] ss:$0 sm:$0xff] }
  0x8f   : > { %v944_v58 = vadd.f32 %v912_v4, %v843_v7  ;;  %v409_v27 = vmul.f32 %v2410_v19, %v2333_v55  ;;  %v510_v61 = vmul.f32 %v2417_v29, %v2344_v16  ;;  %v611_v18 = vmul.f32 %v2424_v23, %v1178_v30  ;;  %v2433_v16 = vld [vmem:[#allocation2 + $0x167] sm:$0xff]  ;;  %v2487_v7 = vld [vmem:[#allocation2 + $0x170] sm:$0xff] }
  0x90   : > { %v1247_v38 = vadd.f32 %v1215_v33, %v1146_v17  ;;  %v1324_v12 = vsel %vm215_vm0, %v1246_v20, 0.0  ;;  %v743_v60 = vadd.f32 %v711_v9, %v642_v25  ;;  %v913_v55 = vmul.f32 %v1877_v24, %v2380_v11  ;;  %v2472_v20 = vld [vmem:[%s2789_s1 + $0x5] ss:$0 sm:$0xff] }
  0x91   : > { %v1046_v59 = vadd.f32 %v1014_v37, %v944_v58  ;;  %v1426_v50 = vadd.f32 %v1425_v13, %v2351_v0  ;;  %v1325_v28 = vadd.f32 %v1324_v12, %v1323_v63  ;;  %v542_v42 = vadd.f32 %v510_v61, %v409_v27  ;;  %v2446_v0 = vld [vmem:[%s2789_s1 + $0x6] ss:$0 sm:$0xff]  ;;  %v2483_v63 = vld [vmem:[#allocation2 + $0x16f] sm:$0xff]  ;;  %v2499_v13 = vld [vmem:[%s2789_s1 + $0x8] ss:$0 sm:$0xff] }
  0x92   : > { %1279 = vst.msk [vmem:[%s1981_s19 + $0x80] sm:$0xff] %vm215_vm0, %v1247_v38  ;;  %v712_v30 = vmul.f32 %v2438_v34, %v2390_v5  ;;  %v1427_v51 = vsel %vm215_vm0, %v1381_v14, 0.0  ;;  %v844_v24 = vadd.f32 %v812_v15, %v743_v60  ;;  %v1015_v22 = vmul.f32 %v2446_v0, %v2433_v16  ;;  %v2489_v37 = vld [vmem:[#allocation2 + $0x171] sm:$0xff] }
  0x93   : > { %v1147_v35 = vadd.f32 %v1115_v62, %v1046_v59  ;;  %v1326_v40 = vsel %vm215_vm0, %v1247_v38, 0.0  ;;  %v1116_v31 = vmul.f32 %v2456_v41, %v2450_v32  ;;  %v643_v45 = vadd.f32 %v611_v18, %v542_v42 }
  0x94   : > { %v813_v52 = vmul.f32 %v2463_v48, %v2394_v6  ;;  %v1382_v21 = vmul.f32 %v1247_v38, %v1247_v38  ;;  %v945_v54 = vadd.f32 %v913_v55, %v844_v24  ;;  %v410_v1 = vmul.f32 %v2410_v19, %v2365_v43 }
  0x95   : > { %v1248_v53 = vadd.f32 %v1216_v2, %v1147_v35  ;;  %v744_v10 = vadd.f32 %v712_v30, %v643_v45  ;;  %v914_v36 = vmul.f32 %v2472_v20, %v2396_v56  ;;  %v511_v44 = vmul.f32 %v2417_v29, %v2371_v39 }
  0x96   : > { %v612_v57 = vmul.f32 %v2424_v23, %v2380_v11  ;;  %v1428_v4 = vadd.f32 %v1427_v51, %v1426_v50  ;;  %v1327_v26 = vadd.f32 %v1326_v40, %v1325_v28  ;;  %v1047_v43 = vadd.f32 %v1015_v22, %v945_v54  ;;  %v2515_v50 = vld [vmem:[#allocation2 + $0x187] sm:$0xff] }
  0x97   : > { %1280 = vst.msk [vmem:[%s1981_s19 + $0x88] sm:$0xff] %vm215_vm0, %v1248_v53  ;;  %v1217_v47 = vmul.f32 %v1909_v46, %v1181_v49  ;;  %v845_v3 = vadd.f32 %v813_v52, %v744_v10  ;;  %v1016_v33 = vmul.f32 %v2446_v0, %v2483_v63  ;;  %v543_v39 = vadd.f32 %v511_v44, %v410_v1  ;;  %v2522_v51 = vld [vmem:[#allocation2 + $0x188] sm:$0xff] }
  0x98   : > { %v713_v11 = vmul.f32 %v2438_v34, %v2433_v16  ;;  %v1429_v8 = vsel %vm215_vm0, %v1382_v21, 0.0  ;;  %v1148_v9 = vadd.f32 %v1116_v31, %v1047_v43  ;;  %v1117_v46 = vmul.f32 %v2456_v41, %v2487_v7  ;;  %v2539_v43 = vld [vmem:[#allocation2 + $0x18f] sm:$0xff] }
  0x99   : > { %v1218_v17 = vmul.f32 %v2499_v13, %v2489_v37  ;;  %v1383_v62 = vmul.f32 %v1248_v53, %v1248_v53  ;;  %v946_v2 = vadd.f32 %v914_v36, %v845_v3  ;;  %v644_v14 = vadd.f32 %v612_v57, %v543_v39  ;;  %v2543_v3 = vld [vmem:[#allocation2 + $0x190] sm:$0xff] }
  0x9a   : > { %v814_v58 = vmul.f32 %v2463_v48, %v2450_v32  ;;  %v1249_v25 = vadd.f32 %v1217_v47, %v1148_v9  ;;  %v411_v15 = vmul.f32 %v2410_v19, %v2390_v5  ;;  %v512_v38 = vmul.f32 %v2417_v29, %v2394_v6 }
  0x9b   : > { %v613_v27 = vmul.f32 %v2424_v23, %v2396_v56  ;;  %v1328_v61 = vsel %vm215_vm0, %v1248_v53, 0.0  ;;  %v1048_v18 = vadd.f32 %v1016_v33, %v946_v2  ;;  %v745_v12 = vadd.f32 %v713_v11, %v644_v14  ;;  %v1183_v53 = vld [vmem:[#allocation2 + $0x189] sm:$0xff]  ;;  %v2545_v33 = vld [vmem:[#allocation2 + $0x191] sm:$0xff] }
  0x9c   : > { %v915_v59 = vmul.f32 %v2472_v20, %v1181_v49  ;;  %v1430_v60 = vadd.f32 %v1429_v8, %v1428_v4  ;;  %v1329_v55 = vadd.f32 %v1328_v61, %v1327_v26  ;;  %1281 = vst.msk [vmem:[%s1981_s19 + $0x90] sm:$0xff] %vm215_vm0, %v1249_v25  ;;  %v544_v28 = vadd.f32 %v512_v38, %v411_v15 }
  0x9d   : > { %v714_v5 = vmul.f32 %v2438_v34, %v2483_v63  ;;  %v1431_v6 = vsel %vm215_vm0, %v1383_v62, 0.0  ;;  %v1149_v42 = vadd.f32 %v1117_v46, %v1048_v18  ;;  %v846_v56 = vadd.f32 %v814_v58, %v745_v12 }
  0x9e   : > { %v1017_v30 = vmul.f32 %v2446_v0, %v2515_v50  ;;  %v1330_v35 = vsel %vm215_vm0, %v1249_v25, 0.0  ;;  %v1118_v24 = vmul.f32 %v2456_v41, %v2522_v51  ;;  %v645_v22 = vadd.f32 %v613_v27, %v544_v28 }
  0x9f   : > { %v815_v40 = vmul.f32 %v2463_v48, %v2487_v7  ;;  %v1384_v31 = vmul.f32 %v1249_v25, %v1249_v25  ;;  %v1250_v45 = vadd.f32 %v1218_v17, %v1149_v42  ;;  %v947_v52 = vadd.f32 %v915_v59, %v846_v56 }
  0xa0   : > { %v412_v21 = vmul.f32 %v2410_v19, %v2433_v16  ;;  %v746_v54 = vadd.f32 %v714_v5, %v645_v22  ;;  %v916_v1 = vmul.f32 %v2472_v20, %v2489_v37  ;;  %v513_v10 = vmul.f32 %v2417_v29, %v2450_v32 }
  0xa1   : > { %v614_v36 = vmul.f32 %v2424_v23, %v1181_v49  ;;  %v1432_v44 = vadd.f32 %v1431_v6, %v1430_v60  ;;  %v1331_v57 = vadd.f32 %v1330_v35, %v1329_v55  ;;  %1282 = vst.msk [vmem:[%s1981_s19 + $0x98] sm:$0xff] %vm215_vm0, %v1250_v45  ;;  %v1049_v4 = vadd.f32 %v1017_v30, %v947_v52  ;;  %v2566_v60 = vld [vmem:[#allocation2 + $0x1a7] sm:$0xff] }
  0xa2   : > { %v1219_v26 = vmul.f32 %v2499_v13, %v1183_v53  ;;  %v847_v16 = vadd.f32 %v815_v40, %v746_v54  ;;  %v1018_v47 = vmul.f32 %v2446_v0, %v2539_v43  ;;  %v545_v32 = vadd.f32 %v513_v10, %v412_v21  ;;  %v2573_v6 = vld [vmem:[#allocation2 + $0x1a8] sm:$0xff] }
  0xa3   : > { %v715_v49 = vmul.f32 %v2438_v34, %v2515_v50  ;;  %v1433_v39 = vsel %vm215_vm0, %v1384_v31, 0.0  ;;  %v1150_v11 = vadd.f32 %v1118_v24, %v1049_v4  ;;  %v1119_v8 = vmul.f32 %v2456_v41, %v2543_v3  ;;  %v2590_v4 = vld [vmem:[#allocation2 + $0x1af] sm:$0xff] }
  0xa4   : > { %v1220_v9 = vmul.f32 %v2499_v13, %v2545_v33  ;;  %v1385_v46 = vmul.f32 %v1250_v45, %v1250_v45  ;;  %v948_v17 = vadd.f32 %v916_v1, %v847_v16  ;;  %v646_v62 = vadd.f32 %v614_v36, %v545_v32  ;;  %v2594_v16 = vld [vmem:[#allocation2 + $0x1b0] sm:$0xff] }
  0xa5   : > { %v816_v2 = vmul.f32 %v2463_v48, %v2522_v51  ;;  %v1251_v14 = vadd.f32 %v1219_v26, %v1150_v11  ;;  %v413_v58 = vmul.f32 %v2410_v19, %v2483_v63  ;;  %v514_v25 = vmul.f32 %v2417_v29, %v2487_v7 }
  0xa6   : > { %v615_v15 = vmul.f32 %v2424_v23, %v2489_v37  ;;  %v1332_v38 = vsel %vm215_vm0, %v1250_v45, 0.0  ;;  %v1050_v27 = vadd.f32 %v1018_v47, %v948_v17  ;;  %v747_v61 = vadd.f32 %v715_v49, %v646_v62  ;;  %v1185_v45 = vld [vmem:[#allocation2 + $0x1a9] sm:$0xff]  ;;  %v2596_v47 = vld [vmem:[#allocation2 + $0x1b1] sm:$0xff] }
  0xa7   : > { %v917_v18 = vmul.f32 %v2472_v20, %v1183_v53  ;;  %v1434_v12 = vadd.f32 %v1433_v39, %v1432_v44  ;;  %v1333_v59 = vadd.f32 %v1332_v38, %v1331_v57  ;;  %1283 = vst.msk [vmem:[%s1981_s19 + $0xa0] sm:$0xff] %vm215_vm0, %v1251_v14  ;;  %v546_v55 = vadd.f32 %v514_v25, %v413_v58 }
  0xa8   : > { %v716_v63 = vmul.f32 %v2438_v34, %v2539_v43  ;;  %v1435_v7 = vsel %vm215_vm0, %v1385_v46, 0.0  ;;  %v1151_v28 = vadd.f32 %v1119_v8, %v1050_v27  ;;  %v848_v37 = vadd.f32 %v816_v2, %v747_v61 }
  0xa9   : > { %v1019_v5 = vmul.f32 %v2446_v0, %v2566_v60  ;;  %v1334_v42 = vsel %vm215_vm0, %v1251_v14, 0.0  ;;  %v1120_v56 = vmul.f32 %v2456_v41, %v2573_v6  ;;  %v647_v30 = vadd.f32 %v615_v15, %v546_v55 }
  0xaa   : > { %v817_v35 = vmul.f32 %v2463_v48, %v2543_v3  ;;  %v1386_v24 = vmul.f32 %v1251_v14, %v1251_v14  ;;  %v1252_v22 = vadd.f32 %v1220_v9, %v1151_v28  ;;  %v949_v40 = vadd.f32 %v917_v18, %v848_v37 }
  0xab   : > { %v414_v31 = vmul.f32 %v2410_v19, %v2515_v50  ;;  %v748_v52 = vadd.f32 %v716_v63, %v647_v30  ;;  %v918_v21 = vmul.f32 %v2472_v20, %v2545_v33  ;;  %v515_v54 = vmul.f32 %v2417_v29, %v2522_v51 }
  0xac   : > { %v616_v1 = vmul.f32 %v2424_v23, %v1183_v53  ;;  %v1436_v10 = vadd.f32 %v1435_v7, %v1434_v12  ;;  %v1335_v36 = vadd.f32 %v1334_v42, %v1333_v59  ;;  %1284 = vst.msk [vmem:[%s1981_s19 + $0xa8] sm:$0xff] %vm215_vm0, %v1252_v22  ;;  %v1051_v44 = vadd.f32 %v1019_v5, %v949_v40  ;;  %v2617_v12 = vld [vmem:[#allocation2 + $0x1c7] sm:$0xff] }
  0xad   : > { %v1221_v57 = vmul.f32 %v2499_v13, %v1185_v45  ;;  %v849_v50 = vadd.f32 %v817_v35, %v748_v52  ;;  %v1020_v26 = vmul.f32 %v2446_v0, %v2590_v4  ;;  %v547_v51 = vadd.f32 %v515_v54, %v414_v31  ;;  %v2624_v7 = vld [vmem:[#allocation2 + $0x1c8] sm:$0xff] }
  0xae   : > { %v717_v53 = vmul.f32 %v2438_v34, %v2566_v60  ;;  %v1437_v32 = vsel %vm215_vm0, %v1386_v24, 0.0  ;;  %v1152_v49 = vadd.f32 %v1120_v56, %v1051_v44  ;;  %v1121_v39 = vmul.f32 %v2456_v41, %v2594_v16  ;;  %v2641_v44 = vld [vmem:[#allocation2 + $0x1cf] sm:$0xff] }
  0xaf   : > { %v1222_v11 = vmul.f32 %v2499_v13, %v2596_v47  ;;  %v1387_v8 = vmul.f32 %v1252_v22, %v1252_v22  ;;  %v950_v9 = vadd.f32 %v918_v21, %v849_v50  ;;  %v648_v46 = vadd.f32 %v616_v1, %v547_v51  ;;  %v2645_v50 = vld [vmem:[#allocation2 + $0x1d0] sm:$0xff] }
  0xb0   : > { %v818_v17 = vmul.f32 %v2463_v48, %v2573_v6  ;;  %v1253_v62 = vadd.f32 %v1221_v57, %v1152_v49  ;;  %v415_v2 = vmul.f32 %v2410_v19, %v2539_v43  ;;  %v516_v14 = vmul.f32 %v2417_v29, %v2543_v3 }
  0xb1   : > { %v617_v58 = vmul.f32 %v2424_v23, %v2545_v33  ;;  %v1336_v25 = vsel %vm215_vm0, %v1252_v22, 0.0  ;;  %v1052_v15 = vadd.f32 %v1020_v26, %v950_v9  ;;  %v749_v38 = vadd.f32 %v717_v53, %v648_v46  ;;  %v1187_v22 = vld [vmem:[#allocation2 + $0x1c9] sm:$0xff]  ;;  %v2647_v26 = vld [vmem:[#allocation2 + $0x1d1] sm:$0xff] }
  0xb2   : > { %v919_v27 = vmul.f32 %v2472_v20, %v1185_v45  ;;  %v1438_v61 = vadd.f32 %v1437_v32, %v1436_v10  ;;  %v1337_v18 = vadd.f32 %v1336_v25, %v1335_v36  ;;  %1285 = vst.msk [vmem:[%s1981_s19 + $0xb0] sm:$0xff] %vm215_vm0, %v1253_v62  ;;  %v548_v59 = vadd.f32 %v516_v14, %v415_v2 }
  0xb3   : > { %v718_v43 = vmul.f32 %v2438_v34, %v2590_v4  ;;  %v1439_v3 = vsel %vm215_vm0, %v1387_v8, 0.0  ;;  %v1153_v55 = vadd.f32 %v1121_v39, %v1052_v15  ;;  %v850_v33 = vadd.f32 %v818_v17, %v749_v38 }
  0xb4   : > { %v1021_v63 = vmul.f32 %v2446_v0, %v2617_v12  ;;  %v1338_v28 = vsel %vm215_vm0, %v1253_v62, 0.0  ;;  %v1122_v37 = vmul.f32 %v2456_v41, %v2624_v7  ;;  %v649_v5 = vadd.f32 %v617_v58, %v548_v59 }
  0xb5   : > { %v819_v42 = vmul.f32 %v2463_v48, %v2594_v16  ;;  %v1388_v56 = vmul.f32 %v1253_v62, %v1253_v62  ;;  %v1254_v30 = vadd.f32 %v1222_v11, %v1153_v55  ;;  %v951_v35 = vadd.f32 %v919_v27, %v850_v33 }
  0xb6   : > { %v416_v24 = vmul.f32 %v2410_v19, %v2566_v60  ;;  %v750_v40 = vadd.f32 %v718_v43, %v649_v5  ;;  %v920_v31 = vmul.f32 %v2472_v20, %v2596_v47  ;;  %v517_v52 = vmul.f32 %v2417_v29, %v2573_v6 }
  0xb7   : > { %v618_v21 = vmul.f32 %v2424_v23, %v1185_v45  ;;  %v1440_v54 = vadd.f32 %v1439_v3, %v1438_v61  ;;  %v1339_v1 = vadd.f32 %v1338_v28, %v1337_v18  ;;  %1286 = vst.msk [vmem:[%s1981_s19 + $0xb8] sm:$0xff] %vm215_vm0, %v1254_v30  ;;  %v1053_v10 = vadd.f32 %v1021_v63, %v951_v35  ;;  %v2668_v61 = vld [vmem:[#allocation2 + $0x1e7] sm:$0xff] }
  0xb8   : > { %v1223_v36 = vmul.f32 %v2499_v13, %v1187_v22  ;;  %v851_v60 = vadd.f32 %v819_v42, %v750_v40  ;;  %v1022_v57 = vmul.f32 %v2446_v0, %v2641_v44  ;;  %v549_v6 = vadd.f32 %v517_v52, %v416_v24  ;;  %v2675_v3 = vld [vmem:[#allocation2 + $0x1e8] sm:$0xff] }
  0xb9   : > { %v719_v45 = vmul.f32 %v2438_v34, %v2617_v12  ;;  %v1441_v51 = vsel %vm215_vm0, %v1388_v56, 0.0  ;;  %v1154_v53 = vadd.f32 %v1122_v37, %v1053_v10  ;;  %v1123_v32 = vmul.f32 %v2456_v41, %v2645_v50  ;;  %v2692_v10 = vld [vmem:[#allocation2 + $0x1ef] sm:$0xff] }
  0xba   : > { %v1224_v49 = vmul.f32 %v2499_v13, %v2647_v26  ;;  %v1389_v39 = vmul.f32 %v1254_v30, %v1254_v30  ;;  %v952_v11 = vadd.f32 %v920_v31, %v851_v60  ;;  %v650_v8 = vadd.f32 %v618_v21, %v549_v6  ;;  %v2696_v60 = vld [vmem:[#allocation2 + $0x1f0] sm:$0xff] }
  0xbb   : > { %v820_v9 = vmul.f32 %v2463_v48, %v2624_v7  ;;  %v1255_v46 = vadd.f32 %v1223_v36, %v1154_v53  ;;  %v417_v17 = vmul.f32 %v2410_v19, %v2590_v4  ;;  %v518_v62 = vmul.f32 %v2417_v29, %v2594_v16 }
  0xbc   : > { %v619_v2 = vmul.f32 %v2424_v23, %v2596_v47  ;;  %v1340_v14 = vsel %vm215_vm0, %v1254_v30, 0.0  ;;  %v1054_v58 = vadd.f32 %v1022_v57, %v952_v11  ;;  %v751_v25 = vadd.f32 %v719_v45, %v650_v8  ;;  %v1189_v30 = vld [vmem:[#allocation2 + $0x1e9] sm:$0xff]  ;;  %v2698_v57 = vld [vmem:[#allocation2 + $0x1f1] sm:$0xff] }
  0xbd   : > { %v921_v15 = vmul.f32 %v2472_v20, %v1187_v22  ;;  %v1442_v38 = vadd.f32 %v1441_v51, %v1440_v54  ;;  %v1341_v27 = vadd.f32 %v1340_v14, %v1339_v1  ;;  %1287 = vst.msk [vmem:[%s1981_s19 + $0xc0] sm:$0xff] %vm215_vm0, %v1255_v46  ;;  %v550_v18 = vadd.f32 %v518_v62, %v417_v17 }
  0xbe   : > { %v720_v4 = vmul.f32 %v2438_v34, %v2641_v44  ;;  %v1443_v16 = vsel %vm215_vm0, %v1389_v39, 0.0  ;;  %v1155_v59 = vadd.f32 %v1123_v32, %v1054_v58  ;;  %v852_v47 = vadd.f32 %v820_v9, %v751_v25  ;;  %v989_v9 = vld [vmem:[#allocation2 + $0x207] sm:$0xff] }
  0xbf   : > { %v1023_v43 = vmul.f32 %v2446_v0, %v2668_v61  ;;  %v1342_v55 = vsel %vm215_vm0, %v1255_v46, 0.0  ;;  %v1124_v33 = vmul.f32 %v2456_v41, %v2675_v3  ;;  %v651_v63 = vadd.f32 %v619_v2, %v550_v18 }
  0xc0   : > { %v821_v28 = vmul.f32 %v2463_v48, %v2645_v50  ;;  %v1390_v37 = vmul.f32 %v1255_v46, %v1255_v46  ;;  %v1256_v5 = vadd.f32 %v1224_v49, %v1155_v59  ;;  %v953_v42 = vadd.f32 %v921_v15, %v852_v47  ;;  %v1090_v15 = vld [vmem:[#allocation2 + $0x208] sm:$0xff] }
  0xc1   : > { %v418_v56 = vmul.f32 %v2410_v19, %v2617_v12  ;;  %v752_v35 = vadd.f32 %v720_v4, %v651_v63  ;;  %v922_v24 = vmul.f32 %v2472_v20, %v2647_v26  ;;  %v519_v40 = vmul.f32 %v2417_v29, %v2624_v7 }
  0xc2   : > { %v620_v31 = vmul.f32 %v2424_v23, %v1187_v22  ;;  %v1444_v52 = vadd.f32 %v1443_v16, %v1442_v38  ;;  %v1343_v21 = vadd.f32 %v1342_v55, %v1341_v27  ;;  %1288 = vst.msk [vmem:[%s1981_s19 + $0xc8] sm:$0xff] %vm215_vm0, %v1256_v5  ;;  %v1055_v54 = vadd.f32 %v1023_v43, %v953_v42  ;;  %v1191_v43 = vld [vmem:[#allocation2 + $0x209] sm:$0xff] }
  0xc3   : > { %v1225_v1 = vmul.f32 %v2499_v13, %v1189_v30  ;;  %v853_v12 = vadd.f32 %v821_v28, %v752_v35  ;;  %v1024_v36 = vmul.f32 %v2446_v0, %v2692_v10  ;;  %v551_v7 = vadd.f32 %v519_v40, %v418_v56  ;;  %v1192_v40 = vld [vmem:[#allocation2 + $0x211] sm:$0xff] }
  0xc4   : > { %v721_v22 = vmul.f32 %v2438_v34, %v2668_v61  ;;  %v1445_v6 = vsel %vm215_vm0, %v1390_v37, 0.0  ;;  %v1156_v45 = vadd.f32 %v1124_v33, %v1055_v54  ;;  %v1125_v51 = vmul.f32 %v2456_v41, %v2696_v60 }
  0xc5   : > { %v1226_v53 = vmul.f32 %v2499_v13, %v2698_v57  ;;  %v1391_v32 = vmul.f32 %v1256_v5, %v1256_v5  ;;  %v954_v49 = vadd.f32 %v922_v24, %v853_v12  ;;  %v652_v39 = vadd.f32 %v620_v31, %v551_v7  ;;  %v1091_v24 = vld [vmem:[#allocation2 + $0x210] sm:$0xff] }
  0xc6   : > { %v822_v11 = vmul.f32 %v2463_v48, %v2675_v3  ;;  %v1257_v8 = vadd.f32 %v1225_v1, %v1156_v45  ;;  %v419_v46 = vmul.f32 %v2410_v19, %v2641_v44  ;;  %v520_v17 = vmul.f32 %v2417_v29, %v2645_v50 }
  0xc7   : > { %v621_v62 = vmul.f32 %v2424_v23, %v2647_v26  ;;  %v1344_v2 = vsel %vm215_vm0, %v1256_v5, 0.0  ;;  %v1056_v14 = vadd.f32 %v1024_v36, %v954_v49  ;;  %v753_v58 = vadd.f32 %v721_v22, %v652_v39  ;;  %v990_v5 = vld [vmem:[#allocation2 + $0x20f] sm:$0xff] }
  0xc8   : > { %v923_v25 = vmul.f32 %v2472_v20, %v1189_v30  ;;  %v1446_v38 = vadd.f32 %v1445_v6, %v1444_v52  ;;  %v1345_v27 = vadd.f32 %v1344_v2, %v1343_v21  ;;  %1289 = vst.msk [vmem:[%s1981_s19 + $0xd0] sm:$0xff] %vm215_vm0, %v1257_v8  ;;  %v552_v18 = vadd.f32 %v520_v17, %v419_v46 }
  0xc9   : > { %v722_v44 = vmul.f32 %v2438_v34, %v2692_v10  ;;  %v1447_v50 = vsel %vm215_vm0, %v1391_v32, 0.0  ;;  %v1157_v4 = vadd.f32 %v1125_v51, %v1056_v14  ;;  %v854_v16 = vadd.f32 %v822_v11, %v753_v58  ;;  %v991_v11 = vld [vmem:[#allocation2 + $0x227] sm:$0xff] }
  0xca   : > { %v1025_v26 = vmul.f32 %v2446_v0, %v989_v9  ;;  %v1346_v59 = vsel %vm215_vm0, %v1257_v8, 0.0  ;;  %v1126_v47 = vmul.f32 %v2456_v41, %v1090_v15  ;;  %v653_v55 = vadd.f32 %v621_v62, %v552_v18 }
  0xcb   : > { %v823_v33 = vmul.f32 %v2463_v48, %v2696_v60  ;;  %v1392_v63 = vmul.f32 %v1257_v8, %v1257_v8  ;;  %v1258_v28 = vadd.f32 %v1226_v53, %v1157_v4  ;;  %v955_v37 = vadd.f32 %v923_v25, %v854_v16  ;;  %v1092_v25 = vld [vmem:[#allocation2 + $0x228] sm:$0xff] }
  0xcc   : > { %v420_v42 = vmul.f32 %v2410_v19, %v2668_v61  ;;  %v754_v56 = vadd.f32 %v722_v44, %v653_v55  ;;  %v924_v35 = vmul.f32 %v2472_v20, %v2698_v57  ;;  %v521_v31 = vmul.f32 %v2417_v29, %v2675_v3 }
  0xcd   : > { %v622_v52 = vmul.f32 %v2424_v23, %v1189_v30  ;;  %v1448_v21 = vadd.f32 %v1447_v50, %v1446_v38  ;;  %v1347_v54 = vadd.f32 %v1346_v59, %v1345_v27  ;;  %1290 = vst.msk [vmem:[%s1981_s19 + $0xd8] sm:$0xff] %vm215_vm0, %v1258_v28  ;;  %v1057_v1 = vadd.f32 %v1025_v26, %v955_v37  ;;  %v992_v59 = vld [vmem:[#allocation2 + $0x22f] sm:$0xff] }
  0xce   : > { %v1227_v12 = vmul.f32 %v2499_v13, %v1191_v43  ;;  %v855_v36 = vadd.f32 %v823_v33, %v754_v56  ;;  %v1026_v61 = vmul.f32 %v2446_v0, %v990_v5  ;;  %v553_v7 = vadd.f32 %v521_v31, %v420_v42 }
  0xcf   : > { %v723_v22 = vmul.f32 %v2438_v34, %v989_v9  ;;  %v1449_v6 = vsel %vm215_vm0, %v1392_v63, 0.0  ;;  %v1158_v45 = vadd.f32 %v1126_v47, %v1057_v1  ;;  %v1127_v3 = vmul.f32 %v2456_v41, %v1091_v24 }
  0xd0   : > { %v1228_v30 = vmul.f32 %v2499_v13, %v1192_v40  ;;  %v1393_v51 = vmul.f32 %v1258_v28, %v1258_v28  ;;  %v956_v53 = vadd.f32 %v924_v35, %v855_v36  ;;  %v654_v32 = vadd.f32 %v622_v52, %v553_v7 }
  0xd1   : > { %v824_v49 = vmul.f32 %v2463_v48, %v1090_v15  ;;  %v1259_v39 = vadd.f32 %v1227_v12, %v1158_v45  ;;  %v421_v8 = vmul.f32 %v2410_v19, %v2692_v10  ;;  %v522_v9 = vmul.f32 %v2417_v29, %v2696_v60 }
  0xd2   : > { %v623_v46 = vmul.f32 %v2424_v23, %v2698_v57  ;;  %v1450_v17 = vadd.f32 %v1449_v6, %v1448_v21  ;;  %v1058_v62 = vadd.f32 %v1026_v61, %v956_v53  ;;  %v755_v2 = vadd.f32 %v723_v22, %v654_v32  ;;  %v1193_v57 = vld [vmem:[#allocation2 + $0x229] sm:$0xff] }
  0xd3   : > { %v925_v14 = vmul.f32 %v2472_v20, %v1191_v43  ;;  %v1348_v58 = vsel %vm215_vm0, %v1258_v28, 0.0  ;;  %1291 = vst.msk [vmem:[%s1981_s19 + $0xe0] sm:$0xff] %vm215_vm0, %v1259_v39  ;;  %v554_v15 = vadd.f32 %v522_v9, %v421_v8  ;;  %v724_v38 = vmul.f32 %v2438_v34, %v990_v5  ;;  %v1093_v28 = vld [vmem:[#allocation2 + $0x230] sm:$0xff] }
  0xd4   : > { %v1349_v19 = vadd.f32 %v1348_v58, %v1347_v54  ;;  %v1159_v10 = vadd.f32 %v1127_v3, %v1058_v62  ;;  %v856_v27 = vadd.f32 %v824_v49, %v755_v2  ;;  %v1027_v29 = vmul.f32 %v2446_v0, %v991_v11 }
  0xd5   : > { %v1451_v23 = vsel %vm215_vm0, %v1393_v51, 0.0  ;;  %v1394_v60 = vmul.f32 %v1259_v39, %v1259_v39  ;;  %v655_v18 = vadd.f32 %v623_v46, %v554_v15  ;;  %v825_v44 = vmul.f32 %v2463_v48, %v1091_v24  ;;  %v1194_v24 = vld [vmem:[#allocation2 + $0x231] sm:$0xff] }
  0xd6   : > { %v1452_v50 = vadd.f32 %v1451_v23, %v1450_v17  ;;  %v1260_v4 = vadd.f32 %v1228_v30, %v1159_v10  ;;  %v957_v16 = vadd.f32 %v925_v14, %v856_v27  ;;  %v1128_v26 = vmul.f32 %v2456_v41, %v1092_v25 }
  0xd7   : > { %v1350_v34 = vsel %vm215_vm0, %v1259_v39, 0.0  ;;  %v756_v47 = vadd.f32 %v724_v38, %v655_v18  ;;  %v926_v43 = vmul.f32 %v2472_v20, %v1192_v40  ;;  %v1229_v63 = vmul.f32 %v2499_v13, %v1193_v57 }
  0xd8   : > { %v1351_v55 = vadd.f32 %v1350_v34, %v1349_v19  ;;  %1292 = vst.msk [vmem:[%s1981_s19 + $0xe8] sm:$0xff] %vm215_vm0, %v1260_v4  ;;  %v1059_v33 = vadd.f32 %v1027_v29, %v957_v16  ;;  %v1453_v48 = vsel %vm215_vm0, %v1394_v60, 0.0  ;;  %v1395_v37 = vmul.f32 %v1260_v4, %v1260_v4 }
  0xd9   : > { %v857_v5 = vadd.f32 %v825_v44, %v756_v47  ;;  %v1028_v42 = vmul.f32 %v2446_v0, %v992_v59  ;;  %v1454_v56 = vadd.f32 %v1453_v48, %v1452_v50  ;;  %v1352_v31 = vsel %vm215_vm0, %v1260_v4, 0.0 }
  0xda   : > { %v1160_v35 = vadd.f32 %v1128_v26, %v1059_v33  ;;  %v1129_v40 = vmul.f32 %v2456_v41, %v1093_v28  ;;  %v1353_v52 = vadd.f32 %v1352_v31, %v1351_v55  ;;  %v1455_v54 = vsel %vm215_vm0, %v1395_v37, 0.0 }
  0xdb   : > { %v958_v20 = vadd.f32 %v926_v43, %v857_v5  ;;  %v1230_v12 = vmul.f32 %v2499_v13, %v1194_v24  ;;  %v1456_v36 = vadd.f32 %v1455_v54, %v1454_v56 }
  0xdc   : > { %v1261_v21 = vadd.f32 %v1229_v63, %v1160_v35 }
  0xdd   : > { %v1060_v1 = vadd.f32 %v1028_v42, %v958_v20 }
  0xde   : > { %1293 = vst.msk [vmem:[%s1981_s19 + $0xf0] sm:$0xff] %vm215_vm0, %v1261_v21  ;;  %v1396_v0 = vmul.f32 %v1261_v21, %v1261_v21  ;;  %v1354_v61 = vsel %vm215_vm0, %v1261_v21, 0.0 }
  0xdf   : > { %v1161_v7 = vadd.f32 %v1129_v40, %v1060_v1  ;;  %v1355_v22 = vadd.f32 %v1354_v61, %v1353_v52 }
  0xe0   : > { %v1457_v6 = vsel %vm215_vm0, %v1396_v0, 0.0 }
  0xe1   : > { %v1262_v45 = vadd.f32 %v1230_v12, %v1161_v7  ;;  %v1458_v3 = vadd.f32 %v1457_v6, %v1456_v36 }
  0xe3   : > { %1294 = vst.msk [vmem:[%s1981_s19 + $0xf8] sm:$0xff] %vm215_vm0, %v1262_v45  ;;  %v1356_v41 = vsel %vm215_vm0, %v1262_v45, 0.0  ;;  %v1397_v30 = vmul.f32 %v1262_v45, %v1262_v45  ;;  %s214_s19 = scalar_lea.vmem %s2792_s4, %s2795_s16 }
  0xe4   : > { %v1357_v51 = vadd.f32 %v1356_v41, %v1355_v22 }
  0xe5   : > { %v1459_v13 = vsel %vm215_vm0, %v1397_v30, 0.0 }
  0xe6   : > { %v1358_v53 = vrot.slane %v1357_v51, 4  ;;  %v1460_v32 = vadd.f32 %v1459_v13, %v1458_v3 }
  0xe8   : > { %v1359_v49 = vadd.f32 %v1358_v53, %v1357_v51  ;;  %v1461_v39 = vrot.slane %v1460_v32, 4 }
  0xea   : > { %v1360_v11 = vrot.slane %v1359_v49, 2  ;;  %v1462_v8 = vadd.f32 %v1461_v39, %v1460_v32 }
  0xec   : > { %v1361_v9 = vadd.f32 %v1360_v11, %v1359_v49  ;;  %v1463_v46 = vrot.slane %v1462_v8, 2 }
  0xee   : > { %v1362_v17 = vrot.slane %v1361_v9, 1  ;;  %v1464_v62 = vadd.f32 %v1463_v46, %v1462_v8 }
  0xf0   : > { %v1363_v2 = vadd.f32 %v1362_v17, %v1361_v9  ;;  %v1465_v14 = vrot.slane %v1464_v62, 1 }
  0xf2   : > { %1365 = vst.msk [vmem:[%s211_s13] sm:$0x1] %vm1364_vm1, %v1363_v2  ;;  %v1466_v58 = vadd.f32 %v1465_v14, %v1464_v62 }
  0xf4   : > { %1467 = vst.msk [vmem:[%s214_s19] sm:$0x1] %vm1364_vm1, %v1466_v58 }
  0xf5 PF: > { %s15_s15 = sadd.s32 1, %s1619_s15  }
  0xf6   : > { %p12_p4 = scmp.ge.s32.totalorder %s15_s15, 4  }
  0xf8   :  { %14 = sbr.rel (!%p12_p4) target bundleno = 1 (0x1), region = 84 }

</bundles_post_ra>
